<compile_context>
chip_gen: v7x
topology: tpu7x:2x2x1
jax: 0.10.0
libtpu: 0.0.40
codegen_flags: <defaults>
</compile_context>

<pallas_src>
import numpy as np
import jax
import jax.numpy as jnp
from jax import lax
from jax.experimental import pallas as pl
from jax.experimental.pallas import tpu as pltpu

_PREC = jax.lax.Precision.HIGHEST


def _round_up(a, m):
    return ((a + m - 1) // m) * m


# ----------------------------------------------------------------------------
# Pallas kernel (one batch tile per grid step)
# ----------------------------------------------------------------------------
def build_kernel(num_layers, S, Bt, Hd, padding_value):
    def kernel(*refs):
        i = 0
        x_ref = refs[i]; i += 1            # (S, Bt, E)      f32  VMEM
        len_ref = refs[i]; i += 1          # (Bt, 1)         i32  VMEM
        layers = []
        for _ in range(num_layers):
            # Wi_cat (in, 3Hd), Wh_cat (Hd, 3Hd), bi_cat (1, 3Hd), bhn (1, Hd)
            layers.append(refs[i:i + 4]); i += 4
        lin_w_ref = refs[i]; i += 1        # (1, Hd)         f32  VMEM
        lin_b_ref = refs[i]; i += 1        # (1,)            f32  SMEM
        logits_ref = refs[i]; i += 1       # (1, S, Bt)      out
        prob_ref = refs[i]; i += 1         # (1, S, Bt)      out
        gi_buf = refs[i]; i += 1           # (S, Bt, 3*Hd)   scratch
        out_buf = refs[i]; i += 1          # (S, Bt, Hd)     scratch (reused)

        lens = len_ref[...]                # (Bt, 1) int32
        pad = jnp.float32(padding_value)
        unroll = True if S <= 64 else 8

        for l in range(num_layers):
            wi_ref, wh_ref, bi_ref, bhn_ref = layers[l]
            in_ref = x_ref if l == 0 else out_buf

            # ---- hoisted input projection: one big MXU matmul per layer ----
            xin = in_ref[...]                                   # (S, Bt, in_l)
            in_l = xin.shape[-1]
            gi = jnp.dot(xin.reshape(S * Bt, in_l), wi_ref[...],
                         preferred_element_type=jnp.float32, precision=_PREC)
            gi_buf[...] = (gi + bi_ref[...]).reshape(S, Bt, 3 * Hd)

            wh = wh_ref[...]                                    # (Hd, 3*Hd)
            bhn = bhn_ref[...]                                  # (1, Hd)

            # ---- sequential recurrence: one fused (Bt,Hd)x(Hd,3Hd) matmul/step
            def step(t, h_prev):
                gi_t = gi_buf[t]                                # (Bt, 3*Hd)
                gh = jnp.dot(h_prev, wh,
                             preferred_element_type=jnp.float32, precision=_PREC)
                r = jax.nn.sigmoid(gi_t[:, :Hd] + gh[:, :Hd])
                z = jax.nn.sigmoid(gi_t[:, Hd:2 * Hd] + gh[:, Hd:2 * Hd])
                n = jnp.tanh(gi_t[:, 2 * Hd:] + r * (gh[:, 2 * Hd:] + bhn))
                h_new = (1.0 - z) * n + z * h_prev
                mask = t < lens                                 # (Bt, 1)
                out_buf[t] = jnp.where(mask, h_new, pad)        # padded output
                return jnp.where(mask, h_new, h_prev)           # frozen state

            lax.fori_loop(0, S, step, jnp.zeros((Bt, Hd), jnp.float32),
                          unroll=unroll)

        # ---- fused final Linear(hidden -> 1) + sigmoid over all positions ----
        seq = out_buf[...]                                      # (S, Bt, Hd)
        logits_sb = jnp.sum(seq * lin_w_ref[...], axis=-1) + lin_b_ref[0]
        logits_ref[0] = logits_sb                               # (S, Bt)
        prob_ref[0] = jax.nn.sigmoid(logits_sb)

    return kernel


# ----------------------------------------------------------------------------
# Wrapper
# ----------------------------------------------------------------------------
def discriminator_forward(H, T, gru_params, lin_w, lin_b, padding_value,
                          max_seq_len, batch_tile=None):
    """H: (B, S, E) f32, T: (B,) int lengths. Returns (logits, classification), each (B, S)."""
    B, S, E = H.shape
    assert S == max_seq_len
    Hd = lin_w.shape[1]
    num_layers = len(gru_params)

    # ---- batch tiling: <=128 rows per tile, multiple of 8 sublanes ----
    if batch_tile is None:
        n_tiles = max(1, (B + 127) // 128)
        Bt = _round_up((B + n_tiles - 1) // n_tiles, 8)
    else:
        Bt = _round_up(int(batch_tile), 8)
    Bp = _round_up(B, Bt)
    n_tiles = Bp // Bt

    # Pad batch; padded rows get length 0 (frozen state, padding output).
    Hf = H.astype(jnp.float32)
    Tl = T.astype(jnp.int32)
    if Bp != B:
        Hf = jnp.concatenate([Hf, jnp.zeros((Bp - B, S, E), jnp.float32)], axis=0)
        Tl = jnp.concatenate([Tl, jnp.zeros((Bp - B,), jnp.int32)], axis=0)

    x_tmajor = jnp.transpose(Hf, (1, 0, 2))          # (S, Bp, E) time-major
    lens = Tl.reshape(Bp, 1)

    flat_inputs = [x_tmajor, lens]
    for (w_ih, w_hh, b_ih, b_hh) in gru_params:
        # PyTorch GRU layout: rows = [r; z; n]; transpose -> columns = [r | z | n].
        flat_inputs.append(jnp.transpose(w_ih).astype(jnp.float32))   # (in_l, 3*Hd)
        flat_inputs.append(jnp.transpose(w_hh).astype(jnp.float32))   # (Hd, 3*Hd)
        bi_cat = jnp.concatenate([b_ih[:Hd] + b_hh[:Hd],
                                  b_ih[Hd:2 * Hd] + b_hh[Hd:2 * Hd],
                                  b_ih[2 * Hd:]]).reshape(1, 3 * Hd)
        flat_inputs.append(bi_cat.astype(jnp.float32))                # (1, 3*Hd)
        flat_inputs.append(b_hh[2 * Hd:].reshape(1, Hd).astype(jnp.float32))  # b_hn
    flat_inputs.append(lin_w.reshape(1, Hd).astype(jnp.float32))
    flat_inputs.append(lin_b.reshape(1).astype(jnp.float32))          # -> SMEM

    def const_spec(shape):
        nd = len(shape)
        return pl.BlockSpec(shape, lambda b, _nd=nd: (0,) * _nd)

    in_specs = [
        pl.BlockSpec((S, Bt, E), lambda b: (0, b, 0)),      # x (batch-tiled)
        pl.BlockSpec((Bt, 1), lambda b: (b, 0)),            # lengths
    ]
    for arr in flat_inputs[2:-1]:                           # weights resident in VMEM
        in_specs.append(const_spec(arr.shape))
    in_specs.append(pl.BlockSpec(memory_space=pltpu.MemorySpace.SMEM))  # lin_b scalar

    out_specs = (pl.BlockSpec((1, S, Bt), lambda b: (b, 0, 0)),
                 pl.BlockSpec((1, S, Bt), lambda b: (b, 0, 0)))
    out_shape = (jax.ShapeDtypeStruct((n_tiles, S, Bt), jnp.float32),
                 jax.ShapeDtypeStruct((n_tiles, S, Bt), jnp.float32))

    # VMEM budget from the actual per-tile footprint (headroom x2), 32..64 MiB.
    weight_bytes = sum(int(np.prod(a.shape)) * 4 for a in flat_inputs[2:])
    tile_io_bytes = 4 * (S * Bt * E + Bt + 2 * S * Bt)       # x tile, lens, two outs
    scratch_bytes = 4 * (S * Bt * (3 * Hd + Hd))
    footprint = weight_bytes + 2 * tile_io_bytes + scratch_bytes
    vmem_limit = int(min(64 * 2 ** 20, max(32 * 2 ** 20, 2 * footprint)))

    kernel = build_kernel(num_layers, S, Bt, Hd, padding_value)
    logits_tiles, prob_tiles = pl.pallas_call(
        kernel,
        out_shape=out_shape,
        grid_spec=pltpu.PrefetchScalarGridSpec(
            num_scalar_prefetch=0,
            grid=(n_tiles,),
            in_specs=in_specs,
            out_specs=out_specs,
            scratch_shapes=[
                pltpu.VMEM((S, Bt, 3 * Hd), jnp.float32),   # hoisted input projections
                pltpu.VMEM((S, Bt, Hd), jnp.float32),       # reused layer-output buffer
            ]),
        compiler_params=pltpu.CompilerParams(
            dimension_semantics=("parallel",),
            vmem_limit_bytes=vmem_limit),
    )(*flat_inputs)

    # (n_tiles, S, Bt) -> (Bp, S) -> (B, S)   (cheap XLA relayout outside the kernel)
    logits = jnp.transpose(logits_tiles, (0, 2, 1)).reshape(Bp, S)[:B]
    probs = jnp.transpose(prob_tiles, (0, 2, 1)).reshape(Bp, S)[:B]
    return logits, probs


# ----------------------------------------------------------------------------
# Deterministic parameter init (mirrors PyTorch __init__: xavier_uniform weights,
# bias_ih = 1, bias_hh = 0, linear bias = 0).
# ----------------------------------------------------------------------------
def init_params(key, input_size, hidden_dim, num_layers):
    params = []
    for l in range(num_layers):
        in_l = input_size if l == 0 else hidden_dim
        key, k1, k2 = jax.random.split(key, 3)
        a_ih = float(np.sqrt(6.0 / (in_l + 3 * hidden_dim)))
        w_ih = jax.random.uniform(k1, (3 * hidden_dim, in_l), jnp.float32, -a_ih, a_ih)
        a_hh = float(np.sqrt(6.0 / (hidden_dim + 3 * hidden_dim)))
        w_hh = jax.random.uniform(k2, (3 * hidden_dim, hidden_dim), jnp.float32, -a_hh, a_hh)
        b_ih = jnp.ones((3 * hidden_dim,), jnp.float32)
        b_hh = jnp.zeros((3 * hidden_dim,), jnp.float32)
        params.append((w_ih, w_hh, b_ih, b_hh))
    key, k3 = jax.random.split(key)
    a_l = float(np.sqrt(6.0 / (hidden_dim + 1)))
    lin_w = jax.random.uniform(k3, (1, hidden_dim), jnp.float32, -a_l, a_l)
    lin_b = jnp.zeros((1,), jnp.float32)
    return params, lin_w, lin_b


# ----------------------------------------------------------------------------
# Pure-JAX reference (for correctness check)
# ----------------------------------------------------------------------------
def reference_forward(H, T, gru_params, lin_w, lin_b, padding_value):
    B, S, E = H.shape
    x = H.astype(jnp.float32)
    lens = T.astype(jnp.int32)
    for (w_ih, w_hh, b_ih, b_hh) in gru_params:
        Hd = w_hh.shape[1]

        def step(h, inp):
            x_t, t_idx = inp
            gi = jnp.dot(x_t, w_ih.T, precision=_PREC) + b_ih
            gh = jnp.dot(h, w_hh.T, precision=_PREC) + b_hh
            r = jax.nn.sigmoid(gi[:, :Hd] + gh[:, :Hd])
            z = jax.nn.sigmoid(gi[:, Hd:2 * Hd] + gh[:, Hd:2 * Hd])
            n = jnp.tanh(gi[:, 2 * Hd:] + r * gh[:, 2 * Hd:])
            h_new = (1.0 - z) * n + z * h
            mask = (t_idx < lens)[:, None]
            h = jnp.where(mask, h_new, h)
            out = jnp.where(mask, h_new, padding_value)
            return h, out

        xs = (jnp.transpose(x, (1, 0, 2)), jnp.arange(S, dtype=jnp.int32))
        _, outs = jax.lax.scan(step, jnp.zeros((B, Hd), jnp.float32), xs)
        x = jnp.transpose(outs, (1, 0, 2))
    logits = (jnp.dot(x, lin_w.T, precision=_PREC) + lin_b)[..., 0]   # (B, S)
    return logits, jax.nn.sigmoid(logits)


# ----------------------------------------------------------------------------
if __name__ == "__main__":
    B, S, E, HIDDEN, NUM_LAYERS = 4, 8, 4, 32, 2
    PADDING_VALUE = -1.0

    key = jax.random.PRNGKey(0)
    key, k_h = jax.random.split(key)
    H = jax.random.normal(k_h, (B, S, E), jnp.float32)
    T = jnp.array([8, 5, 3, 8], jnp.int32)   # valid lengths per sequence

    gru_params, lin_w, lin_b = init_params(key, E, HIDDEN, NUM_LAYERS)

    # ---- single-tile path ----
    logits, classification = discriminator_forward(
        H, T, gru_params, lin_w, lin_b, PADDING_VALUE, max_seq_len=S)
    jax.block_until_ready((logits, classification))

    ref_logits, ref_cls = reference_forward(H, T, gru_params, lin_w, lin_b, PADDING_VALUE)
    assert logits.shape == (B, S) and classification.shape == (B, S)
    np.testing.assert_allclose(np.asarray(logits), np.asarray(ref_logits),
                               rtol=1e-3, atol=1e-3)
    np.testing.assert_allclose(np.asarray(classification), np.asarray(ref_cls),
                               rtol=1e-3, atol=1e-3)

    # ---- multi-tile grid path (batch sharded across the "parallel" grid axis) ----
    B2 = 20
    key, k2, kt = jax.random.split(key, 3)
    H2 = jax.random.normal(k2, (B2, S, E), jnp.float32)
    T2 = jax.random.randint(kt, (B2,), 1, S + 1).astype(jnp.int32)
    logits2, cls2 = discriminator_forward(
        H2, T2, gru_params, lin_w, lin_b, PADDING_VALUE, max_seq_len=S, batch_tile=8)
    jax.block_until_ready((logits2, cls2))

    ref_l2, ref_c2 = reference_forward(H2, T2, gru_params, lin_w, lin_b, PADDING_VALUE)
    assert logits2.shape == (B2, S) and cls2.shape == (B2, S)
    np.testing.assert_allclose(np.asarray(logits2), np.asarray(ref_l2),
                               rtol=1e-3, atol=1e-3)
    np.testing.assert_allclose(np.asarray(cls2), np.asarray(ref_c2),
                               rtol=1e-3, atol=1e-3)

    print("KERNEL_OK")
</pallas_src>

<mosaic_0001>
module attributes {stable_mosaic.version = 11 : i64} {
  func.func @kernel(%arg0: i32, %arg1: memref<8x8x4xf32, #tpu.memory_space<vmem>>, %arg2: memref<8x1xi32, #tpu.memory_space<vmem>>, %arg3: memref<4x96xf32, #tpu.memory_space<vmem>>, %arg4: memref<32x96xf32, #tpu.memory_space<vmem>>, %arg5: memref<1x96xf32, #tpu.memory_space<vmem>>, %arg6: memref<1x32xf32, #tpu.memory_space<vmem>>, %arg7: memref<32x96xf32, #tpu.memory_space<vmem>>, %arg8: memref<32x96xf32, #tpu.memory_space<vmem>>, %arg9: memref<1x96xf32, #tpu.memory_space<vmem>>, %arg10: memref<1x32xf32, #tpu.memory_space<vmem>>, %arg11: memref<1x32xf32, #tpu.memory_space<vmem>>, %arg12: memref<1xf32, #tpu.memory_space<smem>>, %arg13: memref<1x8x8xf32, #tpu.memory_space<vmem>>, %arg14: memref<1x8x8xf32, #tpu.memory_space<vmem>>, %arg15: memref<8x8x96xf32, #tpu.memory_space<vmem>>, %arg16: memref<8x8x32xf32, #tpu.memory_space<vmem>>) attributes {dimension_semantics = [#tpu.dimension_semantics<parallel>], iteration_bounds = array<i64: 1>, scalar_prefetch = 0 : i64, scratch_operands = 2 : i64, tpu.core_type = #tpu.core_type<tc>, window_params = [{transform_indices = @transform_0, window_bounds = array<i64: 8, 8, 4>}, {transform_indices = @transform_1, window_bounds = array<i64: 8, 1>}, {pipeline_mode = #tpu.pipeline_mode<synchronous>, transform_indices = @transform_2, window_bounds = array<i64: 4, 96>}, {pipeline_mode = #tpu.pipeline_mode<synchronous>, transform_indices = @transform_3, window_bounds = array<i64: 32, 96>}, {pipeline_mode = #tpu.pipeline_mode<synchronous>, transform_indices = @transform_4, window_bounds = array<i64: 1, 96>}, {pipeline_mode = #tpu.pipeline_mode<synchronous>, transform_indices = @transform_5, window_bounds = array<i64: 1, 32>}, {pipeline_mode = #tpu.pipeline_mode<synchronous>, transform_indices = @transform_6, window_bounds = array<i64: 32, 96>}, {pipeline_mode = #tpu.pipeline_mode<synchronous>, transform_indices = @transform_7, window_bounds = array<i64: 32, 96>}, {pipeline_mode = #tpu.pipeline_mode<synchronous>, transform_indices = @transform_8, window_bounds = array<i64: 1, 96>}, {pipeline_mode = #tpu.pipeline_mode<synchronous>, transform_indices = @transform_9, window_bounds = array<i64: 1, 32>}, {pipeline_mode = #tpu.pipeline_mode<synchronous>, transform_indices = @transform_10, window_bounds = array<i64: 1, 32>}, {transform_indices = @transform_11, window_bounds = array<i64: 1>}, {transform_indices = @transform_12, window_bounds = array<i64: 1, 8, 8>}, {transform_indices = @transform_13, window_bounds = array<i64: 1, 8, 8>}]} {
    %c0 = arith.constant 0 : index
    %c0_0 = arith.constant 0 : index
    %0 = vector.load %arg2[%c0, %c0_0] : memref<8x1xi32, #tpu.memory_space<vmem>>, vector<8x1xi32>
    %c0_1 = arith.constant 0 : index
    %c0_2 = arith.constant 0 : index
    %c0_3 = arith.constant 0 : index
    %1 = vector.load %arg1[%c0_1, %c0_2, %c0_3] : memref<8x8x4xf32, #tpu.memory_space<vmem>>, vector<8x8x4xf32>
    %2 = vector.shape_cast %1 : vector<8x8x4xf32> to vector<64x4xf32>
    %c0_4 = arith.constant 0 : index
    %c0_5 = arith.constant 0 : index
    %3 = vector.load %arg3[%c0_4, %c0_5] : memref<4x96xf32, #tpu.memory_space<vmem>>, vector<4x96xf32>
    %cst = arith.constant dense<0.000000e+00> : vector<64x96xf32>
    %4 = tpu.matmul %2, %3, %cst {dimension_numbers = #tpu.dot_dimension_numbers<[1], [0], [0], [1], [0, 0, 1, 1], [], []>, precision = #tpu.contract_precision<fp32>} : vector<64x4xf32>, vector<4x96xf32>, vector<64x96xf32> -> vector<64x96xf32>
    %c0_6 = arith.constant 0 : index
    %c0_7 = arith.constant 0 : index
    %5 = vector.load %arg5[%c0_6, %c0_7] : memref<1x96xf32, #tpu.memory_space<vmem>>, vector<1x96xf32>
    %6 = vector.broadcast %5 : vector<1x96xf32> to vector<64x96xf32>
    %7 = arith.addf %4, %6 : vector<64x96xf32>
    %8 = vector.shape_cast %7 : vector<64x96xf32> to vector<8x8x96xf32>
    %c0_8 = arith.constant 0 : index
    %c0_9 = arith.constant 0 : index
    %c0_10 = arith.constant 0 : index
    %9 = vector.load %arg15[%c0_8, %c0_9, %c0_10] : memref<8x8x96xf32, #tpu.memory_space<vmem>>, vector<8x8x96xf32>
    tpu.vector_store %arg15[%c0_8, %c0_9, %c0_10], %8 {strides = array<i32>} : memref<8x8x96xf32, #tpu.memory_space<vmem>>, vector<8x8x96xf32>,
    %c0_11 = arith.constant 0 : index
    %c0_12 = arith.constant 0 : index
    %10 = vector.load %arg4[%c0_11, %c0_12] : memref<32x96xf32, #tpu.memory_space<vmem>>, vector<32x96xf32>
    %c0_13 = arith.constant 0 : index
    %c0_14 = arith.constant 0 : index
    %11 = vector.load %arg6[%c0_13, %c0_14] : memref<1x32xf32, #tpu.memory_space<vmem>>, vector<1x32xf32>
    %cst_15 = arith.constant 0.000000e+00 : f32
    %12 = vector.broadcast %cst_15 : f32 to vector<8x32xf32>
    %cst_16 = arith.constant -1.000000e+00 : f32
    %c0_i32 = arith.constant 0 : i32
    %13 = arith.index_cast %c0_i32 : i32 to index
    %c0_17 = arith.constant 0 : index
    %c0_18 = arith.constant 0 : index
    %14 = vector.load %arg15[%13, %c0_17, %c0_18] : memref<8x8x96xf32, #tpu.memory_space<vmem>>, vector<1x8x96xf32>
    %15 = vector.shape_cast %14 : vector<1x8x96xf32> to vector<8x96xf32>
    %cst_19 = arith.constant dense<0.000000e+00> : vector<8x96xf32>
    %16 = tpu.matmul %12, %10, %cst_19 {dimension_numbers = #tpu.dot_dimension_numbers<[1], [0], [0], [1], [0, 0, 1, 1], [], []>, precision = #tpu.contract_precision<fp32>} : vector<8x32xf32>, vector<32x96xf32>, vector<8x96xf32> -> vector<8x96xf32>
    %17 = vector.extract_strided_slice %15 {offsets = [0, 0], sizes = [8, 32], strides = [1, 1]} : vector<8x96xf32> to vector<8x32xf32>
    %18 = vector.extract_strided_slice %16 {offsets = [0, 0], sizes = [8, 32], strides = [1, 1]} : vector<8x96xf32> to vector<8x32xf32>
    %19 = arith.addf %17, %18 : vector<8x32xf32>
    %20 = arith.negf %19 : vector<8x32xf32>
    %21 = math.exp %20 : vector<8x32xf32>
    %cst_20 = arith.constant 1.000000e+00 : f32
    %22 = vector.broadcast %cst_20 : f32 to vector<8x32xf32>
    %23 = arith.addf %22, %21 : vector<8x32xf32>
    %24 = arith.divf %22, %23 : vector<8x32xf32>
    %25 = vector.extract_strided_slice %15 {offsets = [0, 32], sizes = [8, 32], strides = [1, 1]} : vector<8x96xf32> to vector<8x32xf32>
    %26 = vector.extract_strided_slice %16 {offsets = [0, 32], sizes = [8, 32], strides = [1, 1]} : vector<8x96xf32> to vector<8x32xf32>
    %27 = arith.addf %25, %26 : vector<8x32xf32>
    %28 = arith.negf %27 : vector<8x32xf32>
    %29 = math.exp %28 : vector<8x32xf32>
    %cst_21 = arith.constant 1.000000e+00 : f32
    %30 = vector.broadcast %cst_21 : f32 to vector<8x32xf32>
    %31 = arith.addf %30, %29 : vector<8x32xf32>
    %32 = arith.divf %30, %31 : vector<8x32xf32>
    %33 = vector.extract_strided_slice %15 {offsets = [0, 64], sizes = [8, 32], strides = [1, 1]} : vector<8x96xf32> to vector<8x32xf32>
    %34 = vector.extract_strided_slice %16 {offsets = [0, 64], sizes = [8, 32], strides = [1, 1]} : vector<8x96xf32> to vector<8x32xf32>
    %35 = vector.broadcast %11 : vector<1x32xf32> to vector<8x32xf32>
    %36 = arith.addf %34, %35 : vector<8x32xf32>
    %37 = arith.mulf %24, %36 : vector<8x32xf32>
    %38 = arith.addf %33, %37 : vector<8x32xf32>
    %39 = math.tanh %38 : vector<8x32xf32>
    %cst_22 = arith.constant 1.000000e+00 : f32
    %40 = vector.broadcast %cst_22 : f32 to vector<8x32xf32>
    %41 = arith.subf %40, %32 : vector<8x32xf32>
    %42 = arith.mulf %41, %39 : vector<8x32xf32>
    %43 = arith.mulf %32, %12 : vector<8x32xf32>
    %44 = arith.addf %42, %43 : vector<8x32xf32>
    %45 = vector.broadcast %c0_i32 : i32 to vector<8x1xi32>
    %46 = arith.cmpi slt, %45, %0 : vector<8x1xi32>
    %47 = vector.shape_cast %46 : vector<8x1xi1> to vector<8x1xi1>
    %48 = vector.broadcast %47 : vector<8x1xi1> to vector<8x32xi1>
    %49 = vector.broadcast %cst_16 : f32 to vector<8x32xf32>
    %50 = arith.select %48, %44, %49 : vector<8x32xi1>, vector<8x32xf32>
    %51 = arith.index_cast %c0_i32 : i32 to index
    %c0_23 = arith.constant 0 : index
    %c0_24 = arith.constant 0 : index
    %52 = vector.load %arg16[%51, %c0_23, %c0_24] : memref<8x8x32xf32, #tpu.memory_space<vmem>>, vector<1x8x32xf32>
    %53 = vector.shape_cast %52 : vector<1x8x32xf32> to vector<8x32xf32>
    %54 = vector.shape_cast %50 : vector<8x32xf32> to vector<1x8x32xf32>
    tpu.vector_store %arg16[%51, %c0_23, %c0_24], %54 {strides = array<i32>} : memref<8x8x32xf32, #tpu.memory_space<vmem>>, vector<1x8x32xf32>,
    %55 = vector.shape_cast %46 : vector<8x1xi1> to vector<8x1xi1>
    %56 = vector.broadcast %55 : vector<8x1xi1> to vector<8x32xi1>
    %57 = arith.select %56, %44, %12 : vector<8x32xi1>, vector<8x32xf32>
    %c1_i32 = arith.constant 1 : i32
    %58 = arith.index_cast %c1_i32 : i32 to index
    %c0_25 = arith.constant 0 : index
    %c0_26 = arith.constant 0 : index
    %59 = vector.load %arg15[%58, %c0_25, %c0_26] : memref<8x8x96xf32, #tpu.memory_space<vmem>>, vector<1x8x96xf32>
    %60 = vector.shape_cast %59 : vector<1x8x96xf32> to vector<8x96xf32>
    %cst_27 = arith.constant dense<0.000000e+00> : vector<8x96xf32>
    %61 = tpu.matmul %57, %10, %cst_27 {dimension_numbers = #tpu.dot_dimension_numbers<[1], [0], [0], [1], [0, 0, 1, 1], [], []>, precision = #tpu.contract_precision<fp32>} : vector<8x32xf32>, vector<32x96xf32>, vector<8x96xf32> -> vector<8x96xf32>
    %62 = vector.extract_strided_slice %60 {offsets = [0, 0], sizes = [8, 32], strides = [1, 1]} : vector<8x96xf32> to vector<8x32xf32>
    %63 = vector.extract_strided_slice %61 {offsets = [0, 0], sizes = [8, 32], strides = [1, 1]} : vector<8x96xf32> to vector<8x32xf32>
    %64 = arith.addf %62, %63 : vector<8x32xf32>
    %65 = arith.negf %64 : vector<8x32xf32>
    %66 = math.exp %65 : vector<8x32xf32>
    %cst_28 = arith.constant 1.000000e+00 : f32
    %67 = vector.broadcast %cst_28 : f32 to vector<8x32xf32>
    %68 = arith.addf %67, %66 : vector<8x32xf32>
    %69 = arith.divf %67, %68 : vector<8x32xf32>
    %70 = vector.extract_strided_slice %60 {offsets = [0, 32], sizes = [8, 32], strides = [1, 1]} : vector<8x96xf32> to vector<8x32xf32>
    %71 = vector.extract_strided_slice %61 {offsets = [0, 32], sizes = [8, 32], strides = [1, 1]} : vector<8x96xf32> to vector<8x32xf32>
    %72 = arith.addf %70, %71 : vector<8x32xf32>
    %73 = arith.negf %72 : vector<8x32xf32>
    %74 = math.exp %73 : vector<8x32xf32>
    %cst_29 = arith.constant 1.000000e+00 : f32
    %75 = vector.broadcast %cst_29 : f32 to vector<8x32xf32>
    %76 = arith.addf %75, %74 : vector<8x32xf32>
    %77 = arith.divf %75, %76 : vector<8x32xf32>
    %78 = vector.extract_strided_slice %60 {offsets = [0, 64], sizes = [8, 32], strides = [1, 1]} : vector<8x96xf32> to vector<8x32xf32>
    %79 = vector.extract_strided_slice %61 {offsets = [0, 64], sizes = [8, 32], strides = [1, 1]} : vector<8x96xf32> to vector<8x32xf32>
    %80 = vector.broadcast %11 : vector<1x32xf32> to vector<8x32xf32>
    %81 = arith.addf %79, %80 : vector<8x32xf32>
    %82 = arith.mulf %69, %81 : vector<8x32xf32>
    %83 = arith.addf %78, %82 : vector<8x32xf32>
    %84 = math.tanh %83 : vector<8x32xf32>
    %cst_30 = arith.constant 1.000000e+00 : f32
    %85 = vector.broadcast %cst_30 : f32 to vector<8x32xf32>
    %86 = arith.subf %85, %77 : vector<8x32xf32>
    %87 = arith.mulf %86, %84 : vector<8x32xf32>
    %88 = arith.mulf %77, %57 : vector<8x32xf32>
    %89 = arith.addf %87, %88 : vector<8x32xf32>
    %90 = vector.broadcast %c1_i32 : i32 to vector<8x1xi32>
    %91 = arith.cmpi slt, %90, %0 : vector<8x1xi32>
    %92 = vector.shape_cast %91 : vector<8x1xi1> to vector<8x1xi1>
    %93 = vector.broadcast %92 : vector<8x1xi1> to vector<8x32xi1>
    %94 = vector.broadcast %cst_16 : f32 to vector<8x32xf32>
    %95 = arith.select %93, %89, %94 : vector<8x32xi1>, vector<8x32xf32>
    %96 = arith.index_cast %c1_i32 : i32 to index
    %c0_31 = arith.constant 0 : index
    %c0_32 = arith.constant 0 : index
    %97 = vector.load %arg16[%96, %c0_31, %c0_32] : memref<8x8x32xf32, #tpu.memory_space<vmem>>, vector<1x8x32xf32>
    %98 = vector.shape_cast %97 : vector<1x8x32xf32> to vector<8x32xf32>
    %99 = vector.shape_cast %95 : vector<8x32xf32> to vector<1x8x32xf32>
    tpu.vector_store %arg16[%96, %c0_31, %c0_32], %99 {strides = array<i32>} : memref<8x8x32xf32, #tpu.memory_space<vmem>>, vector<1x8x32xf32>,
    %100 = vector.shape_cast %91 : vector<8x1xi1> to vector<8x1xi1>
    %101 = vector.broadcast %100 : vector<8x1xi1> to vector<8x32xi1>
    %102 = arith.select %101, %89, %57 : vector<8x32xi1>, vector<8x32xf32>
    %c2_i32 = arith.constant 2 : i32
    %103 = arith.index_cast %c2_i32 : i32 to index
    %c0_33 = arith.constant 0 : index
    %c0_34 = arith.constant 0 : index
    %104 = vector.load %arg15[%103, %c0_33, %c0_34] : memref<8x8x96xf32, #tpu.memory_space<vmem>>, vector<1x8x96xf32>
    %105 = vector.shape_cast %104 : vector<1x8x96xf32> to vector<8x96xf32>
    %cst_35 = arith.constant dense<0.000000e+00> : vector<8x96xf32>
    %106 = tpu.matmul %102, %10, %cst_35 {dimension_numbers = #tpu.dot_dimension_numbers<[1], [0], [0], [1], [0, 0, 1, 1], [], []>, precision = #tpu.contract_precision<fp32>} : vector<8x32xf32>, vector<32x96xf32>, vector<8x96xf32> -> vector<8x96xf32>
    %107 = vector.extract_strided_slice %105 {offsets = [0, 0], sizes = [8, 32], strides = [1, 1]} : vector<8x96xf32> to vector<8x32xf32>
    %108 = vector.extract_strided_slice %106 {offsets = [0, 0], sizes = [8, 32], strides = [1, 1]} : vector<8x96xf32> to vector<8x32xf32>
    %109 = arith.addf %107, %108 : vector<8x32xf32>
    %110 = arith.negf %109 : vector<8x32xf32>
    %111 = math.exp %110 : vector<8x32xf32>
    %cst_36 = arith.constant 1.000000e+00 : f32
    %112 = vector.broadcast %cst_36 : f32 to vector<8x32xf32>
    %113 = arith.addf %112, %111 : vector<8x32xf32>
    %114 = arith.divf %112, %113 : vector<8x32xf32>
    %115 = vector.extract_strided_slice %105 {offsets = [0, 32], sizes = [8, 32], strides = [1, 1]} : vector<8x96xf32> to vector<8x32xf32>
    %116 = vector.extract_strided_slice %106 {offsets = [0, 32], sizes = [8, 32], strides = [1, 1]} : vector<8x96xf32> to vector<8x32xf32>
    %117 = arith.addf %115, %116 : vector<8x32xf32>
    %118 = arith.negf %117 : vector<8x32xf32>
    %119 = math.exp %118 : vector<8x32xf32>
    %cst_37 = arith.constant 1.000000e+00 : f32
    %120 = vector.broadcast %cst_37 : f32 to vector<8x32xf32>
    %121 = arith.addf %120, %119 : vector<8x32xf32>
    %122 = arith.divf %120, %121 : vector<8x32xf32>
    %123 = vector.extract_strided_slice %105 {offsets = [0, 64], sizes = [8, 32], strides = [1, 1]} : vector<8x96xf32> to vector<8x32xf32>
    %124 = vector.extract_strided_slice %106 {offsets = [0, 64], sizes = [8, 32], strides = [1, 1]} : vector<8x96xf32> to vector<8x32xf32>
    %125 = vector.broadcast %11 : vector<1x32xf32> to vector<8x32xf32>
    %126 = arith.addf %124, %125 : vector<8x32xf32>
    %127 = arith.mulf %114, %126 : vector<8x32xf32>
    %128 = arith.addf %123, %127 : vector<8x32xf32>
    %129 = math.tanh %128 : vector<8x32xf32>
    %cst_38 = arith.constant 1.000000e+00 : f32
    %130 = vector.broadcast %cst_38 : f32 to vector<8x32xf32>
    %131 = arith.subf %130, %122 : vector<8x32xf32>
    %132 = arith.mulf %131, %129 : vector<8x32xf32>
    %133 = arith.mulf %122, %102 : vector<8x32xf32>
    %134 = arith.addf %132, %133 : vector<8x32xf32>
    %135 = vector.broadcast %c2_i32 : i32 to vector<8x1xi32>
    %136 = arith.cmpi slt, %135, %0 : vector<8x1xi32>
    %137 = vector.shape_cast %136 : vector<8x1xi1> to vector<8x1xi1>
    %138 = vector.broadcast %137 : vector<8x1xi1> to vector<8x32xi1>
    %139 = vector.broadcast %cst_16 : f32 to vector<8x32xf32>
    %140 = arith.select %138, %134, %139 : vector<8x32xi1>, vector<8x32xf32>
    %141 = arith.index_cast %c2_i32 : i32 to index
    %c0_39 = arith.constant 0 : index
    %c0_40 = arith.constant 0 : index
    %142 = vector.load %arg16[%141, %c0_39, %c0_40] : memref<8x8x32xf32, #tpu.memory_space<vmem>>, vector<1x8x32xf32>
    %143 = vector.shape_cast %142 : vector<1x8x32xf32> to vector<8x32xf32>
    %144 = vector.shape_cast %140 : vector<8x32xf32> to vector<1x8x32xf32>
    tpu.vector_store %arg16[%141, %c0_39, %c0_40], %144 {strides = array<i32>} : memref<8x8x32xf32, #tpu.memory_space<vmem>>, vector<1x8x32xf32>,
    %145 = vector.shape_cast %136 : vector<8x1xi1> to vector<8x1xi1>
    %146 = vector.broadcast %145 : vector<8x1xi1> to vector<8x32xi1>
    %147 = arith.select %146, %134, %102 : vector<8x32xi1>, vector<8x32xf32>
    %c3_i32 = arith.constant 3 : i32
    %148 = arith.index_cast %c3_i32 : i32 to index
    %c0_41 = arith.constant 0 : index
    %c0_42 = arith.constant 0 : index
    %149 = vector.load %arg15[%148, %c0_41, %c0_42] : memref<8x8x96xf32, #tpu.memory_space<vmem>>, vector<1x8x96xf32>
    %150 = vector.shape_cast %149 : vector<1x8x96xf32> to vector<8x96xf32>
    %cst_43 = arith.constant dense<0.000000e+00> : vector<8x96xf32>
    %151 = tpu.matmul %147, %10, %cst_43 {dimension_numbers = #tpu.dot_dimension_numbers<[1], [0], [0], [1], [0, 0, 1, 1], [], []>, precision = #tpu.contract_precision<fp32>} : vector<8x32xf32>, vector<32x96xf32>, vector<8x96xf32> -> vector<8x96xf32>
    %152 = vector.extract_strided_slice %150 {offsets = [0, 0], sizes = [8, 32], strides = [1, 1]} : vector<8x96xf32> to vector<8x32xf32>
    %153 = vector.extract_strided_slice %151 {offsets = [0, 0], sizes = [8, 32], strides = [1, 1]} : vector<8x96xf32> to vector<8x32xf32>
    %154 = arith.addf %152, %153 : vector<8x32xf32>
    %155 = arith.negf %154 : vector<8x32xf32>
    %156 = math.exp %155 : vector<8x32xf32>
    %cst_44 = arith.constant 1.000000e+00 : f32
    %157 = vector.broadcast %cst_44 : f32 to vector<8x32xf32>
    %158 = arith.addf %157, %156 : vector<8x32xf32>
    %159 = arith.divf %157, %158 : vector<8x32xf32>
    %160 = vector.extract_strided_slice %150 {offsets = [0, 32], sizes = [8, 32], strides = [1, 1]} : vector<8x96xf32> to vector<8x32xf32>
    %161 = vector.extract_strided_slice %151 {offsets = [0, 32], sizes = [8, 32], strides = [1, 1]} : vector<8x96xf32> to vector<8x32xf32>
    %162 = arith.addf %160, %161 : vector<8x32xf32>
    %163 = arith.negf %162 : vector<8x32xf32>
    %164 = math.exp %163 : vector<8x32xf32>
    %cst_45 = arith.constant 1.000000e+00 : f32
    %165 = vector.broadcast %cst_45 : f32 to vector<8x32xf32>
    %166 = arith.addf %165, %164 : vector<8x32xf32>
    %167 = arith.divf %165, %166 : vector<8x32xf32>
    %168 = vector.extract_strided_slice %150 {offsets = [0, 64], sizes = [8, 32], strides = [1, 1]} : vector<8x96xf32> to vector<8x32xf32>
    %169 = vector.extract_strided_slice %151 {offsets = [0, 64], sizes = [8, 32], strides = [1, 1]} : vector<8x96xf32> to vector<8x32xf32>
    %170 = vector.broadcast %11 : vector<1x32xf32> to vector<8x32xf32>
    %171 = arith.addf %169, %170 : vector<8x32xf32>
    %172 = arith.mulf %159, %171 : vector<8x32xf32>
    %173 = arith.addf %168, %172 : vector<8x32xf32>
    %174 = math.tanh %173 : vector<8x32xf32>
    %cst_46 = arith.constant 1.000000e+00 : f32
    %175 = vector.broadcast %cst_46 : f32 to vector<8x32xf32>
    %176 = arith.subf %175, %167 : vector<8x32xf32>
    %177 = arith.mulf %176, %174 : vector<8x32xf32>
    %178 = arith.mulf %167, %147 : vector<8x32xf32>
    %179 = arith.addf %177, %178 : vector<8x32xf32>
    %180 = vector.broadcast %c3_i32 : i32 to vector<8x1xi32>
    %181 = arith.cmpi slt, %180, %0 : vector<8x1xi32>
    %182 = vector.shape_cast %181 : vector<8x1xi1> to vector<8x1xi1>
    %183 = vector.broadcast %182 : vector<8x1xi1> to vector<8x32xi1>
    %184 = vector.broadcast %cst_16 : f32 to vector<8x32xf32>
    %185 = arith.select %183, %179, %184 : vector<8x32xi1>, vector<8x32xf32>
    %186 = arith.index_cast %c3_i32 : i32 to index
    %c0_47 = arith.constant 0 : index
    %c0_48 = arith.constant 0 : index
    %187 = vector.load %arg16[%186, %c0_47, %c0_48] : memref<8x8x32xf32, #tpu.memory_space<vmem>>, vector<1x8x32xf32>
    %188 = vector.shape_cast %187 : vector<1x8x32xf32> to vector<8x32xf32>
    %189 = vector.shape_cast %185 : vector<8x32xf32> to vector<1x8x32xf32>
    tpu.vector_store %arg16[%186, %c0_47, %c0_48], %189 {strides = array<i32>} : memref<8x8x32xf32, #tpu.memory_space<vmem>>, vector<1x8x32xf32>,
    %190 = vector.shape_cast %181 : vector<8x1xi1> to vector<8x1xi1>
    %191 = vector.broadcast %190 : vector<8x1xi1> to vector<8x32xi1>
    %192 = arith.select %191, %179, %147 : vector<8x32xi1>, vector<8x32xf32>
    %c4_i32 = arith.constant 4 : i32
    %193 = arith.index_cast %c4_i32 : i32 to index
    %c0_49 = arith.constant 0 : index
    %c0_50 = arith.constant 0 : index
    %194 = vector.load %arg15[%193, %c0_49, %c0_50] : memref<8x8x96xf32, #tpu.memory_space<vmem>>, vector<1x8x96xf32>
    %195 = vector.shape_cast %194 : vector<1x8x96xf32> to vector<8x96xf32>
    %cst_51 = arith.constant dense<0.000000e+00> : vector<8x96xf32>
    %196 = tpu.matmul %192, %10, %cst_51 {dimension_numbers = #tpu.dot_dimension_numbers<[1], [0], [0], [1], [0, 0, 1, 1], [], []>, precision = #tpu.contract_precision<fp32>} : vector<8x32xf32>, vector<32x96xf32>, vector<8x96xf32> -> vector<8x96xf32>
    %197 = vector.extract_strided_slice %195 {offsets = [0, 0], sizes = [8, 32], strides = [1, 1]} : vector<8x96xf32> to vector<8x32xf32>
    %198 = vector.extract_strided_slice %196 {offsets = [0, 0], sizes = [8, 32], strides = [1, 1]} : vector<8x96xf32> to vector<8x32xf32>
    %199 = arith.addf %197, %198 : vector<8x32xf32>
    %200 = arith.negf %199 : vector<8x32xf32>
    %201 = math.exp %200 : vector<8x32xf32>
    %cst_52 = arith.constant 1.000000e+00 : f32
    %202 = vector.broadcast %cst_52 : f32 to vector<8x32xf32>
    %203 = arith.addf %202, %201 : vector<8x32xf32>
    %204 = arith.divf %202, %203 : vector<8x32xf32>
    %205 = vector.extract_strided_slice %195 {offsets = [0, 32], sizes = [8, 32], strides = [1, 1]} : vector<8x96xf32> to vector<8x32xf32>
    %206 = vector.extract_strided_slice %196 {offsets = [0, 32], sizes = [8, 32], strides = [1, 1]} : vector<8x96xf32> to vector<8x32xf32>
    %207 = arith.addf %205, %206 : vector<8x32xf32>
    %208 = arith.negf %207 : vector<8x32xf32>
    %209 = math.exp %208 : vector<8x32xf32>
    %cst_53 = arith.constant 1.000000e+00 : f32
    %210 = vector.broadcast %cst_53 : f32 to vector<8x32xf32>
    %211 = arith.addf %210, %209 : vector<8x32xf32>
    %212 = arith.divf %210, %211 : vector<8x32xf32>
    %213 = vector.extract_strided_slice %195 {offsets = [0, 64], sizes = [8, 32], strides = [1, 1]} : vector<8x96xf32> to vector<8x32xf32>
    %214 = vector.extract_strided_slice %196 {offsets = [0, 64], sizes = [8, 32], strides = [1, 1]} : vector<8x96xf32> to vector<8x32xf32>
    %215 = vector.broadcast %11 : vector<1x32xf32> to vector<8x32xf32>
    %216 = arith.addf %214, %215 : vector<8x32xf32>
    %217 = arith.mulf %204, %216 : vector<8x32xf32>
    %218 = arith.addf %213, %217 : vector<8x32xf32>
    %219 = math.tanh %218 : vector<8x32xf32>
    %cst_54 = arith.constant 1.000000e+00 : f32
    %220 = vector.broadcast %cst_54 : f32 to vector<8x32xf32>
    %221 = arith.subf %220, %212 : vector<8x32xf32>
    %222 = arith.mulf %221, %219 : vector<8x32xf32>
    %223 = arith.mulf %212, %192 : vector<8x32xf32>
    %224 = arith.addf %222, %223 : vector<8x32xf32>
    %225 = vector.broadcast %c4_i32 : i32 to vector<8x1xi32>
    %226 = arith.cmpi slt, %225, %0 : vector<8x1xi32>
    %227 = vector.shape_cast %226 : vector<8x1xi1> to vector<8x1xi1>
    %228 = vector.broadcast %227 : vector<8x1xi1> to vector<8x32xi1>
    %229 = vector.broadcast %cst_16 : f32 to vector<8x32xf32>
    %230 = arith.select %228, %224, %229 : vector<8x32xi1>, vector<8x32xf32>
    %231 = arith.index_cast %c4_i32 : i32 to index
    %c0_55 = arith.constant 0 : index
    %c0_56 = arith.constant 0 : index
    %232 = vector.load %arg16[%231, %c0_55, %c0_56] : memref<8x8x32xf32, #tpu.memory_space<vmem>>, vector<1x8x32xf32>
    %233 = vector.shape_cast %232 : vector<1x8x32xf32> to vector<8x32xf32>
    %234 = vector.shape_cast %230 : vector<8x32xf32> to vector<1x8x32xf32>
    tpu.vector_store %arg16[%231, %c0_55, %c0_56], %234 {strides = array<i32>} : memref<8x8x32xf32, #tpu.memory_space<vmem>>, vector<1x8x32xf32>,
    %235 = vector.shape_cast %226 : vector<8x1xi1> to vector<8x1xi1>
    %236 = vector.broadcast %235 : vector<8x1xi1> to vector<8x32xi1>
    %237 = arith.select %236, %224, %192 : vector<8x32xi1>, vector<8x32xf32>
    %c5_i32 = arith.constant 5 : i32
    %238 = arith.index_cast %c5_i32 : i32 to index
    %c0_57 = arith.constant 0 : index
    %c0_58 = arith.constant 0 : index
    %239 = vector.load %arg15[%238, %c0_57, %c0_58] : memref<8x8x96xf32, #tpu.memory_space<vmem>>, vector<1x8x96xf32>
    %240 = vector.shape_cast %239 : vector<1x8x96xf32> to vector<8x96xf32>
    %cst_59 = arith.constant dense<0.000000e+00> : vector<8x96xf32>
    %241 = tpu.matmul %237, %10, %cst_59 {dimension_numbers = #tpu.dot_dimension_numbers<[1], [0], [0], [1], [0, 0, 1, 1], [], []>, precision = #tpu.contract_precision<fp32>} : vector<8x32xf32>, vector<32x96xf32>, vector<8x96xf32> -> vector<8x96xf32>
    %242 = vector.extract_strided_slice %240 {offsets = [0, 0], sizes = [8, 32], strides = [1, 1]} : vector<8x96xf32> to vector<8x32xf32>
    %243 = vector.extract_strided_slice %241 {offsets = [0, 0], sizes = [8, 32], strides = [1, 1]} : vector<8x96xf32> to vector<8x32xf32>
    %244 = arith.addf %242, %243 : vector<8x32xf32>
    %245 = arith.negf %244 : vector<8x32xf32>
    %246 = math.exp %245 : vector<8x32xf32>
    %cst_60 = arith.constant 1.000000e+00 : f32
    %247 = vector.broadcast %cst_60 : f32 to vector<8x32xf32>
    %248 = arith.addf %247, %246 : vector<8x32xf32>
    %249 = arith.divf %247, %248 : vector<8x32xf32>
    %250 = vector.extract_strided_slice %240 {offsets = [0, 32], sizes = [8, 32], strides = [1, 1]} : vector<8x96xf32> to vector<8x32xf32>
    %251 = vector.extract_strided_slice %241 {offsets = [0, 32], sizes = [8, 32], strides = [1, 1]} : vector<8x96xf32> to vector<8x32xf32>
    %252 = arith.addf %250, %251 : vector<8x32xf32>
    %253 = arith.negf %252 : vector<8x32xf32>
    %254 = math.exp %253 : vector<8x32xf32>
    %cst_61 = arith.constant 1.000000e+00 : f32
    %255 = vector.broadcast %cst_61 : f32 to vector<8x32xf32>
    %256 = arith.addf %255, %254 : vector<8x32xf32>
    %257 = arith.divf %255, %256 : vector<8x32xf32>
    %258 = vector.extract_strided_slice %240 {offsets = [0, 64], sizes = [8, 32], strides = [1, 1]} : vector<8x96xf32> to vector<8x32xf32>
    %259 = vector.extract_strided_slice %241 {offsets = [0, 64], sizes = [8, 32], strides = [1, 1]} : vector<8x96xf32> to vector<8x32xf32>
    %260 = vector.broadcast %11 : vector<1x32xf32> to vector<8x32xf32>
    %261 = arith.addf %259, %260 : vector<8x32xf32>
    %262 = arith.mulf %249, %261 : vector<8x32xf32>
    %263 = arith.addf %258, %262 : vector<8x32xf32>
    %264 = math.tanh %263 : vector<8x32xf32>
    %cst_62 = arith.constant 1.000000e+00 : f32
    %265 = vector.broadcast %cst_62 : f32 to vector<8x32xf32>
    %266 = arith.subf %265, %257 : vector<8x32xf32>
    %267 = arith.mulf %266, %264 : vector<8x32xf32>
    %268 = arith.mulf %257, %237 : vector<8x32xf32>
    %269 = arith.addf %267, %268 : vector<8x32xf32>
    %270 = vector.broadcast %c5_i32 : i32 to vector<8x1xi32>
    %271 = arith.cmpi slt, %270, %0 : vector<8x1xi32>
    %272 = vector.shape_cast %271 : vector<8x1xi1> to vector<8x1xi1>
    %273 = vector.broadcast %272 : vector<8x1xi1> to vector<8x32xi1>
    %274 = vector.broadcast %cst_16 : f32 to vector<8x32xf32>
    %275 = arith.select %273, %269, %274 : vector<8x32xi1>, vector<8x32xf32>
    %276 = arith.index_cast %c5_i32 : i32 to index
    %c0_63 = arith.constant 0 : index
    %c0_64 = arith.constant 0 : index
    %277 = vector.load %arg16[%276, %c0_63, %c0_64] : memref<8x8x32xf32, #tpu.memory_space<vmem>>, vector<1x8x32xf32>
    %278 = vector.shape_cast %277 : vector<1x8x32xf32> to vector<8x32xf32>
    %279 = vector.shape_cast %275 : vector<8x32xf32> to vector<1x8x32xf32>
    tpu.vector_store %arg16[%276, %c0_63, %c0_64], %279 {strides = array<i32>} : memref<8x8x32xf32, #tpu.memory_space<vmem>>, vector<1x8x32xf32>,
    %280 = vector.shape_cast %271 : vector<8x1xi1> to vector<8x1xi1>
    %281 = vector.broadcast %280 : vector<8x1xi1> to vector<8x32xi1>
    %282 = arith.select %281, %269, %237 : vector<8x32xi1>, vector<8x32xf32>
    %c6_i32 = arith.constant 6 : i32
    %283 = arith.index_cast %c6_i32 : i32 to index
    %c0_65 = arith.constant 0 : index
    %c0_66 = arith.constant 0 : index
    %284 = vector.load %arg15[%283, %c0_65, %c0_66] : memref<8x8x96xf32, #tpu.memory_space<vmem>>, vector<1x8x96xf32>
    %285 = vector.shape_cast %284 : vector<1x8x96xf32> to vector<8x96xf32>
    %cst_67 = arith.constant dense<0.000000e+00> : vector<8x96xf32>
    %286 = tpu.matmul %282, %10, %cst_67 {dimension_numbers = #tpu.dot_dimension_numbers<[1], [0], [0], [1], [0, 0, 1, 1], [], []>, precision = #tpu.contract_precision<fp32>} : vector<8x32xf32>, vector<32x96xf32>, vector<8x96xf32> -> vector<8x96xf32>
    %287 = vector.extract_strided_slice %285 {offsets = [0, 0], sizes = [8, 32], strides = [1, 1]} : vector<8x96xf32> to vector<8x32xf32>
    %288 = vector.extract_strided_slice %286 {offsets = [0, 0], sizes = [8, 32], strides = [1, 1]} : vector<8x96xf32> to vector<8x32xf32>
    %289 = arith.addf %287, %288 : vector<8x32xf32>
    %290 = arith.negf %289 : vector<8x32xf32>
    %291 = math.exp %290 : vector<8x32xf32>
    %cst_68 = arith.constant 1.000000e+00 : f32
    %292 = vector.broadcast %cst_68 : f32 to vector<8x32xf32>
    %293 = arith.addf %292, %291 : vector<8x32xf32>
    %294 = arith.divf %292, %293 : vector<8x32xf32>
    %295 = vector.extract_strided_slice %285 {offsets = [0, 32], sizes = [8, 32], strides = [1, 1]} : vector<8x96xf32> to vector<8x32xf32>
    %296 = vector.extract_strided_slice %286 {offsets = [0, 32], sizes = [8, 32], strides = [1, 1]} : vector<8x96xf32> to vector<8x32xf32>
    %297 = arith.addf %295, %296 : vector<8x32xf32>
    %298 = arith.negf %297 : vector<8x32xf32>
    %299 = math.exp %298 : vector<8x32xf32>
    %cst_69 = arith.constant 1.000000e+00 : f32
    %300 = vector.broadcast %cst_69 : f32 to vector<8x32xf32>
    %301 = arith.addf %300, %299 : vector<8x32xf32>
    %302 = arith.divf %300, %301 : vector<8x32xf32>
    %303 = vector.extract_strided_slice %285 {offsets = [0, 64], sizes = [8, 32], strides = [1, 1]} : vector<8x96xf32> to vector<8x32xf32>
    %304 = vector.extract_strided_slice %286 {offsets = [0, 64], sizes = [8, 32], strides = [1, 1]} : vector<8x96xf32> to vector<8x32xf32>
    %305 = vector.broadcast %11 : vector<1x32xf32> to vector<8x32xf32>
    %306 = arith.addf %304, %305 : vector<8x32xf32>
    %307 = arith.mulf %294, %306 : vector<8x32xf32>
    %308 = arith.addf %303, %307 : vector<8x32xf32>
    %309 = math.tanh %308 : vector<8x32xf32>
    %cst_70 = arith.constant 1.000000e+00 : f32
    %310 = vector.broadcast %cst_70 : f32 to vector<8x32xf32>
    %311 = arith.subf %310, %302 : vector<8x32xf32>
    %312 = arith.mulf %311, %309 : vector<8x32xf32>
    %313 = arith.mulf %302, %282 : vector<8x32xf32>
    %314 = arith.addf %312, %313 : vector<8x32xf32>
    %315 = vector.broadcast %c6_i32 : i32 to vector<8x1xi32>
    %316 = arith.cmpi slt, %315, %0 : vector<8x1xi32>
    %317 = vector.shape_cast %316 : vector<8x1xi1> to vector<8x1xi1>
    %318 = vector.broadcast %317 : vector<8x1xi1> to vector<8x32xi1>
    %319 = vector.broadcast %cst_16 : f32 to vector<8x32xf32>
    %320 = arith.select %318, %314, %319 : vector<8x32xi1>, vector<8x32xf32>
    %321 = arith.index_cast %c6_i32 : i32 to index
    %c0_71 = arith.constant 0 : index
    %c0_72 = arith.constant 0 : index
    %322 = vector.load %arg16[%321, %c0_71, %c0_72] : memref<8x8x32xf32, #tpu.memory_space<vmem>>, vector<1x8x32xf32>
    %323 = vector.shape_cast %322 : vector<1x8x32xf32> to vector<8x32xf32>
    %324 = vector.shape_cast %320 : vector<8x32xf32> to vector<1x8x32xf32>
    tpu.vector_store %arg16[%321, %c0_71, %c0_72], %324 {strides = array<i32>} : memref<8x8x32xf32, #tpu.memory_space<vmem>>, vector<1x8x32xf32>,
    %325 = vector.shape_cast %316 : vector<8x1xi1> to vector<8x1xi1>
    %326 = vector.broadcast %325 : vector<8x1xi1> to vector<8x32xi1>
    %327 = arith.select %326, %314, %282 : vector<8x32xi1>, vector<8x32xf32>
    %c7_i32 = arith.constant 7 : i32
    %328 = arith.index_cast %c7_i32 : i32 to index
    %c0_73 = arith.constant 0 : index
    %c0_74 = arith.constant 0 : index
    %329 = vector.load %arg15[%328, %c0_73, %c0_74] : memref<8x8x96xf32, #tpu.memory_space<vmem>>, vector<1x8x96xf32>
    %330 = vector.shape_cast %329 : vector<1x8x96xf32> to vector<8x96xf32>
    %cst_75 = arith.constant dense<0.000000e+00> : vector<8x96xf32>
    %331 = tpu.matmul %327, %10, %cst_75 {dimension_numbers = #tpu.dot_dimension_numbers<[1], [0], [0], [1], [0, 0, 1, 1], [], []>, precision = #tpu.contract_precision<fp32>} : vector<8x32xf32>, vector<32x96xf32>, vector<8x96xf32> -> vector<8x96xf32>
    %332 = vector.extract_strided_slice %330 {offsets = [0, 0], sizes = [8, 32], strides = [1, 1]} : vector<8x96xf32> to vector<8x32xf32>
    %333 = vector.extract_strided_slice %331 {offsets = [0, 0], sizes = [8, 32], strides = [1, 1]} : vector<8x96xf32> to vector<8x32xf32>
    %334 = arith.addf %332, %333 : vector<8x32xf32>
    %335 = arith.negf %334 : vector<8x32xf32>
    %336 = math.exp %335 : vector<8x32xf32>
    %cst_76 = arith.constant 1.000000e+00 : f32
    %337 = vector.broadcast %cst_76 : f32 to vector<8x32xf32>
    %338 = arith.addf %337, %336 : vector<8x32xf32>
    %339 = arith.divf %337, %338 : vector<8x32xf32>
    %340 = vector.extract_strided_slice %330 {offsets = [0, 32], sizes = [8, 32], strides = [1, 1]} : vector<8x96xf32> to vector<8x32xf32>
    %341 = vector.extract_strided_slice %331 {offsets = [0, 32], sizes = [8, 32], strides = [1, 1]} : vector<8x96xf32> to vector<8x32xf32>
    %342 = arith.addf %340, %341 : vector<8x32xf32>
    %343 = arith.negf %342 : vector<8x32xf32>
    %344 = math.exp %343 : vector<8x32xf32>
    %cst_77 = arith.constant 1.000000e+00 : f32
    %345 = vector.broadcast %cst_77 : f32 to vector<8x32xf32>
    %346 = arith.addf %345, %344 : vector<8x32xf32>
    %347 = arith.divf %345, %346 : vector<8x32xf32>
    %348 = vector.extract_strided_slice %330 {offsets = [0, 64], sizes = [8, 32], strides = [1, 1]} : vector<8x96xf32> to vector<8x32xf32>
    %349 = vector.extract_strided_slice %331 {offsets = [0, 64], sizes = [8, 32], strides = [1, 1]} : vector<8x96xf32> to vector<8x32xf32>
    %350 = vector.broadcast %11 : vector<1x32xf32> to vector<8x32xf32>
    %351 = arith.addf %349, %350 : vector<8x32xf32>
    %352 = arith.mulf %339, %351 : vector<8x32xf32>
    %353 = arith.addf %348, %352 : vector<8x32xf32>
    %354 = math.tanh %353 : vector<8x32xf32>
    %cst_78 = arith.constant 1.000000e+00 : f32
    %355 = vector.broadcast %cst_78 : f32 to vector<8x32xf32>
    %356 = arith.subf %355, %347 : vector<8x32xf32>
    %357 = arith.mulf %356, %354 : vector<8x32xf32>
    %358 = arith.mulf %347, %327 : vector<8x32xf32>
    %359 = arith.addf %357, %358 : vector<8x32xf32>
    %360 = vector.broadcast %c7_i32 : i32 to vector<8x1xi32>
    %361 = arith.cmpi slt, %360, %0 : vector<8x1xi32>
    %362 = vector.shape_cast %361 : vector<8x1xi1> to vector<8x1xi1>
    %363 = vector.broadcast %362 : vector<8x1xi1> to vector<8x32xi1>
    %364 = vector.broadcast %cst_16 : f32 to vector<8x32xf32>
    %365 = arith.select %363, %359, %364 : vector<8x32xi1>, vector<8x32xf32>
    %366 = arith.index_cast %c7_i32 : i32 to index
    %c0_79 = arith.constant 0 : index
    %c0_80 = arith.constant 0 : index
    %367 = vector.load %arg16[%366, %c0_79, %c0_80] : memref<8x8x32xf32, #tpu.memory_space<vmem>>, vector<1x8x32xf32>
    %368 = vector.shape_cast %367 : vector<1x8x32xf32> to vector<8x32xf32>
    %369 = vector.shape_cast %365 : vector<8x32xf32> to vector<1x8x32xf32>
    tpu.vector_store %arg16[%366, %c0_79, %c0_80], %369 {strides = array<i32>} : memref<8x8x32xf32, #tpu.memory_space<vmem>>, vector<1x8x32xf32>,
    %370 = vector.shape_cast %361 : vector<8x1xi1> to vector<8x1xi1>
    %371 = vector.broadcast %370 : vector<8x1xi1> to vector<8x32xi1>
    %372 = arith.select %371, %359, %327 : vector<8x32xi1>, vector<8x32xf32>
    %c8_i32 = arith.constant 8 : i32
    %c0_81 = arith.constant 0 : index
    %c0_82 = arith.constant 0 : index
    %c0_83 = arith.constant 0 : index
    %373 = vector.load %arg16[%c0_81, %c0_82, %c0_83] : memref<8x8x32xf32, #tpu.memory_space<vmem>>, vector<8x8x32xf32>
    %374 = vector.shape_cast %373 : vector<8x8x32xf32> to vector<64x32xf32>
    %c0_84 = arith.constant 0 : index
    %c0_85 = arith.constant 0 : index
    %375 = vector.load %arg7[%c0_84, %c0_85] : memref<32x96xf32, #tpu.memory_space<vmem>>, vector<32x96xf32>
    %cst_86 = arith.constant dense<0.000000e+00> : vector<64x96xf32>
    %376 = tpu.matmul %374, %375, %cst_86 {dimension_numbers = #tpu.dot_dimension_numbers<[1], [0], [0], [1], [0, 0, 1, 1], [], []>, precision = #tpu.contract_precision<fp32>} : vector<64x32xf32>, vector<32x96xf32>, vector<64x96xf32> -> vector<64x96xf32>
    %c0_87 = arith.constant 0 : index
    %c0_88 = arith.constant 0 : index
    %377 = vector.load %arg9[%c0_87, %c0_88] : memref<1x96xf32, #tpu.memory_space<vmem>>, vector<1x96xf32>
    %378 = vector.broadcast %377 : vector<1x96xf32> to vector<64x96xf32>
    %379 = arith.addf %376, %378 : vector<64x96xf32>
    %380 = vector.shape_cast %379 : vector<64x96xf32> to vector<8x8x96xf32>
    %c0_89 = arith.constant 0 : index
    %c0_90 = arith.constant 0 : index
    %c0_91 = arith.constant 0 : index
    %381 = vector.load %arg15[%c0_89, %c0_90, %c0_91] : memref<8x8x96xf32, #tpu.memory_space<vmem>>, vector<8x8x96xf32>
    tpu.vector_store %arg15[%c0_89, %c0_90, %c0_91], %380 {strides = array<i32>} : memref<8x8x96xf32, #tpu.memory_space<vmem>>, vector<8x8x96xf32>,
    %c0_92 = arith.constant 0 : index
    %c0_93 = arith.constant 0 : index
    %382 = vector.load %arg8[%c0_92, %c0_93] : memref<32x96xf32, #tpu.memory_space<vmem>>, vector<32x96xf32>
    %c0_94 = arith.constant 0 : index
    %c0_95 = arith.constant 0 : index
    %383 = vector.load %arg10[%c0_94, %c0_95] : memref<1x32xf32, #tpu.memory_space<vmem>>, vector<1x32xf32>
    %cst_96 = arith.constant 0.000000e+00 : f32
    %384 = vector.broadcast %cst_96 : f32 to vector<8x32xf32>
    %cst_97 = arith.constant -1.000000e+00 : f32
    %c0_i32_98 = arith.constant 0 : i32
    %385 = arith.index_cast %c0_i32_98 : i32 to index
    %c0_99 = arith.constant 0 : index
    %c0_100 = arith.constant 0 : index
    %386 = vector.load %arg15[%385, %c0_99, %c0_100] : memref<8x8x96xf32, #tpu.memory_space<vmem>>, vector<1x8x96xf32>
    %387 = vector.shape_cast %386 : vector<1x8x96xf32> to vector<8x96xf32>
    %cst_101 = arith.constant dense<0.000000e+00> : vector<8x96xf32>
    %388 = tpu.matmul %384, %382, %cst_101 {dimension_numbers = #tpu.dot_dimension_numbers<[1], [0], [0], [1], [0, 0, 1, 1], [], []>, precision = #tpu.contract_precision<fp32>} : vector<8x32xf32>, vector<32x96xf32>, vector<8x96xf32> -> vector<8x96xf32>
    %389 = vector.extract_strided_slice %387 {offsets = [0, 0], sizes = [8, 32], strides = [1, 1]} : vector<8x96xf32> to vector<8x32xf32>
    %390 = vector.extract_strided_slice %388 {offsets = [0, 0], sizes = [8, 32], strides = [1, 1]} : vector<8x96xf32> to vector<8x32xf32>
    %391 = arith.addf %389, %390 : vector<8x32xf32>
    %392 = arith.negf %391 : vector<8x32xf32>
    %393 = math.exp %392 : vector<8x32xf32>
    %cst_102 = arith.constant 1.000000e+00 : f32
    %394 = vector.broadcast %cst_102 : f32 to vector<8x32xf32>
    %395 = arith.addf %394, %393 : vector<8x32xf32>
    %396 = arith.divf %394, %395 : vector<8x32xf32>
    %397 = vector.extract_strided_slice %387 {offsets = [0, 32], sizes = [8, 32], strides = [1, 1]} : vector<8x96xf32> to vector<8x32xf32>
    %398 = vector.extract_strided_slice %388 {offsets = [0, 32], sizes = [8, 32], strides = [1, 1]} : vector<8x96xf32> to vector<8x32xf32>
    %399 = arith.addf %397, %398 : vector<8x32xf32>
    %400 = arith.negf %399 : vector<8x32xf32>
    %401 = math.exp %400 : vector<8x32xf32>
    %cst_103 = arith.constant 1.000000e+00 : f32
    %402 = vector.broadcast %cst_103 : f32 to vector<8x32xf32>
    %403 = arith.addf %402, %401 : vector<8x32xf32>
    %404 = arith.divf %402, %403 : vector<8x32xf32>
    %405 = vector.extract_strided_slice %387 {offsets = [0, 64], sizes = [8, 32], strides = [1, 1]} : vector<8x96xf32> to vector<8x32xf32>
    %406 = vector.extract_strided_slice %388 {offsets = [0, 64], sizes = [8, 32], strides = [1, 1]} : vector<8x96xf32> to vector<8x32xf32>
    %407 = vector.broadcast %383 : vector<1x32xf32> to vector<8x32xf32>
    %408 = arith.addf %406, %407 : vector<8x32xf32>
    %409 = arith.mulf %396, %408 : vector<8x32xf32>
    %410 = arith.addf %405, %409 : vector<8x32xf32>
    %411 = math.tanh %410 : vector<8x32xf32>
    %cst_104 = arith.constant 1.000000e+00 : f32
    %412 = vector.broadcast %cst_104 : f32 to vector<8x32xf32>
    %413 = arith.subf %412, %404 : vector<8x32xf32>
    %414 = arith.mulf %413, %411 : vector<8x32xf32>
    %415 = arith.mulf %404, %384 : vector<8x32xf32>
    %416 = arith.addf %414, %415 : vector<8x32xf32>
    %417 = vector.broadcast %c0_i32_98 : i32 to vector<8x1xi32>
    %418 = arith.cmpi slt, %417, %0 : vector<8x1xi32>
    %419 = vector.shape_cast %418 : vector<8x1xi1> to vector<8x1xi1>
    %420 = vector.broadcast %419 : vector<8x1xi1> to vector<8x32xi1>
    %421 = vector.broadcast %cst_97 : f32 to vector<8x32xf32>
    %422 = arith.select %420, %416, %421 : vector<8x32xi1>, vector<8x32xf32>
    %423 = arith.index_cast %c0_i32_98 : i32 to index
    %c0_105 = arith.constant 0 : index
    %c0_106 = arith.constant 0 : index
    %424 = vector.load %arg16[%423, %c0_105, %c0_106] : memref<8x8x32xf32, #tpu.memory_space<vmem>>, vector<1x8x32xf32>
    %425 = vector.shape_cast %424 : vector<1x8x32xf32> to vector<8x32xf32>
    %426 = vector.shape_cast %422 : vector<8x32xf32> to vector<1x8x32xf32>
    tpu.vector_store %arg16[%423, %c0_105, %c0_106], %426 {strides = array<i32>} : memref<8x8x32xf32, #tpu.memory_space<vmem>>, vector<1x8x32xf32>,
    %427 = vector.shape_cast %418 : vector<8x1xi1> to vector<8x1xi1>
    %428 = vector.broadcast %427 : vector<8x1xi1> to vector<8x32xi1>
    %429 = arith.select %428, %416, %384 : vector<8x32xi1>, vector<8x32xf32>
    %c1_i32_107 = arith.constant 1 : i32
    %430 = arith.index_cast %c1_i32_107 : i32 to index
    %c0_108 = arith.constant 0 : index
    %c0_109 = arith.constant 0 : index
    %431 = vector.load %arg15[%430, %c0_108, %c0_109] : memref<8x8x96xf32, #tpu.memory_space<vmem>>, vector<1x8x96xf32>
    %432 = vector.shape_cast %431 : vector<1x8x96xf32> to vector<8x96xf32>
    %cst_110 = arith.constant dense<0.000000e+00> : vector<8x96xf32>
    %433 = tpu.matmul %429, %382, %cst_110 {dimension_numbers = #tpu.dot_dimension_numbers<[1], [0], [0], [1], [0, 0, 1, 1], [], []>, precision = #tpu.contract_precision<fp32>} : vector<8x32xf32>, vector<32x96xf32>, vector<8x96xf32> -> vector<8x96xf32>
    %434 = vector.extract_strided_slice %432 {offsets = [0, 0], sizes = [8, 32], strides = [1, 1]} : vector<8x96xf32> to vector<8x32xf32>
    %435 = vector.extract_strided_slice %433 {offsets = [0, 0], sizes = [8, 32], strides = [1, 1]} : vector<8x96xf32> to vector<8x32xf32>
    %436 = arith.addf %434, %435 : vector<8x32xf32>
    %437 = arith.negf %436 : vector<8x32xf32>
    %438 = math.exp %437 : vector<8x32xf32>
    %cst_111 = arith.constant 1.000000e+00 : f32
    %439 = vector.broadcast %cst_111 : f32 to vector<8x32xf32>
    %440 = arith.addf %439, %438 : vector<8x32xf32>
    %441 = arith.divf %439, %440 : vector<8x32xf32>
    %442 = vector.extract_strided_slice %432 {offsets = [0, 32], sizes = [8, 32], strides = [1, 1]} : vector<8x96xf32> to vector<8x32xf32>
    %443 = vector.extract_strided_slice %433 {offsets = [0, 32], sizes = [8, 32], strides = [1, 1]} : vector<8x96xf32> to vector<8x32xf32>
    %444 = arith.addf %442, %443 : vector<8x32xf32>
    %445 = arith.negf %444 : vector<8x32xf32>
    %446 = math.exp %445 : vector<8x32xf32>
    %cst_112 = arith.constant 1.000000e+00 : f32
    %447 = vector.broadcast %cst_112 : f32 to vector<8x32xf32>
    %448 = arith.addf %447, %446 : vector<8x32xf32>
    %449 = arith.divf %447, %448 : vector<8x32xf32>
    %450 = vector.extract_strided_slice %432 {offsets = [0, 64], sizes = [8, 32], strides = [1, 1]} : vector<8x96xf32> to vector<8x32xf32>
    %451 = vector.extract_strided_slice %433 {offsets = [0, 64], sizes = [8, 32], strides = [1, 1]} : vector<8x96xf32> to vector<8x32xf32>
    %452 = vector.broadcast %383 : vector<1x32xf32> to vector<8x32xf32>
    %453 = arith.addf %451, %452 : vector<8x32xf32>
    %454 = arith.mulf %441, %453 : vector<8x32xf32>
    %455 = arith.addf %450, %454 : vector<8x32xf32>
    %456 = math.tanh %455 : vector<8x32xf32>
    %cst_113 = arith.constant 1.000000e+00 : f32
    %457 = vector.broadcast %cst_113 : f32 to vector<8x32xf32>
    %458 = arith.subf %457, %449 : vector<8x32xf32>
    %459 = arith.mulf %458, %456 : vector<8x32xf32>
    %460 = arith.mulf %449, %429 : vector<8x32xf32>
    %461 = arith.addf %459, %460 : vector<8x32xf32>
    %462 = vector.broadcast %c1_i32_107 : i32 to vector<8x1xi32>
    %463 = arith.cmpi slt, %462, %0 : vector<8x1xi32>
    %464 = vector.shape_cast %463 : vector<8x1xi1> to vector<8x1xi1>
    %465 = vector.broadcast %464 : vector<8x1xi1> to vector<8x32xi1>
    %466 = vector.broadcast %cst_97 : f32 to vector<8x32xf32>
    %467 = arith.select %465, %461, %466 : vector<8x32xi1>, vector<8x32xf32>
    %468 = arith.index_cast %c1_i32_107 : i32 to index
    %c0_114 = arith.constant 0 : index
    %c0_115 = arith.constant 0 : index
    %469 = vector.load %arg16[%468, %c0_114, %c0_115] : memref<8x8x32xf32, #tpu.memory_space<vmem>>, vector<1x8x32xf32>
    %470 = vector.shape_cast %469 : vector<1x8x32xf32> to vector<8x32xf32>
    %471 = vector.shape_cast %467 : vector<8x32xf32> to vector<1x8x32xf32>
    tpu.vector_store %arg16[%468, %c0_114, %c0_115], %471 {strides = array<i32>} : memref<8x8x32xf32, #tpu.memory_space<vmem>>, vector<1x8x32xf32>,
    %472 = vector.shape_cast %463 : vector<8x1xi1> to vector<8x1xi1>
    %473 = vector.broadcast %472 : vector<8x1xi1> to vector<8x32xi1>
    %474 = arith.select %473, %461, %429 : vector<8x32xi1>, vector<8x32xf32>
    %c2_i32_116 = arith.constant 2 : i32
    %475 = arith.index_cast %c2_i32_116 : i32 to index
    %c0_117 = arith.constant 0 : index
    %c0_118 = arith.constant 0 : index
    %476 = vector.load %arg15[%475, %c0_117, %c0_118] : memref<8x8x96xf32, #tpu.memory_space<vmem>>, vector<1x8x96xf32>
    %477 = vector.shape_cast %476 : vector<1x8x96xf32> to vector<8x96xf32>
    %cst_119 = arith.constant dense<0.000000e+00> : vector<8x96xf32>
    %478 = tpu.matmul %474, %382, %cst_119 {dimension_numbers = #tpu.dot_dimension_numbers<[1], [0], [0], [1], [0, 0, 1, 1], [], []>, precision = #tpu.contract_precision<fp32>} : vector<8x32xf32>, vector<32x96xf32>, vector<8x96xf32> -> vector<8x96xf32>
    %479 = vector.extract_strided_slice %477 {offsets = [0, 0], sizes = [8, 32], strides = [1, 1]} : vector<8x96xf32> to vector<8x32xf32>
    %480 = vector.extract_strided_slice %478 {offsets = [0, 0], sizes = [8, 32], strides = [1, 1]} : vector<8x96xf32> to vector<8x32xf32>
    %481 = arith.addf %479, %480 : vector<8x32xf32>
    %482 = arith.negf %481 : vector<8x32xf32>
    %483 = math.exp %482 : vector<8x32xf32>
    %cst_120 = arith.constant 1.000000e+00 : f32
    %484 = vector.broadcast %cst_120 : f32 to vector<8x32xf32>
    %485 = arith.addf %484, %483 : vector<8x32xf32>
    %486 = arith.divf %484, %485 : vector<8x32xf32>
    %487 = vector.extract_strided_slice %477 {offsets = [0, 32], sizes = [8, 32], strides = [1, 1]} : vector<8x96xf32> to vector<8x32xf32>
    %488 = vector.extract_strided_slice %478 {offsets = [0, 32], sizes = [8, 32], strides = [1, 1]} : vector<8x96xf32> to vector<8x32xf32>
    %489 = arith.addf %487, %488 : vector<8x32xf32>
    %490 = arith.negf %489 : vector<8x32xf32>
    %491 = math.exp %490 : vector<8x32xf32>
    %cst_121 = arith.constant 1.000000e+00 : f32
    %492 = vector.broadcast %cst_121 : f32 to vector<8x32xf32>
    %493 = arith.addf %492, %491 : vector<8x32xf32>
    %494 = arith.divf %492, %493 : vector<8x32xf32>
    %495 = vector.extract_strided_slice %477 {offsets = [0, 64], sizes = [8, 32], strides = [1, 1]} : vector<8x96xf32> to vector<8x32xf32>
    %496 = vector.extract_strided_slice %478 {offsets = [0, 64], sizes = [8, 32], strides = [1, 1]} : vector<8x96xf32> to vector<8x32xf32>
    %497 = vector.broadcast %383 : vector<1x32xf32> to vector<8x32xf32>
    %498 = arith.addf %496, %497 : vector<8x32xf32>
    %499 = arith.mulf %486, %498 : vector<8x32xf32>
    %500 = arith.addf %495, %499 : vector<8x32xf32>
    %501 = math.tanh %500 : vector<8x32xf32>
    %cst_122 = arith.constant 1.000000e+00 : f32
    %502 = vector.broadcast %cst_122 : f32 to vector<8x32xf32>
    %503 = arith.subf %502, %494 : vector<8x32xf32>
    %504 = arith.mulf %503, %501 : vector<8x32xf32>
    %505 = arith.mulf %494, %474 : vector<8x32xf32>
    %506 = arith.addf %504, %505 : vector<8x32xf32>
    %507 = vector.broadcast %c2_i32_116 : i32 to vector<8x1xi32>
    %508 = arith.cmpi slt, %507, %0 : vector<8x1xi32>
    %509 = vector.shape_cast %508 : vector<8x1xi1> to vector<8x1xi1>
    %510 = vector.broadcast %509 : vector<8x1xi1> to vector<8x32xi1>
    %511 = vector.broadcast %cst_97 : f32 to vector<8x32xf32>
    %512 = arith.select %510, %506, %511 : vector<8x32xi1>, vector<8x32xf32>
    %513 = arith.index_cast %c2_i32_116 : i32 to index
    %c0_123 = arith.constant 0 : index
    %c0_124 = arith.constant 0 : index
    %514 = vector.load %arg16[%513, %c0_123, %c0_124] : memref<8x8x32xf32, #tpu.memory_space<vmem>>, vector<1x8x32xf32>
    %515 = vector.shape_cast %514 : vector<1x8x32xf32> to vector<8x32xf32>
    %516 = vector.shape_cast %512 : vector<8x32xf32> to vector<1x8x32xf32>
    tpu.vector_store %arg16[%513, %c0_123, %c0_124], %516 {strides = array<i32>} : memref<8x8x32xf32, #tpu.memory_space<vmem>>, vector<1x8x32xf32>,
    %517 = vector.shape_cast %508 : vector<8x1xi1> to vector<8x1xi1>
    %518 = vector.broadcast %517 : vector<8x1xi1> to vector<8x32xi1>
    %519 = arith.select %518, %506, %474 : vector<8x32xi1>, vector<8x32xf32>
    %c3_i32_125 = arith.constant 3 : i32
    %520 = arith.index_cast %c3_i32_125 : i32 to index
    %c0_126 = arith.constant 0 : index
    %c0_127 = arith.constant 0 : index
    %521 = vector.load %arg15[%520, %c0_126, %c0_127] : memref<8x8x96xf32, #tpu.memory_space<vmem>>, vector<1x8x96xf32>
    %522 = vector.shape_cast %521 : vector<1x8x96xf32> to vector<8x96xf32>
    %cst_128 = arith.constant dense<0.000000e+00> : vector<8x96xf32>
    %523 = tpu.matmul %519, %382, %cst_128 {dimension_numbers = #tpu.dot_dimension_numbers<[1], [0], [0], [1], [0, 0, 1, 1], [], []>, precision = #tpu.contract_precision<fp32>} : vector<8x32xf32>, vector<32x96xf32>, vector<8x96xf32> -> vector<8x96xf32>
    %524 = vector.extract_strided_slice %522 {offsets = [0, 0], sizes = [8, 32], strides = [1, 1]} : vector<8x96xf32> to vector<8x32xf32>
    %525 = vector.extract_strided_slice %523 {offsets = [0, 0], sizes = [8, 32], strides = [1, 1]} : vector<8x96xf32> to vector<8x32xf32>
    %526 = arith.addf %524, %525 : vector<8x32xf32>
    %527 = arith.negf %526 : vector<8x32xf32>
    %528 = math.exp %527 : vector<8x32xf32>
    %cst_129 = arith.constant 1.000000e+00 : f32
    %529 = vector.broadcast %cst_129 : f32 to vector<8x32xf32>
    %530 = arith.addf %529, %528 : vector<8x32xf32>
    %531 = arith.divf %529, %530 : vector<8x32xf32>
    %532 = vector.extract_strided_slice %522 {offsets = [0, 32], sizes = [8, 32], strides = [1, 1]} : vector<8x96xf32> to vector<8x32xf32>
    %533 = vector.extract_strided_slice %523 {offsets = [0, 32], sizes = [8, 32], strides = [1, 1]} : vector<8x96xf32> to vector<8x32xf32>
    %534 = arith.addf %532, %533 : vector<8x32xf32>
    %535 = arith.negf %534 : vector<8x32xf32>
    %536 = math.exp %535 : vector<8x32xf32>
    %cst_130 = arith.constant 1.000000e+00 : f32
    %537 = vector.broadcast %cst_130 : f32 to vector<8x32xf32>
    %538 = arith.addf %537, %536 : vector<8x32xf32>
    %539 = arith.divf %537, %538 : vector<8x32xf32>
    %540 = vector.extract_strided_slice %522 {offsets = [0, 64], sizes = [8, 32], strides = [1, 1]} : vector<8x96xf32> to vector<8x32xf32>
    %541 = vector.extract_strided_slice %523 {offsets = [0, 64], sizes = [8, 32], strides = [1, 1]} : vector<8x96xf32> to vector<8x32xf32>
    %542 = vector.broadcast %383 : vector<1x32xf32> to vector<8x32xf32>
    %543 = arith.addf %541, %542 : vector<8x32xf32>
    %544 = arith.mulf %531, %543 : vector<8x32xf32>
    %545 = arith.addf %540, %544 : vector<8x32xf32>
    %546 = math.tanh %545 : vector<8x32xf32>
    %cst_131 = arith.constant 1.000000e+00 : f32
    %547 = vector.broadcast %cst_131 : f32 to vector<8x32xf32>
    %548 = arith.subf %547, %539 : vector<8x32xf32>
    %549 = arith.mulf %548, %546 : vector<8x32xf32>
    %550 = arith.mulf %539, %519 : vector<8x32xf32>
    %551 = arith.addf %549, %550 : vector<8x32xf32>
    %552 = vector.broadcast %c3_i32_125 : i32 to vector<8x1xi32>
    %553 = arith.cmpi slt, %552, %0 : vector<8x1xi32>
    %554 = vector.shape_cast %553 : vector<8x1xi1> to vector<8x1xi1>
    %555 = vector.broadcast %554 : vector<8x1xi1> to vector<8x32xi1>
    %556 = vector.broadcast %cst_97 : f32 to vector<8x32xf32>
    %557 = arith.select %555, %551, %556 : vector<8x32xi1>, vector<8x32xf32>
    %558 = arith.index_cast %c3_i32_125 : i32 to index
    %c0_132 = arith.constant 0 : index
    %c0_133 = arith.constant 0 : index
    %559 = vector.load %arg16[%558, %c0_132, %c0_133] : memref<8x8x32xf32, #tpu.memory_space<vmem>>, vector<1x8x32xf32>
    %560 = vector.shape_cast %559 : vector<1x8x32xf32> to vector<8x32xf32>
    %561 = vector.shape_cast %557 : vector<8x32xf32> to vector<1x8x32xf32>
    tpu.vector_store %arg16[%558, %c0_132, %c0_133], %561 {strides = array<i32>} : memref<8x8x32xf32, #tpu.memory_space<vmem>>, vector<1x8x32xf32>,
    %562 = vector.shape_cast %553 : vector<8x1xi1> to vector<8x1xi1>
    %563 = vector.broadcast %562 : vector<8x1xi1> to vector<8x32xi1>
    %564 = arith.select %563, %551, %519 : vector<8x32xi1>, vector<8x32xf32>
    %c4_i32_134 = arith.constant 4 : i32
    %565 = arith.index_cast %c4_i32_134 : i32 to index
    %c0_135 = arith.constant 0 : index
    %c0_136 = arith.constant 0 : index
    %566 = vector.load %arg15[%565, %c0_135, %c0_136] : memref<8x8x96xf32, #tpu.memory_space<vmem>>, vector<1x8x96xf32>
    %567 = vector.shape_cast %566 : vector<1x8x96xf32> to vector<8x96xf32>
    %cst_137 = arith.constant dense<0.000000e+00> : vector<8x96xf32>
    %568 = tpu.matmul %564, %382, %cst_137 {dimension_numbers = #tpu.dot_dimension_numbers<[1], [0], [0], [1], [0, 0, 1, 1], [], []>, precision = #tpu.contract_precision<fp32>} : vector<8x32xf32>, vector<32x96xf32>, vector<8x96xf32> -> vector<8x96xf32>
    %569 = vector.extract_strided_slice %567 {offsets = [0, 0], sizes = [8, 32], strides = [1, 1]} : vector<8x96xf32> to vector<8x32xf32>
    %570 = vector.extract_strided_slice %568 {offsets = [0, 0], sizes = [8, 32], strides = [1, 1]} : vector<8x96xf32> to vector<8x32xf32>
    %571 = arith.addf %569, %570 : vector<8x32xf32>
    %572 = arith.negf %571 : vector<8x32xf32>
    %573 = math.exp %572 : vector<8x32xf32>
    %cst_138 = arith.constant 1.000000e+00 : f32
    %574 = vector.broadcast %cst_138 : f32 to vector<8x32xf32>
    %575 = arith.addf %574, %573 : vector<8x32xf32>
    %576 = arith.divf %574, %575 : vector<8x32xf32>
    %577 = vector.extract_strided_slice %567 {offsets = [0, 32], sizes = [8, 32], strides = [1, 1]} : vector<8x96xf32> to vector<8x32xf32>
    %578 = vector.extract_strided_slice %568 {offsets = [0, 32], sizes = [8, 32], strides = [1, 1]} : vector<8x96xf32> to vector<8x32xf32>
    %579 = arith.addf %577, %578 : vector<8x32xf32>
    %580 = arith.negf %579 : vector<8x32xf32>
    %581 = math.exp %580 : vector<8x32xf32>
    %cst_139 = arith.constant 1.000000e+00 : f32
    %582 = vector.broadcast %cst_139 : f32 to vector<8x32xf32>
    %583 = arith.addf %582, %581 : vector<8x32xf32>
    %584 = arith.divf %582, %583 : vector<8x32xf32>
    %585 = vector.extract_strided_slice %567 {offsets = [0, 64], sizes = [8, 32], strides = [1, 1]} : vector<8x96xf32> to vector<8x32xf32>
    %586 = vector.extract_strided_slice %568 {offsets = [0, 64], sizes = [8, 32], strides = [1, 1]} : vector<8x96xf32> to vector<8x32xf32>
    %587 = vector.broadcast %383 : vector<1x32xf32> to vector<8x32xf32>
    %588 = arith.addf %586, %587 : vector<8x32xf32>
    %589 = arith.mulf %576, %588 : vector<8x32xf32>
    %590 = arith.addf %585, %589 : vector<8x32xf32>
    %591 = math.tanh %590 : vector<8x32xf32>
    %cst_140 = arith.constant 1.000000e+00 : f32
    %592 = vector.broadcast %cst_140 : f32 to vector<8x32xf32>
    %593 = arith.subf %592, %584 : vector<8x32xf32>
    %594 = arith.mulf %593, %591 : vector<8x32xf32>
    %595 = arith.mulf %584, %564 : vector<8x32xf32>
    %596 = arith.addf %594, %595 : vector<8x32xf32>
    %597 = vector.broadcast %c4_i32_134 : i32 to vector<8x1xi32>
    %598 = arith.cmpi slt, %597, %0 : vector<8x1xi32>
    %599 = vector.shape_cast %598 : vector<8x1xi1> to vector<8x1xi1>
    %600 = vector.broadcast %599 : vector<8x1xi1> to vector<8x32xi1>
    %601 = vector.broadcast %cst_97 : f32 to vector<8x32xf32>
    %602 = arith.select %600, %596, %601 : vector<8x32xi1>, vector<8x32xf32>
    %603 = arith.index_cast %c4_i32_134 : i32 to index
    %c0_141 = arith.constant 0 : index
    %c0_142 = arith.constant 0 : index
    %604 = vector.load %arg16[%603, %c0_141, %c0_142] : memref<8x8x32xf32, #tpu.memory_space<vmem>>, vector<1x8x32xf32>
    %605 = vector.shape_cast %604 : vector<1x8x32xf32> to vector<8x32xf32>
    %606 = vector.shape_cast %602 : vector<8x32xf32> to vector<1x8x32xf32>
    tpu.vector_store %arg16[%603, %c0_141, %c0_142], %606 {strides = array<i32>} : memref<8x8x32xf32, #tpu.memory_space<vmem>>, vector<1x8x32xf32>,
    %607 = vector.shape_cast %598 : vector<8x1xi1> to vector<8x1xi1>
    %608 = vector.broadcast %607 : vector<8x1xi1> to vector<8x32xi1>
    %609 = arith.select %608, %596, %564 : vector<8x32xi1>, vector<8x32xf32>
    %c5_i32_143 = arith.constant 5 : i32
    %610 = arith.index_cast %c5_i32_143 : i32 to index
    %c0_144 = arith.constant 0 : index
    %c0_145 = arith.constant 0 : index
    %611 = vector.load %arg15[%610, %c0_144, %c0_145] : memref<8x8x96xf32, #tpu.memory_space<vmem>>, vector<1x8x96xf32>
    %612 = vector.shape_cast %611 : vector<1x8x96xf32> to vector<8x96xf32>
    %cst_146 = arith.constant dense<0.000000e+00> : vector<8x96xf32>
    %613 = tpu.matmul %609, %382, %cst_146 {dimension_numbers = #tpu.dot_dimension_numbers<[1], [0], [0], [1], [0, 0, 1, 1], [], []>, precision = #tpu.contract_precision<fp32>} : vector<8x32xf32>, vector<32x96xf32>, vector<8x96xf32> -> vector<8x96xf32>
    %614 = vector.extract_strided_slice %612 {offsets = [0, 0], sizes = [8, 32], strides = [1, 1]} : vector<8x96xf32> to vector<8x32xf32>
    %615 = vector.extract_strided_slice %613 {offsets = [0, 0], sizes = [8, 32], strides = [1, 1]} : vector<8x96xf32> to vector<8x32xf32>
    %616 = arith.addf %614, %615 : vector<8x32xf32>
    %617 = arith.negf %616 : vector<8x32xf32>
    %618 = math.exp %617 : vector<8x32xf32>
    %cst_147 = arith.constant 1.000000e+00 : f32
    %619 = vector.broadcast %cst_147 : f32 to vector<8x32xf32>
    %620 = arith.addf %619, %618 : vector<8x32xf32>
    %621 = arith.divf %619, %620 : vector<8x32xf32>
    %622 = vector.extract_strided_slice %612 {offsets = [0, 32], sizes = [8, 32], strides = [1, 1]} : vector<8x96xf32> to vector<8x32xf32>
    %623 = vector.extract_strided_slice %613 {offsets = [0, 32], sizes = [8, 32], strides = [1, 1]} : vector<8x96xf32> to vector<8x32xf32>
    %624 = arith.addf %622, %623 : vector<8x32xf32>
    %625 = arith.negf %624 : vector<8x32xf32>
    %626 = math.exp %625 : vector<8x32xf32>
    %cst_148 = arith.constant 1.000000e+00 : f32
    %627 = vector.broadcast %cst_148 : f32 to vector<8x32xf32>
    %628 = arith.addf %627, %626 : vector<8x32xf32>
    %629 = arith.divf %627, %628 : vector<8x32xf32>
    %630 = vector.extract_strided_slice %612 {offsets = [0, 64], sizes = [8, 32], strides = [1, 1]} : vector<8x96xf32> to vector<8x32xf32>
    %631 = vector.extract_strided_slice %613 {offsets = [0, 64], sizes = [8, 32], strides = [1, 1]} : vector<8x96xf32> to vector<8x32xf32>
    %632 = vector.broadcast %383 : vector<1x32xf32> to vector<8x32xf32>
    %633 = arith.addf %631, %632 : vector<8x32xf32>
    %634 = arith.mulf %621, %633 : vector<8x32xf32>
    %635 = arith.addf %630, %634 : vector<8x32xf32>
    %636 = math.tanh %635 : vector<8x32xf32>
    %cst_149 = arith.constant 1.000000e+00 : f32
    %637 = vector.broadcast %cst_149 : f32 to vector<8x32xf32>
    %638 = arith.subf %637, %629 : vector<8x32xf32>
    %639 = arith.mulf %638, %636 : vector<8x32xf32>
    %640 = arith.mulf %629, %609 : vector<8x32xf32>
    %641 = arith.addf %639, %640 : vector<8x32xf32>
    %642 = vector.broadcast %c5_i32_143 : i32 to vector<8x1xi32>
    %643 = arith.cmpi slt, %642, %0 : vector<8x1xi32>
    %644 = vector.shape_cast %643 : vector<8x1xi1> to vector<8x1xi1>
    %645 = vector.broadcast %644 : vector<8x1xi1> to vector<8x32xi1>
    %646 = vector.broadcast %cst_97 : f32 to vector<8x32xf32>
    %647 = arith.select %645, %641, %646 : vector<8x32xi1>, vector<8x32xf32>
    %648 = arith.index_cast %c5_i32_143 : i32 to index
    %c0_150 = arith.constant 0 : index
    %c0_151 = arith.constant 0 : index
    %649 = vector.load %arg16[%648, %c0_150, %c0_151] : memref<8x8x32xf32, #tpu.memory_space<vmem>>, vector<1x8x32xf32>
    %650 = vector.shape_cast %649 : vector<1x8x32xf32> to vector<8x32xf32>
    %651 = vector.shape_cast %647 : vector<8x32xf32> to vector<1x8x32xf32>
    tpu.vector_store %arg16[%648, %c0_150, %c0_151], %651 {strides = array<i32>} : memref<8x8x32xf32, #tpu.memory_space<vmem>>, vector<1x8x32xf32>,
    %652 = vector.shape_cast %643 : vector<8x1xi1> to vector<8x1xi1>
    %653 = vector.broadcast %652 : vector<8x1xi1> to vector<8x32xi1>
    %654 = arith.select %653, %641, %609 : vector<8x32xi1>, vector<8x32xf32>
    %c6_i32_152 = arith.constant 6 : i32
    %655 = arith.index_cast %c6_i32_152 : i32 to index
    %c0_153 = arith.constant 0 : index
    %c0_154 = arith.constant 0 : index
    %656 = vector.load %arg15[%655, %c0_153, %c0_154] : memref<8x8x96xf32, #tpu.memory_space<vmem>>, vector<1x8x96xf32>
    %657 = vector.shape_cast %656 : vector<1x8x96xf32> to vector<8x96xf32>
    %cst_155 = arith.constant dense<0.000000e+00> : vector<8x96xf32>
    %658 = tpu.matmul %654, %382, %cst_155 {dimension_numbers = #tpu.dot_dimension_numbers<[1], [0], [0], [1], [0, 0, 1, 1], [], []>, precision = #tpu.contract_precision<fp32>} : vector<8x32xf32>, vector<32x96xf32>, vector<8x96xf32> -> vector<8x96xf32>
    %659 = vector.extract_strided_slice %657 {offsets = [0, 0], sizes = [8, 32], strides = [1, 1]} : vector<8x96xf32> to vector<8x32xf32>
    %660 = vector.extract_strided_slice %658 {offsets = [0, 0], sizes = [8, 32], strides = [1, 1]} : vector<8x96xf32> to vector<8x32xf32>
    %661 = arith.addf %659, %660 : vector<8x32xf32>
    %662 = arith.negf %661 : vector<8x32xf32>
    %663 = math.exp %662 : vector<8x32xf32>
    %cst_156 = arith.constant 1.000000e+00 : f32
    %664 = vector.broadcast %cst_156 : f32 to vector<8x32xf32>
    %665 = arith.addf %664, %663 : vector<8x32xf32>
    %666 = arith.divf %664, %665 : vector<8x32xf32>
    %667 = vector.extract_strided_slice %657 {offsets = [0, 32], sizes = [8, 32], strides = [1, 1]} : vector<8x96xf32> to vector<8x32xf32>
    %668 = vector.extract_strided_slice %658 {offsets = [0, 32], sizes = [8, 32], strides = [1, 1]} : vector<8x96xf32> to vector<8x32xf32>
    %669 = arith.addf %667, %668 : vector<8x32xf32>
    %670 = arith.negf %669 : vector<8x32xf32>
    %671 = math.exp %670 : vector<8x32xf32>
    %cst_157 = arith.constant 1.000000e+00 : f32
    %672 = vector.broadcast %cst_157 : f32 to vector<8x32xf32>
    %673 = arith.addf %672, %671 : vector<8x32xf32>
    %674 = arith.divf %672, %673 : vector<8x32xf32>
    %675 = vector.extract_strided_slice %657 {offsets = [0, 64], sizes = [8, 32], strides = [1, 1]} : vector<8x96xf32> to vector<8x32xf32>
    %676 = vector.extract_strided_slice %658 {offsets = [0, 64], sizes = [8, 32], strides = [1, 1]} : vector<8x96xf32> to vector<8x32xf32>
    %677 = vector.broadcast %383 : vector<1x32xf32> to vector<8x32xf32>
    %678 = arith.addf %676, %677 : vector<8x32xf32>
    %679 = arith.mulf %666, %678 : vector<8x32xf32>
    %680 = arith.addf %675, %679 : vector<8x32xf32>
    %681 = math.tanh %680 : vector<8x32xf32>
    %cst_158 = arith.constant 1.000000e+00 : f32
    %682 = vector.broadcast %cst_158 : f32 to vector<8x32xf32>
    %683 = arith.subf %682, %674 : vector<8x32xf32>
    %684 = arith.mulf %683, %681 : vector<8x32xf32>
    %685 = arith.mulf %674, %654 : vector<8x32xf32>
    %686 = arith.addf %684, %685 : vector<8x32xf32>
    %687 = vector.broadcast %c6_i32_152 : i32 to vector<8x1xi32>
    %688 = arith.cmpi slt, %687, %0 : vector<8x1xi32>
    %689 = vector.shape_cast %688 : vector<8x1xi1> to vector<8x1xi1>
    %690 = vector.broadcast %689 : vector<8x1xi1> to vector<8x32xi1>
    %691 = vector.broadcast %cst_97 : f32 to vector<8x32xf32>
    %692 = arith.select %690, %686, %691 : vector<8x32xi1>, vector<8x32xf32>
    %693 = arith.index_cast %c6_i32_152 : i32 to index
    %c0_159 = arith.constant 0 : index
    %c0_160 = arith.constant 0 : index
    %694 = vector.load %arg16[%693, %c0_159, %c0_160] : memref<8x8x32xf32, #tpu.memory_space<vmem>>, vector<1x8x32xf32>
    %695 = vector.shape_cast %694 : vector<1x8x32xf32> to vector<8x32xf32>
    %696 = vector.shape_cast %692 : vector<8x32xf32> to vector<1x8x32xf32>
    tpu.vector_store %arg16[%693, %c0_159, %c0_160], %696 {strides = array<i32>} : memref<8x8x32xf32, #tpu.memory_space<vmem>>, vector<1x8x32xf32>,
    %697 = vector.shape_cast %688 : vector<8x1xi1> to vector<8x1xi1>
    %698 = vector.broadcast %697 : vector<8x1xi1> to vector<8x32xi1>
    %699 = arith.select %698, %686, %654 : vector<8x32xi1>, vector<8x32xf32>
    %c7_i32_161 = arith.constant 7 : i32
    %700 = arith.index_cast %c7_i32_161 : i32 to index
    %c0_162 = arith.constant 0 : index
    %c0_163 = arith.constant 0 : index
    %701 = vector.load %arg15[%700, %c0_162, %c0_163] : memref<8x8x96xf32, #tpu.memory_space<vmem>>, vector<1x8x96xf32>
    %702 = vector.shape_cast %701 : vector<1x8x96xf32> to vector<8x96xf32>
    %cst_164 = arith.constant dense<0.000000e+00> : vector<8x96xf32>
    %703 = tpu.matmul %699, %382, %cst_164 {dimension_numbers = #tpu.dot_dimension_numbers<[1], [0], [0], [1], [0, 0, 1, 1], [], []>, precision = #tpu.contract_precision<fp32>} : vector<8x32xf32>, vector<32x96xf32>, vector<8x96xf32> -> vector<8x96xf32>
    %704 = vector.extract_strided_slice %702 {offsets = [0, 0], sizes = [8, 32], strides = [1, 1]} : vector<8x96xf32> to vector<8x32xf32>
    %705 = vector.extract_strided_slice %703 {offsets = [0, 0], sizes = [8, 32], strides = [1, 1]} : vector<8x96xf32> to vector<8x32xf32>
    %706 = arith.addf %704, %705 : vector<8x32xf32>
    %707 = arith.negf %706 : vector<8x32xf32>
    %708 = math.exp %707 : vector<8x32xf32>
    %cst_165 = arith.constant 1.000000e+00 : f32
    %709 = vector.broadcast %cst_165 : f32 to vector<8x32xf32>
    %710 = arith.addf %709, %708 : vector<8x32xf32>
    %711 = arith.divf %709, %710 : vector<8x32xf32>
    %712 = vector.extract_strided_slice %702 {offsets = [0, 32], sizes = [8, 32], strides = [1, 1]} : vector<8x96xf32> to vector<8x32xf32>
    %713 = vector.extract_strided_slice %703 {offsets = [0, 32], sizes = [8, 32], strides = [1, 1]} : vector<8x96xf32> to vector<8x32xf32>
    %714 = arith.addf %712, %713 : vector<8x32xf32>
    %715 = arith.negf %714 : vector<8x32xf32>
    %716 = math.exp %715 : vector<8x32xf32>
    %cst_166 = arith.constant 1.000000e+00 : f32
    %717 = vector.broadcast %cst_166 : f32 to vector<8x32xf32>
    %718 = arith.addf %717, %716 : vector<8x32xf32>
    %719 = arith.divf %717, %718 : vector<8x32xf32>
    %720 = vector.extract_strided_slice %702 {offsets = [0, 64], sizes = [8, 32], strides = [1, 1]} : vector<8x96xf32> to vector<8x32xf32>
    %721 = vector.extract_strided_slice %703 {offsets = [0, 64], sizes = [8, 32], strides = [1, 1]} : vector<8x96xf32> to vector<8x32xf32>
    %722 = vector.broadcast %383 : vector<1x32xf32> to vector<8x32xf32>
    %723 = arith.addf %721, %722 : vector<8x32xf32>
    %724 = arith.mulf %711, %723 : vector<8x32xf32>
    %725 = arith.addf %720, %724 : vector<8x32xf32>
    %726 = math.tanh %725 : vector<8x32xf32>
    %cst_167 = arith.constant 1.000000e+00 : f32
    %727 = vector.broadcast %cst_167 : f32 to vector<8x32xf32>
    %728 = arith.subf %727, %719 : vector<8x32xf32>
    %729 = arith.mulf %728, %726 : vector<8x32xf32>
    %730 = arith.mulf %719, %699 : vector<8x32xf32>
    %731 = arith.addf %729, %730 : vector<8x32xf32>
    %732 = vector.broadcast %c7_i32_161 : i32 to vector<8x1xi32>
    %733 = arith.cmpi slt, %732, %0 : vector<8x1xi32>
    %734 = vector.shape_cast %733 : vector<8x1xi1> to vector<8x1xi1>
    %735 = vector.broadcast %734 : vector<8x1xi1> to vector<8x32xi1>
    %736 = vector.broadcast %cst_97 : f32 to vector<8x32xf32>
    %737 = arith.select %735, %731, %736 : vector<8x32xi1>, vector<8x32xf32>
    %738 = arith.index_cast %c7_i32_161 : i32 to index
    %c0_168 = arith.constant 0 : index
    %c0_169 = arith.constant 0 : index
    %739 = vector.load %arg16[%738, %c0_168, %c0_169] : memref<8x8x32xf32, #tpu.memory_space<vmem>>, vector<1x8x32xf32>
    %740 = vector.shape_cast %739 : vector<1x8x32xf32> to vector<8x32xf32>
    %741 = vector.shape_cast %737 : vector<8x32xf32> to vector<1x8x32xf32>
    tpu.vector_store %arg16[%738, %c0_168, %c0_169], %741 {strides = array<i32>} : memref<8x8x32xf32, #tpu.memory_space<vmem>>, vector<1x8x32xf32>,
    %742 = vector.shape_cast %733 : vector<8x1xi1> to vector<8x1xi1>
    %743 = vector.broadcast %742 : vector<8x1xi1> to vector<8x32xi1>
    %744 = arith.select %743, %731, %699 : vector<8x32xi1>, vector<8x32xf32>
    %c8_i32_170 = arith.constant 8 : i32
    %c0_171 = arith.constant 0 : index
    %c0_172 = arith.constant 0 : index
    %c0_173 = arith.constant 0 : index
    %745 = vector.load %arg16[%c0_171, %c0_172, %c0_173] : memref<8x8x32xf32, #tpu.memory_space<vmem>>, vector<8x8x32xf32>
    %c0_174 = arith.constant 0 : index
    %c0_175 = arith.constant 0 : index
    %746 = vector.load %arg11[%c0_174, %c0_175] : memref<1x32xf32, #tpu.memory_space<vmem>>, vector<1x32xf32>
    %747 = vector.shape_cast %746 : vector<1x32xf32> to vector<1x1x32xf32>
    %748 = vector.broadcast %747 : vector<1x1x32xf32> to vector<8x8x32xf32>
    %749 = arith.mulf %745, %748 : vector<8x8x32xf32>
    %cst_176 = arith.constant dense<0.000000e+00> : vector<8x8xf32>
    %750 = vector.multi_reduction <add>, %749, %cst_176 [2] : vector<8x8x32xf32> to vector<8x8xf32>
    %c0_177 = arith.constant 0 : index
    %751 = memref.load %arg12[%c0_177] : memref<1xf32, #tpu.memory_space<smem>>
    %752 = vector.broadcast %751 : f32 to vector<8x8xf32>
    %753 = arith.addf %750, %752 : vector<8x8xf32>
    %c0_178 = arith.constant 0 : index
    %c0_179 = arith.constant 0 : index
    %c0_180 = arith.constant 0 : index
    %754 = vector.load %arg13[%c0_178, %c0_179, %c0_180] : memref<1x8x8xf32, #tpu.memory_space<vmem>>, vector<1x8x8xf32>
    %755 = vector.shape_cast %754 : vector<1x8x8xf32> to vector<8x8xf32>
    %756 = vector.shape_cast %753 : vector<8x8xf32> to vector<1x8x8xf32>
    tpu.vector_store %arg13[%c0_178, %c0_179, %c0_180], %756 {strides = array<i32>} : memref<1x8x8xf32, #tpu.memory_space<vmem>>, vector<1x8x8xf32>,
    %757 = arith.negf %753 : vector<8x8xf32>
    %758 = math.exp %757 : vector<8x8xf32>
    %cst_181 = arith.constant 1.000000e+00 : f32
    %759 = vector.broadcast %cst_181 : f32 to vector<8x8xf32>
    %760 = arith.addf %759, %758 : vector<8x8xf32>
    %761 = arith.divf %759, %760 : vector<8x8xf32>
    %c0_182 = arith.constant 0 : index
    %c0_183 = arith.constant 0 : index
    %c0_184 = arith.constant 0 : index
    %762 = vector.load %arg14[%c0_182, %c0_183, %c0_184] : memref<1x8x8xf32, #tpu.memory_space<vmem>>, vector<1x8x8xf32>
    %763 = vector.shape_cast %762 : vector<1x8x8xf32> to vector<8x8xf32>
    %764 = vector.shape_cast %761 : vector<8x8xf32> to vector<1x8x8xf32>
    tpu.vector_store %arg14[%c0_182, %c0_183, %c0_184], %764 {strides = array<i32>} : memref<1x8x8xf32, #tpu.memory_space<vmem>>, vector<1x8x8xf32>,
    return
  }
  func.func @transform_0(%arg0: i32) -> (i32, i32, i32) {
    %c0_i32 = arith.constant 0 : i32
    %c0_i32_0 = arith.constant 0 : i32
    %c0_i32_1 = arith.constant 0 : i32
    return %c0_i32, %arg0, %c0_i32_0 : i32, i32, i32
  }
  func.func @transform_1(%arg0: i32) -> (i32, i32) {
    %c0_i32 = arith.constant 0 : i32
    %c0_i32_0 = arith.constant 0 : i32
    return %arg0, %c0_i32 : i32, i32
  }
  func.func @transform_2(%arg0: i32) -> (i32, i32) {
    %c0_i32 = arith.constant 0 : i32
    %c0_i32_0 = arith.constant 0 : i32
    %c0_i32_1 = arith.constant 0 : i32
    return %c0_i32, %c0_i32_0 : i32, i32
  }
  func.func @transform_3(%arg0: i32) -> (i32, i32) {
    %c0_i32 = arith.constant 0 : i32
    %c0_i32_0 = arith.constant 0 : i32
    %c0_i32_1 = arith.constant 0 : i32
    return %c0_i32, %c0_i32_0 : i32, i32
  }
  func.func @transform_4(%arg0: i32) -> (i32, i32) {
    %c0_i32 = arith.constant 0 : i32
    %c0_i32_0 = arith.constant 0 : i32
    %c0_i32_1 = arith.constant 0 : i32
    return %c0_i32, %c0_i32_0 : i32, i32
  }
  func.func @transform_5(%arg0: i32) -> (i32, i32) {
    %c0_i32 = arith.constant 0 : i32
    %c0_i32_0 = arith.constant 0 : i32
    %c0_i32_1 = arith.constant 0 : i32
    return %c0_i32, %c0_i32_0 : i32, i32
  }
  func.func @transform_6(%arg0: i32) -> (i32, i32) {
    %c0_i32 = arith.constant 0 : i32
    %c0_i32_0 = arith.constant 0 : i32
    %c0_i32_1 = arith.constant 0 : i32
    return %c0_i32, %c0_i32_0 : i32, i32
  }
  func.func @transform_7(%arg0: i32) -> (i32, i32) {
    %c0_i32 = arith.constant 0 : i32
    %c0_i32_0 = arith.constant 0 : i32
    %c0_i32_1 = arith.constant 0 : i32
    return %c0_i32, %c0_i32_0 : i32, i32
  }
  func.func @transform_8(%arg0: i32) -> (i32, i32) {
    %c0_i32 = arith.constant 0 : i32
    %c0_i32_0 = arith.constant 0 : i32
    %c0_i32_1 = arith.constant 0 : i32
    return %c0_i32, %c0_i32_0 : i32, i32
  }
  func.func @transform_9(%arg0: i32) -> (i32, i32) {
    %c0_i32 = arith.constant 0 : i32
    %c0_i32_0 = arith.constant 0 : i32
    %c0_i32_1 = arith.constant 0 : i32
    return %c0_i32, %c0_i32_0 : i32, i32
  }
  func.func @transform_10(%arg0: i32) -> (i32, i32) {
    %c0_i32 = arith.constant 0 : i32
    %c0_i32_0 = arith.constant 0 : i32
    %c0_i32_1 = arith.constant 0 : i32
    return %c0_i32, %c0_i32_0 : i32, i32
  }
  func.func @transform_11(%arg0: i32) -> i32 {
    %c0_i32 = arith.constant 0 : i32
    %c0_i32_0 = arith.constant 0 : i32
    return %c0_i32 : i32
  }
  func.func @transform_12(%arg0: i32) -> (i32, i32, i32) {
    %c0_i32 = arith.constant 0 : i32
    %c0_i32_0 = arith.constant 0 : i32
    %c0_i32_1 = arith.constant 0 : i32
    return %arg0, %c0_i32, %c0_i32_0 : i32, i32, i32
  }
  func.func @transform_13(%arg0: i32) -> (i32, i32, i32) {
    %c0_i32 = arith.constant 0 : i32
    %c0_i32_0 = arith.constant 0 : i32
    %c0_i32_1 = arith.constant 0 : i32
    return %arg0, %c0_i32, %c0_i32_0 : i32, i32, i32
  }
}

</mosaic_0001>

<bundles_post_ra>
// kernel: tpu_custom_call.1
= control target key start
LH: loop header
LB: loop body
LE: loop exit
PB: predicated region body
PF: predicated region fallthrough
CT: control target
= control target key end

     0   :  { %20 = vsyncpa [#allocation6], 0  ;;  %vm88_vm0 = vcmask 1043456   ;;  %v13367_v3 = vmov 0.0|0.0   ;;  %vm63_vm1 = vcmask 31744   ;;  %vm13368_vm2 = vmmov 0   ;;  %s14967_s0 = inlined_call_operand.vmem [shape: f32[8,8,4], index: 0, kind: input, shape index: {}]   ;;  %s14968_s1 = inlined_call_operand.vmem [shape: s32[8,1], index: 1, kind: input, shape index: {}]   ;;  %s14969_s2 = inlined_call_operand.vmem [shape: f32[4,96], index: 2, kind: input, shape index: {}]   ;;  %s14970_s3 = inlined_call_operand.vmem [shape: f32[32,96], index: 3, kind: input, shape index: {}]   ;;  %s14971_s4 = inlined_call_operand.vmem [shape: f32[1,96], index: 4, kind: input, shape index: {}]   ;;  %s14972_s5 = inlined_call_operand.vmem [shape: f32[1,32], index: 5, kind: input, shape index: {}]   ;;  %s14973_s6 = inlined_call_operand.vmem [shape: f32[32,96], index: 6, kind: input, shape index: {}]   ;;  %s14974_s7 = inlined_call_operand.vmem [shape: f32[32,96], index: 7, kind: input, shape index: {}]   ;;  %s14975_s8 = inlined_call_operand.vmem [shape: f32[1,96], index: 8, kind: input, shape index: {}]   ;;  %s14976_s9 = inlined_call_operand.vmem [shape: f32[1,32], index: 9, kind: input, shape index: {}]   ;;  %s14977_s10 = inlined_call_operand.vmem [shape: f32[1,32], index: 10, kind: input, shape index: {}]   ;;  %s14978_s11 = inlined_call_operand.<no memory space> [shape: f32[1], index: 11, kind: input, shape index: {}]   ;;  %s14979_s12 = inlined_call_operand.hbm [shape: f32[1,8,8], index: 12, kind: output, shape index: {0}]   ;;  %s14980_s13 = inlined_call_operand.hbm [shape: f32[1,8,8], index: 13, kind: output, shape index: {1}]  }
   0x1   :  { %v848_v0 = vld [vmem:[%s14970_s3] sm:$0xff]  ;;  %v849_v1 = vld [vmem:[%s14970_s3 + $0x8] sm:$0xff]  ;;  %v850_v2 = vld [vmem:[%s14970_s3 + $0x10] sm:$0xff]  ;;  %12301 = vmatprep.subr.bf16.mxu1 %v13367_v3  ;;  %v13369_v15 = vmov 0.0  }
   0x2   :  { %v859_v4 = vand.u32 4294901760, %v848_v0  ;;  %v862_v5 = vand.u32 4294901760, %v849_v1  ;;  %v851_v6 = vld [vmem:[%s14970_s3 + $0x18] sm:$0xff]  ;;  %v865_v7 = vand.u32 4294901760, %v850_v2  ;;  %v55_v8 = vld [vmem:[%s14969_s2] sm:$0xf]  ;;  %11133 = vmatprep.mubr.msk.f32.mxu1 %vm13368_vm2, %v13369_v15 }
   0x3   :  { %v868_v9 = vand.u32 4294901760, %v851_v6  ;;  %v13461_v10 = vsel %vm88_vm0, %v55_v8, 0  ;;  %v47_v11 = vld [vmem:[%s14967_s0] sm:$0xff]  ;;  %v48_v12 = vld [vmem:[%s14967_s0 + $0x8] sm:$0xff]  ;;  %v49_v18 = vld [vmem:[%s14967_s0 + $0x10] sm:$0xff] }
   0x4   :  { %v13469_v13 = vpack.c.bf16 %v862_v5, %v859_v4  ;;  %v13472_v14 = vand.u32 4294901760, %v13461_v10  ;;  %v65_v16 = vsel %vm63_vm1, %v47_v11, 0  ;;  %v68_v17 = vsel %vm63_vm1, %v48_v12, 0  ;;  %v50_v19 = vld [vmem:[%s14967_s0 + $0x18] sm:$0xff]  ;;  %v10408_v28 = vld [vmem:[%s14972_s5] ss:$0 sm:$0xff] }
   0x5   :  { %v13484_v20 = vpack.c.bf16 %v868_v9, %v865_v7  ;;  %v13486_v21 = vand.u32 4294901760, %v65_v16  ;;  %v13488_v22 = vand.u32 4294901760, %v68_v17  ;;  %v13490_v23 = vsub.f32 %v848_v0, %v859_v4 }
   0x6   :  { %12303 = vmatpush3.bf16.msra.mxu1 %v13469_v13  ;;  %11041 = vmatprep.subr.mxu0 %v13472_v14  ;;  %v13494_v24 = vsub.f32 %v849_v1, %v862_v5  ;;  %v71_v25 = vsel %vm63_vm1, %v49_v18, 0  ;;  %v74_v26 = vsel %vm63_vm1, %v50_v19, 0  ;;  %v13498_v27 = vsub.f32 %v850_v2, %v865_v7 }
   0x7   :  { %21 = vsyncpa [#allocation8], 0  ;;  %12304 = vmatprep.subr.bf16.mxu1 %v13367_v3  ;;  %11042 = vmatpush3.msra.mxu0 %v13472_v14  ;;  %v13506_v29 = vsub.f32 %v65_v16, %v13486_v21  ;;  %v13509_v30 = vsub.f32 %v68_v17, %v13488_v22  ;;  %v940_v31 = vand.u32 4294901760, %v13490_v23  ;;  %v13512_v32 = vand.u32 4294901760, %v71_v25  ;;  %s13370_s5 = smov 64   ;;  %v51_v45 = vld [vmem:[%s14967_s0 + $0x20] sm:$0xff] }
   0x8   :  { %v947_v33 = vand.u32 4294901760, %v13494_v24  ;;  %v13515_v34 = vand.u32 4294901760, %v74_v26  ;;  %v954_v35 = vand.u32 4294901760, %v13498_v27  ;;  %v13518_v36 = vsub.f32 %v851_v6, %v868_v9  ;;  %1355 = vrot.lane.b32.xlu0 %v10408_v28, %s13370_s5  ;;  %v52_v54 = vld [vmem:[%s14967_s0 + $0x28] sm:$0xff]  ;;  %v53_v55 = vld [vmem:[%s14967_s0 + $0x30] sm:$0xff]  ;;  %v54_v0 = vld [vmem:[%s14967_s0 + $0x38] sm:$0xff] }
   0x9   :  { %v160_v37 = vand.u32 4294901760, %v13506_v29  ;;  %v170_v38 = vand.u32 4294901760, %v13509_v30  ;;  %v941_v39 = vsub.f32 %v13490_v23, %v940_v31  ;;  %v13527_v40 = vsub.f32 %v71_v25, %v13512_v32  ;;  %s13372_s19 = smov 96  }
   0xa   :  { %12306 = vmatpush3.bf16.msra.mxu1 %v13484_v20  ;;  %v948_v41 = vsub.f32 %v13494_v24, %v947_v33  ;;  %v13534_v42 = vsub.f32 %v74_v26, %v13515_v34  ;;  %v955_v43 = vsub.f32 %v13498_v27, %v954_v35  ;;  %v961_v44 = vand.u32 4294901760, %v13518_v36 }
   0xb   :  { %v161_v46 = vsub.f32 %v13506_v29, %v160_v37  ;;  %12307 = vmatprep.subr.bf16.mxu1 %v13367_v3  ;;  %v171_v47 = vsub.f32 %v13509_v30, %v170_v38  ;;  %v942_v48 = vand.u32 4294901760, %v941_v39  ;;  %v180_v49 = vand.u32 4294901760, %v13527_v40 }
   0xc   :  { %v949_v50 = vand.u32 4294901760, %v948_v41  ;;  %v190_v51 = vand.u32 4294901760, %v13534_v42  ;;  %v956_v52 = vand.u32 4294901760, %v955_v43  ;;  %v962_v53 = vsub.f32 %v13518_v36, %v961_v44 }
   0xd   :  { %v162_v56 = vand.u32 4294901760, %v161_v46  ;;  %11134 = vmatmul.mubr.f32.vlgmr.msra.gmra.mrb[0].mxu1 %v13369_v15  ;;  %v172_v57 = vand.u32 4294901760, %v171_v47  ;;  %v181_v58 = vsub.f32 %v13527_v40, %v180_v49  ;;  %v77_v59 = vsel %vm63_vm1, %v51_v45, 0 }
   0xe   :  { %v13566_v60 = vpack.c.bf16 %v949_v50, %v942_v48  ;;  %v191_v61 = vsub.f32 %v13534_v42, %v190_v51  ;;  %v963_v62 = vand.u32 4294901760, %v962_v53  ;;  %11144 = vmatprep.mubr.msk.f32.mxu1 %vm13368_vm2, %v13369_v15  ;;  %v13573_v63 = vand.u32 4294901760, %v77_v59 }
   0xf   :  { %11043 = vmatprep.mubr.f32.mxu0 %v162_v56  ;;  %v182_v1 = vand.u32 4294901760, %v181_v58  ;;  %v80_v2 = vsel %vm63_vm1, %v52_v54, 0  ;;  %v83_v4 = vsel %vm63_vm1, %v53_v55, 0  ;;  %v86_v11 = vsel %vm63_vm1, %v54_v0, 0 }
  0x10   :  { %11044 = vmatmul.mubr.f32.vlgmr.msra.gmra.mrb[0].mxu0 %v172_v57  ;;  %12309 = vmatpush3.bf16.msra.mxu1 %v13566_v60  ;;  %v192_v5 = vand.u32 4294901760, %v191_v61  ;;  %v13581_v6 = vpack.c.bf16 %v963_v62, %v956_v52  ;;  %v13584_v7 = vsub.f32 %v77_v59, %v13573_v63  ;;  %v13586_v8 = vand.u32 4294901760, %v80_v2 }
  0x11   :  { %11046 = vmatprep.mubr.f32.mxu0 %v182_v1  ;;  %12310 = vmatprep.subr.bf16.mxu1 %v13367_v3  ;;  %v13589_v9 = vand.u32 4294901760, %v83_v4  ;;  %v240_v12 = vsub.f32 %v13461_v10, %v13472_v14  ;;  %v13598_v18 = vand.u32 4294901760, %v86_v11  ;;  %v13612_v28 = vpack.c.bf16 %v13494_v24, %v13490_v23 }
  0x12   :  { %v200_v16 = vand.u32 4294901760, %v13584_v7  ;;  %v13596_v17 = vsub.f32 %v80_v2, %v13586_v8  ;;  %v13634_v54 = vpack.c.bf16 %v13518_v36, %v13498_v27  ;;  %v13654_v57 = vpack.c.bf16 %v947_v33, %v940_v31  ;;  %v10406_v27 = vld [vmem:[%s14971_s4] ss:$0 sm:$0xff] }
  0x13   :  { %v13601_v19 = vsub.f32 %v83_v4, %v13589_v9  ;;  %v13603_v25 = vand.u32 4294901760, %v240_v12  ;;  %v13615_v39 = vsub.f32 %v86_v11, %v13598_v18  ;;  %v13666_v23 = vpack.c.bf16 %v961_v44, %v954_v35  ;;  %v13762_v2 = vld [vmem:[%s14968_s1] sm:$0xff] }
  0x14   :  { %11047 = vmatmul.mubr.f32.gmra.mrb[2].mxu0 %v192_v5  ;;  %12312 = vmatpush3.bf16.msra.mxu1 %v13581_v6  ;;  %v201_v26 = vsub.f32 %v13584_v7, %v200_v16  ;;  %v210_v10 = vand.u32 4294901760, %v13596_v17  ;;  %vm839_vm3 = vcmask 785408   ;;  %v13371_v1 = vmov 0  }
  0x15   :  { %12313 = vmatprep.subr.bf16.mxu1 %v13367_v3  ;;  %v220_v41 = vand.u32 4294901760, %v13601_v19  ;;  %v242_v43 = vsub.f32 %v240_v12, %v13603_v25  ;;  %v230_v47 = vand.u32 4294901760, %v13615_v39  ;;  %13189 = vset.pattern.permute.xlu1 %v13371_v1  ;;  %vm1378_vm4 = vcmp.gt.s32.totalorder %v13762_v2, 0 }
  0x16   :  { %v202_v45 = vand.u32 4294901760, %v201_v26  ;;  %v211_v46 = vsub.f32 %v13596_v17, %v210_v10  ;;  %13190 = vset.pattern.permute.xlu0 %v13371_v1  ;;  %vm854_vm6 = vcmask 261120   ;;  %vm1910_vm7 = vcmp.gt.s32.totalorder %v13762_v2, 1 }
  0x17   :  { %11145 = vmatmul.mubr.f32.vlgmr.msra.gmra.mrb[0].mxu1 %v13369_v15  ;;  %v221_v48 = vsub.f32 %v13601_v19, %v220_v41  ;;  %v243_v50 = vand.u32 4294901760, %v242_v43  ;;  %v231_v53 = vsub.f32 %v13615_v39, %v230_v47  ;;  %vm2443_vm9 = vcmp.gt.s32.totalorder %v13762_v2, 2 }
  0x18   :  { %11049 = vmatprep.mubr.f32.mxu0 %v202_v45  ;;  %v212_v52 = vand.u32 4294901760, %v211_v46  ;;  %12315 = vmatpush3.bf16.msra.mxu1 %v13612_v28  ;;  %vm2976_vm11 = vcmp.gt.s32.totalorder %v13762_v2, 3  ;;  %vm3509_vm13 = vcmp.gt.s32.totalorder %v13762_v2, 4  ;;  %vm4042_vm15 = vcmp.gt.s32.totalorder %v13762_v2, 5 }
  0x19   :  { %v222_v55 = vand.u32 4294901760, %v221_v48  ;;  %12316 = vmatprep.subr.bf16.mxu1 %v13367_v3  ;;  %11055 = vmatprep.subr.mxu0 %v243_v50  ;;  %v232_v56 = vand.u32 4294901760, %v231_v53  ;;  %vm4575_vm1 = vcmp.gt.s32.totalorder %v13762_v2, 6 }
  0x1a   :  { %11050 = vmatmul.mubr.f32.gmra.mrb[4].mxu0 %v212_v52  ;;  %11155 = vmatprep.mubr.msk.f32.mxu1 %vm13368_vm2, %v13369_v15 }
  0x1b   :  { %11052 = vmatprep.mubr.f32.mxu0 %v222_v55  ;;  %11056 = vmatpush3.msra.mxu0 %v243_v50 }
  0x1c   :  { %12318 = vmatpush3.bf16.msra.mxu1 %v13634_v54  ;;  %11069 = vmatprep.subr.mxu0 %v240_v12 }
  0x1d   :  { %12319 = vmatprep.subr.bf16.mxu1 %v13367_v3 }
  0x1e   :  { %11053 = vmatmul.mubr.f32.gmra.mrb[6].mxu0 %v232_v56 }
  0x1f   :  { %11057 = vmatprep.mubr.f32.mxu0 %v13486_v21  ;;  %11156 = vmatmul.mubr.f32.vlgmr.msra.gmra.mrb[0].mxu1 %v13369_v15 }
  0x20   :  { %12321 = vmatpush3.bf16.msra.mxu1 %v13469_v13  ;;  %11166 = vmatprep.mubr.msk.f32.mxu1 %vm13368_vm2, %v13369_v15 }
  0x21   :  { %12322 = vmatprep.subr.bf16.mxu1 %v13367_v3 }
  0x22   :  { %11058 = vmatmul.mubr.f32.vlgmr.msra.gmra.mrb[0].mxu0 %v13488_v22 }
  0x23   :  { %11060 = vmatprep.mubr.f32.mxu0 %v13512_v32  ;;  %11070 = vmatpush3.msra.mxu0 %v240_v12 }
  0x24   :  { %12324 = vmatpush3.bf16.msra.mxu1 %v13484_v20  ;;  %11083 = vmatprep.subr.mxu0 %v13472_v14 }
  0x25   :  { %12325 = vmatprep.subr.bf16.mxu1 %v13367_v3 }
  0x26   :  { %11061 = vmatmul.mubr.f32.gmra.mrb[2].mxu0 %v13515_v34 }
  0x27   :  { %11063 = vmatprep.mubr.f32.mxu0 %v13573_v63  ;;  %11167 = vmatmul.mubr.f32.vlgmr.msra.gmra.mrb[0].mxu1 %v13369_v15 }
  0x28   :  { %12327 = vmatpush3.bf16.msra.mxu1 %v13654_v57  ;;  %11177 = vmatprep.mubr.msk.f32.mxu1 %vm13368_vm2, %v13369_v15 }
  0x29   :  { %12328 = vmatprep.subr.bf16.mxu1 %v13367_v3 }
  0x2a   :  { %11064 = vmatmul.mubr.f32.gmra.mrb[4].mxu0 %v13586_v8 }
  0x2b   :  { %11066 = vmatprep.mubr.f32.mxu0 %v13589_v9 }
  0x2c   :  { %12330 = vmatpush3.bf16.msra.mxu1 %v13666_v23 }
  0x2d   :  { %12331 = vmatprep.subr.bf16.mxu1 %v13367_v3 }
  0x2e   :  { %11067 = vmatmul.mubr.f32.gmra.mrb[6].mxu0 %v13598_v18 }
  0x2f   :  { %11071 = vmatprep.mubr.f32.mxu0 %v13506_v29  ;;  %11178 = vmatmul.mubr.f32.vlgmr.msra.gmra.mrb[0].mxu1 %v13369_v15 }
  0x30   :  { %12333 = vmatpush3.bf16.msra.mxu1 %v13469_v13  ;;  %11188 = vmatprep.mubr.msk.f32.mxu1 %vm13368_vm2, %v13369_v15 }
  0x31   :  { %12334 = vmatprep.subr.bf16.mxu1 %v13367_v3 }
  0x32   :  { %11072 = vmatmul.mubr.f32.vlgmr.msra.gmra.mrb[0].mxu0 %v13509_v30 }
  0x33   :  { %11074 = vmatprep.mubr.f32.mxu0 %v13527_v40  ;;  %11084 = vmatpush3.msra.mxu0 %v13472_v14 }
  0x34   :  { %12336 = vmatpush3.bf16.msra.mxu1 %v13484_v20  ;;  %11097 = vmatprep.subr.mxu0 %v13603_v25 }
  0x35   :  { %12337 = vmatprep.subr.bf16.mxu1 %v13367_v3 }
  0x36   :  { %11075 = vmatmul.mubr.f32.gmra.mrb[2].mxu0 %v13534_v42 }
  0x37   :  { %11077 = vmatprep.mubr.f32.mxu0 %v13584_v7  ;;  %11189 = vmatmul.mubr.f32.vlgmr.msra.gmra.mrb[0].mxu1 %v13369_v15 }
  0x38   :  { %12339 = vmatpush3.bf16.msra.mxu1 %v13469_v13  ;;  %11199 = vmatprep.mubr.msk.f32.mxu1 %vm13368_vm2, %v13369_v15 }
  0x39   :  { %12340 = vmatprep.subr.bf16.mxu1 %v13367_v3 }
  0x3a   :  { %11078 = vmatmul.mubr.f32.gmra.mrb[4].mxu0 %v13596_v17 }
  0x3b   :  { %11080 = vmatprep.mubr.f32.mxu0 %v13601_v19 }
  0x3c   :  { %12342 = vmatpush3.bf16.msra.mxu1 %v13484_v20 }
  0x3d   :  { %12343 = vmatprep.subr.bf16.mxu1 %v13367_v3 }
  0x3e   :  { %11081 = vmatmul.mubr.f32.gmra.mrb[6].mxu0 %v13615_v39 }
  0x3f   :  { %11085 = vmatprep.mubr.f32.mxu0 %v160_v37 }
  0x42   :  { %11086 = vmatmul.mubr.f32.vlgmr.msra.gmra.mrb[0].mxu0 %v170_v38 }
  0x43   :  { %11088 = vmatprep.mubr.f32.mxu0 %v180_v49  ;;  %11098 = vmatpush3.msra.mxu0 %v13603_v25 }
  0x44   :  { %11111 = vmatprep.subr.mxu0 %v13472_v14 }
  0x46   :  { %11089 = vmatmul.mubr.f32.gmra.mrb[2].mxu0 %v190_v51 }
  0x47   :  { %11091 = vmatprep.mubr.f32.mxu0 %v200_v16 }
  0x4a   :  { %11092 = vmatmul.mubr.f32.gmra.mrb[4].mxu0 %v210_v10 }
  0x4b   :  { %11094 = vmatprep.mubr.f32.mxu0 %v220_v41 }
  0x4e   :  { %11095 = vmatmul.mubr.f32.gmra.mrb[6].mxu0 %v230_v47 }
  0x4f   :  { %11099 = vmatprep.mubr.f32.mxu0 %v13486_v21 }
  0x52   :  { %11100 = vmatmul.mubr.f32.vlgmr.msra.gmra.mrb[0].mxu0 %v13488_v22 }
  0x53   :  { %11102 = vmatprep.mubr.f32.mxu0 %v13512_v32  ;;  %11112 = vmatpush3.msra.mxu0 %v13472_v14 }
  0x54   :  { %12373 = vmatprep.subr.bf16.mxu0 %v13367_v3 }
  0x56   :  { %11103 = vmatmul.mubr.f32.gmra.mrb[2].mxu0 %v13515_v34 }
  0x57   :  { %11105 = vmatprep.mubr.f32.mxu0 %v13573_v63 }
  0x5a   :  { %11106 = vmatmul.mubr.f32.gmra.mrb[4].mxu0 %v13586_v8 }
  0x5b   :  { %11108 = vmatprep.mubr.f32.mxu0 %v13589_v9 }
  0x5e   :  { %11109 = vmatmul.mubr.f32.gmra.mrb[6].mxu0 %v13598_v18 }
  0x5f   :  { %11113 = vmatprep.mubr.f32.mxu0 %v13486_v21 }
  0x62   :  { %11114 = vmatmul.mubr.f32.vlgmr.msra.gmra.mrb[0].mxu0 %v13488_v22 }
  0x63   :  { %11116 = vmatprep.mubr.f32.mxu0 %v13512_v32  ;;  %12375 = vmatpush3.bf16.msra.mxu0 %v13469_v13 }
  0x64   :  { %12376 = vmatprep.subr.bf16.mxu0 %v13367_v3 }
  0x66   :  { %11117 = vmatmul.mubr.f32.gmra.mrb[2].mxu0 %v13515_v34 }
  0x67   :  { %11119 = vmatprep.mubr.f32.mxu0 %v13573_v63  ;;  %12378 = vmatpush3.bf16.msra.mxu0 %v13484_v20 }
  0x68   :  { %12379 = vmatprep.subr.bf16.mxu0 %v13367_v3 }
  0x6a   :  { %11120 = vmatmul.mubr.f32.gmra.mrb[4].mxu0 %v13586_v8  ;;  %v1379_v8 = vsel %vm1378_vm4, 1, %v13371_v1 }
  0x6b   :  { %11122 = vmatprep.mubr.f32.mxu0 %v13589_v9 }
  0x6e   :  { %11123 = vmatmul.mubr.f32.gmra.mrb[6].mxu0 %v13598_v18 }
  0x6f   :  { %11265 = vmatprep.mubr.msk.f32.mxu0 %vm13368_vm2, %v13369_v15 }
  0x7a   :  { %v13742_v14 = vpop.permute.xlu0 %1355 }
 0x10a   :  { %v1339_v21 = vpop.f32.mrb[0].mxu1 }
 0x10b   :  { %v1358_v22 = vadd.f32 %v13742_v14, %v1339_v21  ;;  %v11190_v24 = vpop.f32.mrb[1].mxu1 }
 0x10d   :  { %1360 = vrot.lane.b32.xlu0 %v1358_v22, %s13370_s5 }
 0x135   :  { %v11115_v29 = vpop.f32.mrb[0].mxu0 }
 0x136   :  { %v12925_v30 = vadd.f32 %v11115_v29, %v10406_v27  ;;  %v793_v31 = vpop.f32.mrb[1].mxu0 }
 0x137   :  { %v12926_v32 = vadd.f32 %v10406_v27, %v793_v31 }
 0x138   :  { %841 = vst.msk [vmem:[#allocation2 + $0x8] sm:$0xff] %vm839_vm3, %v12925_v30 }
 0x139   :  { %840 = vst.msk [vmem:[#allocation2] sm:$0xff] %vm839_vm3, %v12926_v32  ;;  %v11118_v33 = vpop.f32.mrb[2].mxu0 }
 0x13a   :  { %v12927_v34 = vadd.f32 %v11118_v33, %v10406_v27  ;;  %v805_v35 = vpop.f32.mrb[3].mxu0 }
 0x13b   :  { %v12928_v36 = vadd.f32 %v10406_v27, %v805_v35 }
 0x13c   :  { %843 = vst.msk [vmem:[#allocation2 + $0x18] sm:$0xff] %vm839_vm3, %v12927_v34 }
 0x13d   :  { %842 = vst.msk [vmem:[#allocation2 + $0x10] sm:$0xff] %vm839_vm3, %v12928_v36  ;;  %v11121_v37 = vpop.f32.mrb[4].mxu0 }
 0x13e   :  { %v12929_v38 = vadd.f32 %v11121_v37, %v10406_v27  ;;  %v817_v40 = vpop.f32.mrb[5].mxu0 }
 0x13f   :  { %v12930_v42 = vadd.f32 %v10406_v27, %v817_v40  ;;  %v1392_v55 = vld [vmem:[#allocation2 + $0x8] sm:$0xff] }
 0x140   :  { %845 = vst.msk [vmem:[#allocation2 + $0x28] sm:$0xff] %vm839_vm3, %v12929_v38  ;;  %v853_v59 = vld [vmem:[#allocation2] sm:$0xff] }
 0x141   :  { %844 = vst.msk [vmem:[#allocation2 + $0x20] sm:$0xff] %vm839_vm3, %v12930_v42  ;;  %v11124_v44 = vpop.f32.mrb[6].mxu0  ;;  %v1343_v61 = vadd.f32 %v1339_v21, %v853_v59 }
 0x142   :  { %v12931_v49 = vadd.f32 %v11124_v44, %v10406_v27  ;;  %v829_v51 = vpop.f32.mrb[7].mxu0 }
 0x143   :  { %v12932_v58 = vadd.f32 %v10406_v27, %v829_v51  ;;  %v10407_v62 = vmul.f32 -1.442695, %v1343_v61  ;;  %v1911_v27 = vsel %vm1910_vm7, 1, %v13371_v1  ;;  %vm5108_vm7 = vcmp.gt.s32.totalorder %v13762_v2, 7 }
 0x144   :  { %847 = vst.msk [vmem:[#allocation2 + $0x38] sm:$0xff] %vm839_vm3, %v12931_v49 }
 0x145   :  { %846 = vst.msk [vmem:[#allocation2 + $0x30] sm:$0xff] %vm839_vm3, %v12932_v58  ;;  %13191 = vpow2.f32 %v10407_v62 }
 0x14f   :  { %v13192_v63 = vpop.eup %13191 }
 0x150   :  { %v1347_v0 = vadd.f32 1.0, %v13192_v63 }
 0x152   :  { %13193 = vrcp.f32 %v1347_v0 }
 0x15c   :  { %v13194_v4 = vpop.eup %13193 }
 0x15d   :  { %v1370_v16 = vsub.f32 1.0, %v13194_v4  ;;  %v1376_v19 = vmul.f32 0.0, %v13194_v4 }
 0x17f   :  { %v1361_v5 = vpop.permute.xlu0 %1360 }
 0x180   :  { %v1363_v7 = vmul.f32 %v13194_v4, %v1361_v5 }
 0x182   :  { %1365 = vrot.lane.b32.xlu1 %v1363_v7, %s13370_s5  ;;  %v2444_v7 = vsel %vm2443_vm9, 1, %v13371_v1 }
 0x186   :  { %1381 = vperm.xlu1 %13189, %v1379_v8   ;;  %v1925_v8 = vld [vmem:[#allocation2 + $0x10] sm:$0xff] }
 0x1f4   :  { %v1366_v9 = vpop.permute.xlu1 %1365 }
 0x1f5   :  { %v1368_v11 = vadd.f32 %v1366_v9, %v853_v59 }
 0x1f7   :  { %13195 = vtanh.f32 %v1368_v11 }
 0x201   :  { %v13196_v12 = vpop.eup %13195 }
 0x202   :  { %1372 = vrot.lane.b32.xlu0 %v13196_v12, %s13372_s19 }
 0x205   :  { %v13768_v17 = vpop.permute.xlu1 %1381 }
 0x206   :  { %vm1383_vm5 = vcmp.eq.s32.totalorder %v13768_v17, 1 }
 0x274   :  { %v1373_v18 = vpop.permute.xlu0 %1372 }
 0x275   :  { %v1375_v25 = vmul.f32 %v1373_v18, %v1370_v16 }
 0x277   :  { %v13771_v26 = vadd.f32 %v1376_v19, %v1375_v25 }
 0x279   :  { %v13776_v10 = vsel %vm1383_vm5, %v13771_v26, 0.0 }
 0x27a   :  { %1394 = vrot.lane.b32.xlu1 %v13776_v10, %s13372_s19 }
 0x2ec   :  { %v1395_v39 = vpop.permute.xlu1 %1394 }
 0x2ed   :  { %v1396_v41 = vsel %vm854_vm6, %v1395_v39, 0 }
 0x2ee   :  { %v1467_v43 = vand.u32 4294901760, %v1396_v41 }
 0x2f0   :  { %v1468_v45 = vsub.f32 %v1396_v41, %v1467_v43 }
 0x2f2   :  { %v1469_v46 = vand.u32 4294901760, %v1468_v45 }
 0x2f4   :  { %v1470_v47 = vsub.f32 %v1468_v45, %v1469_v46 }
 0x2f6   :  { %v1471_v48 = vand.u32 4294901760, %v1470_v47 }
 0x2f8   :  { %11200 = vmatmul.mubr.f32.vlgmr.msra.gmra.mrb[2].mxu1 %v1471_v48 }
 0x2f9   :  { %12345 = vmatpush3.bf16.msra.mxu1 %v13566_v60  ;;  %11210 = vmatprep.mubr.msk.f32.mxu1 %vm13368_vm2, %v13369_v15 }
 0x2fa   :  { %12346 = vmatprep.subr.bf16.mxu1 %v13367_v3 }
 0x2fd   :  { %12348 = vmatpush3.bf16.msra.mxu1 %v13581_v6 }
 0x2fe   :  { %12349 = vmatprep.subr.bf16.mxu1 %v13367_v3 }
 0x300   :  { %11211 = vmatmul.mubr.f32.vlgmr.msra.gmra.mrb[2].mxu1 %v1467_v43 }
 0x301   :  { %12351 = vmatpush3.bf16.msra.mxu1 %v13612_v28  ;;  %11221 = vmatprep.mubr.msk.f32.mxu1 %vm13368_vm2, %v13369_v15 }
 0x302   :  { %12352 = vmatprep.subr.bf16.mxu1 %v13367_v3 }
 0x305   :  { %12354 = vmatpush3.bf16.msra.mxu1 %v13634_v54 }
 0x306   :  { %12355 = vmatprep.subr.bf16.mxu1 %v13367_v3 }
 0x308   :  { %11222 = vmatmul.mubr.f32.vlgmr.msra.gmra.mrb[2].mxu1 %v1468_v45 }
 0x309   :  { %12357 = vmatpush3.bf16.msra.mxu1 %v13469_v13  ;;  %11232 = vmatprep.mubr.msk.f32.mxu1 %vm13368_vm2, %v13369_v15 }
 0x30a   :  { %12358 = vmatprep.subr.bf16.mxu1 %v13367_v3 }
 0x30d   :  { %12360 = vmatpush3.bf16.msra.mxu1 %v13484_v20 }
 0x30e   :  { %12361 = vmatprep.subr.bf16.mxu1 %v13367_v3 }
 0x310   :  { %11233 = vmatmul.mubr.f32.vlgmr.msra.gmra.mrb[2].mxu1 %v1469_v46 }
 0x311   :  { %12363 = vmatpush3.bf16.msra.mxu1 %v13654_v57  ;;  %11243 = vmatprep.mubr.msk.f32.mxu1 %vm13368_vm2, %v13369_v15 }
 0x312   :  { %12364 = vmatprep.subr.bf16.mxu1 %v13367_v3 }
 0x315   :  { %12366 = vmatpush3.bf16.msra.mxu1 %v13666_v23 }
 0x316   :  { %12367 = vmatprep.subr.bf16.mxu1 %v13367_v3 }
 0x318   :  { %11244 = vmatmul.mubr.f32.vlgmr.msra.gmra.mrb[2].mxu1 %v1467_v43 }
 0x319   :  { %12369 = vmatpush3.bf16.msra.mxu1 %v13469_v13  ;;  %11254 = vmatprep.mubr.msk.f32.mxu1 %vm13368_vm2, %v13369_v15 }
 0x31a   :  { %12370 = vmatprep.subr.bf16.mxu1 %v13367_v3 }
 0x31d   :  { %12372 = vmatpush3.bf16.msra.mxu1 %v13484_v20 }
 0x31e   :  { %12409 = vmatprep.subr.bf16.mxu1 %v13367_v3 }
 0x320   :  { %11255 = vmatmul.mubr.f32.vlgmr.msra.gmra.mrb[2].mxu1 %v1467_v43 }
 0x321   :  { %12411 = vmatpush3.bf16.msra.mxu1 %v13469_v13  ;;  %11331 = vmatprep.mubr.msk.f32.mxu1 %vm13368_vm2, %v13369_v15 }
 0x322   :  { %12412 = vmatprep.subr.bf16.mxu1 %v13367_v3 }
 0x325   :  { %12414 = vmatpush3.bf16.msra.mxu1 %v13484_v20 }
 0x326   :  { %12415 = vmatprep.subr.bf16.mxu1 %v13367_v3 }
 0x3f3   :  { %v1879_v50 = vpop.f32.mrb[2].mxu1 }
 0x3f4   :  { %v1890_v52 = vadd.f32 %v1879_v50, %v13742_v14  ;;  %v11256_v53 = vpop.f32.mrb[3].mxu1  ;;  %v1883_v56 = vadd.f32 %v1879_v50, %v1392_v55 }
 0x3f6   :  { %1892 = vrot.lane.b32.xlu0 %v1890_v52, %s13370_s5  ;;  %v10409_v21 = vmul.f32 -1.442695, %v1883_v56 }
 0x3f8   :  { %13197 = vpow2.f32 %v10409_v21 }
 0x3fa   :  { %1913 = vperm.xlu0 %13190, %v1911_v27  }
 0x402   :  { %v13198_v22 = vpop.eup %13197 }
 0x403   :  { %v1887_v24 = vadd.f32 1.0, %v13198_v22 }
 0x405   :  { %13199 = vrcp.f32 %v1887_v24 }
 0x40f   :  { %v13200_v29 = vpop.eup %13199 }
 0x410   :  { %v1902_v35 = vsub.f32 1.0, %v13200_v29  ;;  %v1908_v38 = vmul.f32 %v13200_v29, %v13776_v10 }
 0x468   :  { %v1893_v30 = vpop.permute.xlu0 %1892 }
 0x469   :  { %v1895_v31 = vmul.f32 %v13200_v29, %v1893_v30 }
 0x46b   :  { %1897 = vrot.lane.b32.xlu1 %v1895_v31, %s13370_s5 }
 0x479   :  { %v13823_v36 = vpop.permute.xlu0 %1913 }
 0x47a   :  { %vm1915_vm8 = vcmp.eq.s32.totalorder %v13823_v36, 1 }
 0x4dd   :  { %v1898_v32 = vpop.permute.xlu1 %1897 }
 0x4de   :  { %v1900_v33 = vadd.f32 %v1898_v32, %v1392_v55  ;;  %v2977_v32 = vsel %vm2976_vm11, 1, %v13371_v1  ;;  %vm10276_vm11 = vcmask 1047559  }
 0x4e0   :  { %13201 = vtanh.f32 %v1900_v33  ;;  %v2458_v33 = vld [vmem:[#allocation2 + $0x18] sm:$0xff] }
 0x4ea   :  { %v13202_v34 = vpop.eup %13201 }
 0x4eb   :  { %1904 = vrot.lane.b32.xlu1 %v13202_v34, %s13372_s19 }
 0x55d   :  { %v1905_v37 = vpop.permute.xlu1 %1904 }
 0x55e   :  { %v1907_v40 = vmul.f32 %v1905_v37, %v1902_v35 }
 0x560   :  { %v13827_v42 = vadd.f32 %v1908_v38, %v1907_v40 }
 0x562   :  { %v13833_v44 = vsel %vm1915_vm8, %v13827_v42, %v13776_v10 }
 0x563   :  { %1927 = vrot.lane.b32.xlu1 %v13833_v44, %s13372_s19 }
 0x5d5   :  { %v1928_v49 = vpop.permute.xlu1 %1927 }
 0x5d6   :  { %v1929_v51 = vsel %vm854_vm6, %v1928_v49, 0 }
 0x5d7   :  { %v2000_v58 = vand.u32 4294901760, %v1929_v51 }
 0x5d9   :  { %v2001_v59 = vsub.f32 %v1929_v51, %v2000_v58 }
 0x5db   :  { %v2002_v61 = vand.u32 4294901760, %v2001_v59 }
 0x5dd   :  { %v2003_v62 = vsub.f32 %v2001_v59, %v2002_v61 }
 0x5df   :  { %v2004_v63 = vand.u32 4294901760, %v2003_v62 }
 0x5e1   :  { %11266 = vmatmul.mubr.f32.vlgmr.msra.gmra.mrb[8].mxu0 %v2004_v63 }
 0x5e2   :  { %12381 = vmatpush3.bf16.msra.mxu0 %v13566_v60  ;;  %11276 = vmatprep.mubr.msk.f32.mxu0 %vm13368_vm2, %v13369_v15 }
 0x5e3   :  { %12382 = vmatprep.subr.bf16.mxu0 %v13367_v3 }
 0x5e6   :  { %12384 = vmatpush3.bf16.msra.mxu0 %v13581_v6 }
 0x5e7   :  { %12385 = vmatprep.subr.bf16.mxu0 %v13367_v3 }
 0x5e9   :  { %11277 = vmatmul.mubr.f32.vlgmr.msra.gmra.mrb[8].mxu0 %v2000_v58 }
 0x5ea   :  { %12387 = vmatpush3.bf16.msra.mxu0 %v13612_v28  ;;  %11287 = vmatprep.mubr.msk.f32.mxu0 %vm13368_vm2, %v13369_v15 }
 0x5eb   :  { %12388 = vmatprep.subr.bf16.mxu0 %v13367_v3 }
 0x5ee   :  { %12390 = vmatpush3.bf16.msra.mxu0 %v13634_v54 }
 0x5ef   :  { %12391 = vmatprep.subr.bf16.mxu0 %v13367_v3 }
 0x5f1   :  { %11288 = vmatmul.mubr.f32.vlgmr.msra.gmra.mrb[8].mxu0 %v2001_v59 }
 0x5f2   :  { %12393 = vmatpush3.bf16.msra.mxu0 %v13469_v13  ;;  %11298 = vmatprep.mubr.msk.f32.mxu0 %vm13368_vm2, %v13369_v15 }
 0x5f3   :  { %12394 = vmatprep.subr.bf16.mxu0 %v13367_v3 }
 0x5f6   :  { %12396 = vmatpush3.bf16.msra.mxu0 %v13484_v20 }
 0x5f7   :  { %12397 = vmatprep.subr.bf16.mxu0 %v13367_v3 }
 0x5f9   :  { %11299 = vmatmul.mubr.f32.vlgmr.msra.gmra.mrb[8].mxu0 %v2002_v61 }
 0x5fa   :  { %12399 = vmatpush3.bf16.msra.mxu0 %v13654_v57  ;;  %11309 = vmatprep.mubr.msk.f32.mxu0 %vm13368_vm2, %v13369_v15 }
 0x5fb   :  { %12400 = vmatprep.subr.bf16.mxu0 %v13367_v3 }
 0x5fe   :  { %12402 = vmatpush3.bf16.msra.mxu0 %v13666_v23 }
 0x5ff   :  { %12403 = vmatprep.subr.bf16.mxu0 %v13367_v3 }
 0x601   :  { %11310 = vmatmul.mubr.f32.vlgmr.msra.gmra.mrb[8].mxu0 %v2000_v58 }
 0x602   :  { %12405 = vmatpush3.bf16.msra.mxu0 %v13469_v13  ;;  %11320 = vmatprep.mubr.msk.f32.mxu0 %vm13368_vm2, %v13369_v15 }
 0x603   :  { %12406 = vmatprep.subr.bf16.mxu0 %v13367_v3 }
 0x606   :  { %12408 = vmatpush3.bf16.msra.mxu0 %v13484_v20 }
 0x607   :  { %12445 = vmatprep.subr.bf16.mxu0 %v13367_v3 }
 0x609   :  { %11321 = vmatmul.mubr.f32.vlgmr.msra.gmra.mrb[8].mxu0 %v2000_v58 }
 0x60a   :  { %12447 = vmatpush3.bf16.msra.mxu0 %v13469_v13  ;;  %11397 = vmatprep.mubr.msk.f32.mxu0 %vm13368_vm2, %v13369_v15 }
 0x60b   :  { %12448 = vmatprep.subr.bf16.mxu0 %v13367_v3 }
 0x60e   :  { %12450 = vmatpush3.bf16.msra.mxu0 %v13484_v20 }
 0x60f   :  { %12451 = vmatprep.subr.bf16.mxu0 %v13367_v3 }
 0x6dc   :  { %v2412_v0 = vpop.f32.mrb[8].mxu0 }
 0x6dd   :  { %v2423_v4 = vadd.f32 %v2412_v0, %v13742_v14  ;;  %v11322_v5 = vpop.f32.mrb[9].mxu0  ;;  %v2416_v9 = vadd.f32 %v2412_v0, %v1925_v8 }
 0x6df   :  { %2425 = vrot.lane.b32.xlu0 %v2423_v4, %s13370_s5  ;;  %v10410_v11 = vmul.f32 -1.442695, %v2416_v9 }
 0x6e1   :  { %13203 = vpow2.f32 %v10410_v11 }
 0x6e3   :  { %2446 = vperm.xlu0 %13190, %v2444_v7  }
 0x6eb   :  { %v13204_v12 = vpop.eup %13203 }
 0x6ec   :  { %v2420_v16 = vadd.f32 1.0, %v13204_v12 }
 0x6ee   :  { %13205 = vrcp.f32 %v2420_v16 }
 0x6f8   :  { %v13206_v18 = vpop.eup %13205 }
 0x6f9   :  { %v2435_v43 = vsub.f32 1.0, %v13206_v18  ;;  %v2441_v47 = vmul.f32 %v13206_v18, %v13833_v44 }
 0x751   :  { %v2426_v19 = vpop.permute.xlu0 %2425 }
 0x752   :  { %v2428_v25 = vmul.f32 %v13206_v18, %v2426_v19 }
 0x754   :  { %2430 = vrot.lane.b32.xlu1 %v2428_v25, %s13370_s5 }
 0x762   :  { %v13880_v46 = vpop.permute.xlu0 %2446 }
 0x763   :  { %vm2448_vm10 = vcmp.eq.s32.totalorder %v13880_v46, 1 }
 0x7c6   :  { %v2431_v10 = vpop.permute.xlu1 %2430 }
 0x7c7   :  { %v2433_v39 = vadd.f32 %v2431_v10, %v1925_v8 }
 0x7c9   :  { %13207 = vtanh.f32 %v2433_v39 }
 0x7d3   :  { %v13208_v41 = vpop.eup %13207 }
 0x7d4   :  { %2437 = vrot.lane.b32.xlu1 %v13208_v41, %s13372_s19  ;;  %v3510_v41 = vsel %vm3509_vm13, 1, %v13371_v1 }
 0x846   :  { %v2438_v45 = vpop.permute.xlu1 %2437 }
 0x847   :  { %v2440_v48 = vmul.f32 %v2438_v45, %v2435_v43  ;;  %v2991_v43 = vld [vmem:[#allocation2 + $0x20] sm:$0xff] }
 0x849   :  { %v13883_v50 = vadd.f32 %v2441_v47, %v2440_v48 }
 0x84b   :  { %v13890_v52 = vsel %vm2448_vm10, %v13883_v50, %v13833_v44 }
 0x84c   :  { %2460 = vrot.lane.b32.xlu0 %v13890_v52, %s13372_s19 }
 0x8be   :  { %v2461_v53 = vpop.permute.xlu0 %2460 }
 0x8bf   :  { %v2462_v55 = vsel %vm854_vm6, %v2461_v53, 0 }
 0x8c0   :  { %v2533_v56 = vand.u32 4294901760, %v2462_v55 }
 0x8c2   :  { %v2534_v21 = vsub.f32 %v2462_v55, %v2533_v56 }
 0x8c4   :  { %v2535_v22 = vand.u32 4294901760, %v2534_v21 }
 0x8c6   :  { %v2536_v24 = vsub.f32 %v2534_v21, %v2535_v22 }
 0x8c8   :  { %v2537_v27 = vand.u32 4294901760, %v2536_v24 }
 0x8ca   :  { %11332 = vmatmul.mubr.f32.vlgmr.msra.gmra.mrb[4].mxu1 %v2537_v27 }
 0x8cb   :  { %12417 = vmatpush3.bf16.msra.mxu1 %v13566_v60  ;;  %11342 = vmatprep.mubr.msk.f32.mxu1 %vm13368_vm2, %v13369_v15 }
 0x8cc   :  { %12418 = vmatprep.subr.bf16.mxu1 %v13367_v3 }
 0x8cf   :  { %12420 = vmatpush3.bf16.msra.mxu1 %v13581_v6 }
 0x8d0   :  { %12421 = vmatprep.subr.bf16.mxu1 %v13367_v3 }
 0x8d2   :  { %11343 = vmatmul.mubr.f32.vlgmr.msra.gmra.mrb[4].mxu1 %v2533_v56 }
 0x8d3   :  { %12423 = vmatpush3.bf16.msra.mxu1 %v13612_v28  ;;  %11353 = vmatprep.mubr.msk.f32.mxu1 %vm13368_vm2, %v13369_v15 }
 0x8d4   :  { %12424 = vmatprep.subr.bf16.mxu1 %v13367_v3 }
 0x8d7   :  { %12426 = vmatpush3.bf16.msra.mxu1 %v13634_v54 }
 0x8d8   :  { %12427 = vmatprep.subr.bf16.mxu1 %v13367_v3 }
 0x8da   :  { %11354 = vmatmul.mubr.f32.vlgmr.msra.gmra.mrb[4].mxu1 %v2534_v21 }
 0x8db   :  { %12429 = vmatpush3.bf16.msra.mxu1 %v13469_v13  ;;  %11364 = vmatprep.mubr.msk.f32.mxu1 %vm13368_vm2, %v13369_v15 }
 0x8dc   :  { %12430 = vmatprep.subr.bf16.mxu1 %v13367_v3 }
 0x8df   :  { %12432 = vmatpush3.bf16.msra.mxu1 %v13484_v20 }
 0x8e0   :  { %12433 = vmatprep.subr.bf16.mxu1 %v13367_v3 }
 0x8e2   :  { %11365 = vmatmul.mubr.f32.vlgmr.msra.gmra.mrb[4].mxu1 %v2535_v22 }
 0x8e3   :  { %12435 = vmatpush3.bf16.msra.mxu1 %v13654_v57  ;;  %11375 = vmatprep.mubr.msk.f32.mxu1 %vm13368_vm2, %v13369_v15 }
 0x8e4   :  { %12436 = vmatprep.subr.bf16.mxu1 %v13367_v3 }
 0x8e7   :  { %12438 = vmatpush3.bf16.msra.mxu1 %v13666_v23 }
 0x8e8   :  { %12439 = vmatprep.subr.bf16.mxu1 %v13367_v3 }
 0x8ea   :  { %11376 = vmatmul.mubr.f32.vlgmr.msra.gmra.mrb[4].mxu1 %v2533_v56 }
 0x8eb   :  { %12441 = vmatpush3.bf16.msra.mxu1 %v13469_v13  ;;  %11386 = vmatprep.mubr.msk.f32.mxu1 %vm13368_vm2, %v13369_v15 }
 0x8ec   :  { %12442 = vmatprep.subr.bf16.mxu1 %v13367_v3 }
 0x8ef   :  { %12444 = vmatpush3.bf16.msra.mxu1 %v13484_v20 }
 0x8f0   :  { %12481 = vmatprep.subr.bf16.mxu1 %v13367_v3 }
 0x8f2   :  { %11387 = vmatmul.mubr.f32.vlgmr.msra.gmra.mrb[4].mxu1 %v2533_v56 }
 0x8f3   :  { %12483 = vmatpush3.bf16.msra.mxu1 %v13469_v13  ;;  %11463 = vmatprep.mubr.msk.f32.mxu1 %vm13368_vm2, %v13369_v15 }
 0x8f4   :  { %12484 = vmatprep.subr.bf16.mxu1 %v13367_v3 }
 0x8f7   :  { %12486 = vmatpush3.bf16.msra.mxu1 %v13484_v20 }
 0x8f8   :  { %12487 = vmatprep.subr.bf16.mxu1 %v13367_v3 }
 0x9c5   :  { %v2945_v29 = vpop.f32.mrb[4].mxu1 }
 0x9c6   :  { %v2956_v30 = vadd.f32 %v2945_v29, %v13742_v14  ;;  %v11388_v31 = vpop.f32.mrb[5].mxu1  ;;  %v2949_v34 = vadd.f32 %v2945_v29, %v2458_v33 }
 0x9c8   :  { %2958 = vrot.lane.b32.xlu1 %v2956_v30, %s13370_s5  ;;  %v10411_v35 = vmul.f32 -1.442695, %v2949_v34 }
 0x9ca   :  { %13209 = vpow2.f32 %v10411_v35 }
 0x9cc   :  { %2979 = vperm.xlu1 %13189, %v2977_v32  }
 0x9d4   :  { %v13210_v37 = vpop.eup %13209 }
 0x9d5   :  { %v2953_v38 = vadd.f32 1.0, %v13210_v37 }
 0x9d7   :  { %13211 = vrcp.f32 %v2953_v38 }
 0x9e1   :  { %v13212_v40 = vpop.eup %13211 }
 0x9e2   :  { %v2968_v61 = vsub.f32 1.0, %v13212_v40  ;;  %v2974_v0 = vmul.f32 %v13212_v40, %v13890_v52 }
 0xa3a   :  { %v2959_v44 = vpop.permute.xlu1 %2958 }
 0xa3b   :  { %v2961_v49 = vmul.f32 %v13212_v40, %v2959_v44 }
 0xa3d   :  { %2963 = vrot.lane.b32.xlu0 %v2961_v49, %s13370_s5 }
 0xa4b   :  { %v13937_v63 = vpop.permute.xlu1 %2979 }
 0xa4c   :  { %vm2981_vm12 = vcmp.eq.s32.totalorder %v13937_v63, 1 }
 0xaaf   :  { %v2964_v51 = vpop.permute.xlu0 %2963 }
 0xab0   :  { %v2966_v58 = vadd.f32 %v2964_v51, %v2458_v33 }
 0xab2   :  { %13213 = vtanh.f32 %v2966_v58 }
 0xabc   :  { %v13214_v59 = vpop.eup %13213 }
 0xabd   :  { %2970 = vrot.lane.b32.xlu0 %v13214_v59, %s13372_s19 }
 0xb2f   :  { %v2971_v62 = vpop.permute.xlu0 %2970 }
 0xb30   :  { %v2973_v4 = vmul.f32 %v2971_v62, %v2968_v61  ;;  %v4043_v62 = vsel %vm4042_vm15, 1, %v13371_v1 }
 0xb32   :  { %v13940_v5 = vadd.f32 %v2974_v0, %v2973_v4  ;;  %v3524_v0 = vld [vmem:[#allocation2 + $0x28] sm:$0xff] }
 0xb34   :  { %v13947_v7 = vsel %vm2981_vm12, %v13940_v5, %v13890_v52 }
 0xb35   :  { %2993 = vrot.lane.b32.xlu1 %v13947_v7, %s13372_s19 }
 0xba7   :  { %v2994_v8 = vpop.permute.xlu1 %2993 }
 0xba8   :  { %v2995_v9 = vsel %vm854_vm6, %v2994_v8, 0 }
 0xba9   :  { %v3066_v11 = vand.u32 4294901760, %v2995_v9 }
 0xbab   :  { %v3067_v12 = vsub.f32 %v2995_v9, %v3066_v11 }
 0xbad   :  { %v3068_v16 = vand.u32 4294901760, %v3067_v12 }
 0xbaf   :  { %v3069_v18 = vsub.f32 %v3067_v12, %v3068_v16 }
 0xbb1   :  { %v3070_v19 = vand.u32 4294901760, %v3069_v18 }
 0xbb3   :  { %11398 = vmatmul.mubr.f32.vlgmr.msra.gmra.mrb[10].mxu0 %v3070_v19 }
 0xbb4   :  { %12453 = vmatpush3.bf16.msra.mxu0 %v13566_v60  ;;  %11408 = vmatprep.mubr.msk.f32.mxu0 %vm13368_vm2, %v13369_v15 }
 0xbb5   :  { %12454 = vmatprep.subr.bf16.mxu0 %v13367_v3 }
 0xbb8   :  { %12456 = vmatpush3.bf16.msra.mxu0 %v13581_v6 }
 0xbb9   :  { %12457 = vmatprep.subr.bf16.mxu0 %v13367_v3 }
 0xbbb   :  { %11409 = vmatmul.mubr.f32.vlgmr.msra.gmra.mrb[10].mxu0 %v3066_v11 }
 0xbbc   :  { %12459 = vmatpush3.bf16.msra.mxu0 %v13612_v28  ;;  %11419 = vmatprep.mubr.msk.f32.mxu0 %vm13368_vm2, %v13369_v15 }
 0xbbd   :  { %12460 = vmatprep.subr.bf16.mxu0 %v13367_v3 }
 0xbc0   :  { %12462 = vmatpush3.bf16.msra.mxu0 %v13634_v54 }
 0xbc1   :  { %12463 = vmatprep.subr.bf16.mxu0 %v13367_v3 }
 0xbc3   :  { %11420 = vmatmul.mubr.f32.vlgmr.msra.gmra.mrb[10].mxu0 %v3067_v12 }
 0xbc4   :  { %12465 = vmatpush3.bf16.msra.mxu0 %v13469_v13  ;;  %11430 = vmatprep.mubr.msk.f32.mxu0 %vm13368_vm2, %v13369_v15 }
 0xbc5   :  { %12466 = vmatprep.subr.bf16.mxu0 %v13367_v3 }
 0xbc8   :  { %12468 = vmatpush3.bf16.msra.mxu0 %v13484_v20 }
 0xbc9   :  { %12469 = vmatprep.subr.bf16.mxu0 %v13367_v3 }
 0xbcb   :  { %11431 = vmatmul.mubr.f32.vlgmr.msra.gmra.mrb[10].mxu0 %v3068_v16 }
 0xbcc   :  { %12471 = vmatpush3.bf16.msra.mxu0 %v13654_v57  ;;  %11441 = vmatprep.mubr.msk.f32.mxu0 %vm13368_vm2, %v13369_v15 }
 0xbcd   :  { %12472 = vmatprep.subr.bf16.mxu0 %v13367_v3 }
 0xbd0   :  { %12474 = vmatpush3.bf16.msra.mxu0 %v13666_v23 }
 0xbd1   :  { %12475 = vmatprep.subr.bf16.mxu0 %v13367_v3 }
 0xbd3   :  { %11442 = vmatmul.mubr.f32.vlgmr.msra.gmra.mrb[10].mxu0 %v3066_v11 }
 0xbd4   :  { %12477 = vmatpush3.bf16.msra.mxu0 %v13469_v13  ;;  %11452 = vmatprep.mubr.msk.f32.mxu0 %vm13368_vm2, %v13369_v15 }
 0xbd5   :  { %12478 = vmatprep.subr.bf16.mxu0 %v13367_v3 }
 0xbd8   :  { %12480 = vmatpush3.bf16.msra.mxu0 %v13484_v20 }
 0xbd9   :  { %12517 = vmatprep.subr.bf16.mxu0 %v13367_v3 }
 0xbdb   :  { %11453 = vmatmul.mubr.f32.vlgmr.msra.gmra.mrb[10].mxu0 %v3066_v11 }
 0xbdc   :  { %12519 = vmatpush3.bf16.msra.mxu0 %v13469_v13  ;;  %11529 = vmatprep.mubr.msk.f32.mxu0 %vm13368_vm2, %v13369_v15 }
 0xbdd   :  { %12520 = vmatprep.subr.bf16.mxu0 %v13367_v3 }
 0xbe0   :  { %12522 = vmatpush3.bf16.msra.mxu0 %v13484_v20 }
 0xbe1   :  { %12523 = vmatprep.subr.bf16.mxu0 %v13367_v3 }
 0xcae   :  { %v3478_v25 = vpop.f32.mrb[10].mxu0 }
 0xcaf   :  { %v3489_v10 = vadd.f32 %v3478_v25, %v13742_v14  ;;  %v11454_v39 = vpop.f32.mrb[11].mxu0  ;;  %v3482_v45 = vadd.f32 %v3478_v25, %v2991_v43 }
 0xcb1   :  { %3491 = vrot.lane.b32.xlu0 %v3489_v10, %s13370_s5  ;;  %v10412_v47 = vmul.f32 -1.442695, %v3482_v45 }
 0xcb3   :  { %13215 = vpow2.f32 %v10412_v47 }
 0xcb5   :  { %3512 = vperm.xlu0 %13190, %v3510_v41  }
 0xcbd   :  { %v13216_v48 = vpop.eup %13215 }
 0xcbe   :  { %v3486_v52 = vadd.f32 1.0, %v13216_v48 }
 0xcc0   :  { %13217 = vrcp.f32 %v3486_v52 }
 0xcca   :  { %v13218_v53 = vpop.eup %13217 }
 0xccb   :  { %v3501_v27 = vsub.f32 1.0, %v13218_v53  ;;  %v3507_v31 = vmul.f32 %v13218_v53, %v13947_v7 }
 0xd23   :  { %v3492_v55 = vpop.permute.xlu0 %3491 }
 0xd24   :  { %v3494_v56 = vmul.f32 %v13218_v53, %v3492_v55 }
 0xd26   :  { %3496 = vrot.lane.b32.xlu1 %v3494_v56, %s13370_s5 }
 0xd34   :  { %v13994_v30 = vpop.permute.xlu0 %3512 }
 0xd35   :  { %vm3514_vm14 = vcmp.eq.s32.totalorder %v13994_v30, 1  ;;  %v10426_v30 = vld [vmem:[%s14977_s10] ss:$0 sm:$0xff] }
 0xd98   :  { %v3497_v21 = vpop.permute.xlu1 %3496 }
 0xd99   :  { %v3499_v22 = vadd.f32 %v3497_v21, %v2991_v43 }
 0xd9b   :  { %13219 = vtanh.f32 %v3499_v22 }
 0xda5   :  { %v13220_v24 = vpop.eup %13219 }
 0xda6   :  { %3503 = vrot.lane.b32.xlu1 %v13220_v24, %s13372_s19 }
 0xe18   :  { %v3504_v29 = vpop.permute.xlu1 %3503 }
 0xe19   :  { %v3506_v32 = vmul.f32 %v3504_v29, %v3501_v27 }
 0xe1b   :  { %v13997_v33 = vadd.f32 %v3507_v31, %v3506_v32  ;;  %v4576_v32 = vsel %vm4575_vm1, 1, %v13371_v1 }
 0xe1d   :  { %v14004_v34 = vsel %vm3514_vm14, %v13997_v33, %v13947_v7 }
 0xe1e   :  { %3526 = vrot.lane.b32.xlu0 %v14004_v34, %s13372_s19 }
 0xe90   :  { %v3527_v35 = vpop.permute.xlu0 %3526 }
 0xe91   :  { %v3528_v37 = vsel %vm854_vm6, %v3527_v35, 0 }
 0xe92   :  { %v3599_v38 = vand.u32 4294901760, %v3528_v37 }
 0xe94   :  { %v3600_v40 = vsub.f32 %v3528_v37, %v3599_v38 }
 0xe96   :  { %v3601_v44 = vand.u32 4294901760, %v3600_v40 }
 0xe98   :  { %v3602_v49 = vsub.f32 %v3600_v40, %v3601_v44 }
 0xe9a   :  { %v3603_v51 = vand.u32 4294901760, %v3602_v49 }
 0xe9c   :  { %11464 = vmatmul.mubr.f32.vlgmr.msra.gmra.mrb[6].mxu1 %v3603_v51 }
 0xe9d   :  { %12489 = vmatpush3.bf16.msra.mxu1 %v13566_v60  ;;  %11474 = vmatprep.mubr.msk.f32.mxu1 %vm13368_vm2, %v13369_v15 }
 0xe9e   :  { %12490 = vmatprep.subr.bf16.mxu1 %v13367_v3 }
 0xea1   :  { %12492 = vmatpush3.bf16.msra.mxu1 %v13581_v6 }
 0xea2   :  { %12493 = vmatprep.subr.bf16.mxu1 %v13367_v3 }
 0xea4   :  { %11475 = vmatmul.mubr.f32.vlgmr.msra.gmra.mrb[6].mxu1 %v3599_v38 }
 0xea5   :  { %12495 = vmatpush3.bf16.msra.mxu1 %v13612_v28  ;;  %11485 = vmatprep.mubr.msk.f32.mxu1 %vm13368_vm2, %v13369_v15 }
 0xea6   :  { %12496 = vmatprep.subr.bf16.mxu1 %v13367_v3 }
 0xea9   :  { %12498 = vmatpush3.bf16.msra.mxu1 %v13634_v54 }
 0xeaa   :  { %12499 = vmatprep.subr.bf16.mxu1 %v13367_v3 }
 0xeac   :  { %11486 = vmatmul.mubr.f32.vlgmr.msra.gmra.mrb[6].mxu1 %v3600_v40 }
 0xead   :  { %12501 = vmatpush3.bf16.msra.mxu1 %v13469_v13  ;;  %11496 = vmatprep.mubr.msk.f32.mxu1 %vm13368_vm2, %v13369_v15 }
 0xeae   :  { %12502 = vmatprep.subr.bf16.mxu1 %v13367_v3 }
 0xeb1   :  { %12504 = vmatpush3.bf16.msra.mxu1 %v13484_v20 }
 0xeb2   :  { %12505 = vmatprep.subr.bf16.mxu1 %v13367_v3 }
 0xeb4   :  { %11497 = vmatmul.mubr.f32.vlgmr.msra.gmra.mrb[6].mxu1 %v3601_v44 }
 0xeb5   :  { %12507 = vmatpush3.bf16.msra.mxu1 %v13654_v57  ;;  %11507 = vmatprep.mubr.msk.f32.mxu1 %vm13368_vm2, %v13369_v15 }
 0xeb6   :  { %12508 = vmatprep.subr.bf16.mxu1 %v13367_v3 }
 0xeb9   :  { %12510 = vmatpush3.bf16.msra.mxu1 %v13666_v23 }
 0xeba   :  { %12511 = vmatprep.subr.bf16.mxu1 %v13367_v3 }
 0xebc   :  { %11508 = vmatmul.mubr.f32.vlgmr.msra.gmra.mrb[6].mxu1 %v3599_v38 }
 0xebd   :  { %12513 = vmatpush3.bf16.msra.mxu1 %v13469_v13  ;;  %11518 = vmatprep.mubr.msk.f32.mxu1 %vm13368_vm2, %v13369_v15 }
 0xebe   :  { %12514 = vmatprep.subr.bf16.mxu1 %v13367_v3 }
 0xec1   :  { %12516 = vmatpush3.bf16.msra.mxu1 %v13484_v20 }
 0xec2   :  { %12553 = vmatprep.subr.bf16.mxu1 %v13367_v3 }
 0xec4   :  { %11519 = vmatmul.mubr.f32.vlgmr.msra.gmra.mrb[6].mxu1 %v3599_v38 }
 0xec5   :  { %12555 = vmatpush3.bf16.msra.mxu1 %v13469_v13  ;;  %11595 = vmatprep.mubr.msk.f32.mxu1 %vm13368_vm2, %v13369_v15 }
 0xec6   :  { %12556 = vmatprep.subr.bf16.mxu1 %v13367_v3 }
 0xec9   :  { %12558 = vmatpush3.bf16.msra.mxu1 %v13484_v20 }
 0xeca   :  { %12559 = vmatprep.subr.bf16.mxu1 %v13367_v3 }
 0xf97   :  { %v4011_v58 = vpop.f32.mrb[6].mxu1 }
 0xf98   :  { %v4022_v59 = vadd.f32 %v4011_v58, %v13742_v14  ;;  %v11520_v61 = vpop.f32.mrb[7].mxu1  ;;  %v4015_v4 = vadd.f32 %v4011_v58, %v3524_v0 }
 0xf9a   :  { %4024 = vrot.lane.b32.xlu1 %v4022_v59, %s13370_s5  ;;  %v10413_v7 = vmul.f32 -1.442695, %v4015_v4 }
 0xf9c   :  { %13221 = vpow2.f32 %v10413_v7 }
 0xf9e   :  { %4045 = vperm.xlu1 %13189, %v4043_v62  }
 0xfa6   :  { %v13222_v8 = vpop.eup %13221 }
 0xfa7   :  { %v4019_v9 = vadd.f32 1.0, %v13222_v8 }
 0xfa9   :  { %13223 = vrcp.f32 %v4019_v9 }
 0xfb3   :  { %v13224_v11 = vpop.eup %13223 }
 0xfb4   :  { %v4034_v10 = vsub.f32 1.0, %v13224_v11  ;;  %v4040_v43 = vmul.f32 %v13224_v11, %v14004_v34 }
0x100c   :  { %v4025_v12 = vpop.permute.xlu1 %4024 }
0x100d   :  { %v4027_v16 = vmul.f32 %v13224_v11, %v4025_v12 }
0x100f   :  { %4029 = vrot.lane.b32.xlu0 %v4027_v16, %s13370_s5 }
0x101d   :  { %v14051_v41 = vpop.permute.xlu1 %4045 }
0x101e   :  { %vm4047_vm0 = vcmp.eq.s32.totalorder %v14051_v41, 1 }
0x1081   :  { %v4030_v18 = vpop.permute.xlu0 %4029 }
0x1082   :  { %v4032_v19 = vadd.f32 %v4030_v18, %v3524_v0 }
0x1084   :  { %13225 = vtanh.f32 %v4032_v19 }
0x108e   :  { %v13226_v25 = vpop.eup %13225 }
0x108f   :  { %4036 = vrot.lane.b32.xlu0 %v13226_v25, %s13372_s19 }
0x1101   :  { %v4037_v39 = vpop.permute.xlu0 %4036 }
0x1102   :  { %v4039_v45 = vmul.f32 %v4037_v39, %v4034_v10 }
0x1104   :  { %v14054_v47 = vadd.f32 %v4040_v43, %v4039_v45 }
0x1106   :  { %v14061_v48 = vsel %vm4047_vm0, %v14054_v47, %v14004_v34  ;;  %v4057_v34 = vld [vmem:[#allocation2 + $0x30] sm:$0xff] }
0x1107   :  { %4059 = vrot.lane.b32.xlu1 %v14061_v48, %s13372_s19 }
0x1179   :  { %v4060_v52 = vpop.permute.xlu1 %4059 }
0x117a   :  { %v4061_v53 = vsel %vm854_vm6, %v4060_v52, 0 }
0x117b   :  { %v4132_v55 = vand.u32 4294901760, %v4061_v53 }
0x117d   :  { %v4133_v56 = vsub.f32 %v4061_v53, %v4132_v55 }
0x117f   :  { %v4134_v21 = vand.u32 4294901760, %v4133_v56 }
0x1181   :  { %v4135_v22 = vsub.f32 %v4133_v56, %v4134_v21 }
0x1183   :  { %v4136_v24 = vand.u32 4294901760, %v4135_v22 }
0x1185   :  { %11530 = vmatmul.mubr.f32.vlgmr.msra.gmra.mrb[12].mxu0 %v4136_v24 }
0x1186   :  { %12525 = vmatpush3.bf16.msra.mxu0 %v13566_v60  ;;  %11540 = vmatprep.mubr.msk.f32.mxu0 %vm13368_vm2, %v13369_v15 }
0x1187   :  { %12526 = vmatprep.subr.bf16.mxu0 %v13367_v3 }
0x118a   :  { %12528 = vmatpush3.bf16.msra.mxu0 %v13581_v6 }
0x118b   :  { %12529 = vmatprep.subr.bf16.mxu0 %v13367_v3 }
0x118d   :  { %11541 = vmatmul.mubr.f32.vlgmr.msra.gmra.mrb[12].mxu0 %v4132_v55 }
0x118e   :  { %12531 = vmatpush3.bf16.msra.mxu0 %v13612_v28  ;;  %11551 = vmatprep.mubr.msk.f32.mxu0 %vm13368_vm2, %v13369_v15 }
0x118f   :  { %12532 = vmatprep.subr.bf16.mxu0 %v13367_v3 }
0x1192   :  { %12534 = vmatpush3.bf16.msra.mxu0 %v13634_v54 }
0x1193   :  { %12535 = vmatprep.subr.bf16.mxu0 %v13367_v3 }
0x1195   :  { %11552 = vmatmul.mubr.f32.vlgmr.msra.gmra.mrb[12].mxu0 %v4133_v56 }
0x1196   :  { %12537 = vmatpush3.bf16.msra.mxu0 %v13469_v13  ;;  %11562 = vmatprep.mubr.msk.f32.mxu0 %vm13368_vm2, %v13369_v15 }
0x1197   :  { %12538 = vmatprep.subr.bf16.mxu0 %v13367_v3 }
0x119a   :  { %12540 = vmatpush3.bf16.msra.mxu0 %v13484_v20 }
0x119b   :  { %12541 = vmatprep.subr.bf16.mxu0 %v13367_v3 }
0x119d   :  { %11563 = vmatmul.mubr.f32.vlgmr.msra.gmra.mrb[12].mxu0 %v4134_v21 }
0x119e   :  { %12543 = vmatpush3.bf16.msra.mxu0 %v13654_v57  ;;  %11573 = vmatprep.mubr.msk.f32.mxu0 %vm13368_vm2, %v13369_v15 }
0x119f   :  { %12544 = vmatprep.subr.bf16.mxu0 %v13367_v3 }
0x11a2   :  { %12546 = vmatpush3.bf16.msra.mxu0 %v13666_v23 }
0x11a3   :  { %12547 = vmatprep.subr.bf16.mxu0 %v13367_v3 }
0x11a5   :  { %11574 = vmatmul.mubr.f32.vlgmr.msra.gmra.mrb[12].mxu0 %v4132_v55 }
0x11a6   :  { %12549 = vmatpush3.bf16.msra.mxu0 %v13469_v13  ;;  %11584 = vmatprep.mubr.msk.f32.mxu0 %vm13368_vm2, %v13369_v15 }
0x11a7   :  { %12550 = vmatprep.subr.bf16.mxu0 %v13367_v3 }
0x11aa   :  { %12552 = vmatpush3.bf16.msra.mxu0 %v13484_v20 }
0x11ad   :  { %11585 = vmatmul.mubr.f32.vlgmr.msra.gmra.mrb[12].mxu0 %v4132_v55 }
0x1280   :  { %v4544_v27 = vpop.f32.mrb[12].mxu0 }
0x1281   :  { %v4555_v29 = vadd.f32 %v4544_v27, %v13742_v14  ;;  %v11586_v31 = vpop.f32.mrb[13].mxu0  ;;  %v4548_v35 = vadd.f32 %v4544_v27, %v4057_v34 }
0x1283   :  { %4557 = vrot.lane.b32.xlu0 %v4555_v29, %s13370_s5  ;;  %v10414_v37 = vmul.f32 -1.442695, %v4548_v35 }
0x1285   :  { %13227 = vpow2.f32 %v10414_v37 }
0x1287   :  { %4578 = vperm.xlu0 %13190, %v4576_v32  }
0x128f   :  { %v13228_v38 = vpop.eup %13227 }
0x1290   :  { %v4552_v40 = vadd.f32 1.0, %v13228_v38  ;;  %v14187_v38 = vld [vmem:[%s14973_s6] sm:$0xff] }
0x1292   :  { %13229 = vrcp.f32 %v4552_v40  ;;  %v14192_v40 = vld [vmem:[%s14973_s6 + $0x8] sm:$0xff] }
0x129c   :  { %v13230_v44 = vpop.eup %13229 }
0x129d   :  { %v4567_v62 = vsub.f32 1.0, %v13230_v44  ;;  %v4573_v7 = vmul.f32 %v13230_v44, %v14061_v48 }
0x12f5   :  { %v4558_v49 = vpop.permute.xlu0 %4557 }
0x12f6   :  { %v4560_v51 = vmul.f32 %v13230_v44, %v4558_v49  ;;  %v14197_v44 = vld [vmem:[%s14973_s6 + $0x10] sm:$0xff]  ;;  %v5165_v49 = vand.u32 4294901760, %v14187_v38 }
0x12f8   :  { %4562 = vrot.lane.b32.xlu1 %v4560_v51, %s13370_s5  ;;  %v5168_v51 = vand.u32 4294901760, %v14192_v40 }
0x1306   :  { %v14101_v4 = vpop.permute.xlu0 %4578 }
0x1307   :  { %vm4580_vm4 = vcmp.eq.s32.totalorder %v14101_v4, 1 }
0x136a   :  { %v4563_v58 = vpop.permute.xlu1 %4562 }
0x136b   :  { %v4565_v59 = vadd.f32 %v4563_v58, %v4057_v34  ;;  %v14205_v58 = vld [vmem:[%s14973_s6 + $0x18] sm:$0xff] }
0x136d   :  { %13231 = vtanh.f32 %v4565_v59  ;;  %v5171_v59 = vand.u32 4294901760, %v14197_v44 }
0x1377   :  { %v13232_v61 = vpop.eup %13231 }
0x1378   :  { %4569 = vrot.lane.b32.xlu1 %v13232_v61, %s13372_s19  ;;  %v5174_v61 = vand.u32 4294901760, %v14205_v58 }
0x13ea   :  { %v4570_v0 = vpop.permute.xlu1 %4569 }
0x13eb   :  { %v4572_v8 = vmul.f32 %v4570_v0, %v4567_v62  ;;  %v14213_v62 = vpack.c.bf16 %v5168_v51, %v5165_v49  ;;  %v1916_v0 = vsel %vm1915_vm8, %v13827_v42, -1.0  ;;  %v4048_v42 = vsel %vm4047_vm0, %v14054_v47, -1.0  ;;  %v5961_v47 = vld [vmem:[%s14974_s7 + $0x18] sm:$0xff] }
0x13ed   :  { %v4574_v9 = vadd.f32 %v4573_v7, %v4572_v8  ;;  %v14222_v7 = vpack.c.bf16 %v5174_v61, %v5171_v59  ;;  %12590 = vmatprep.subr.bf16.mxu0 %v14213_v62  ;;  %v2982_v8 = vsel %vm2981_vm12, %v13940_v5, -1.0  ;;  %v5960_v5 = vld [vmem:[%s14974_s7 + $0x10] sm:$0xff] }
0x13ee   :  { %12592 = vmatpush3.bf16.msra.mxu0 %v14213_v62 }
0x13ef   :  { %v14108_v11 = vsel %vm4580_vm4, %v4574_v9, %v14061_v48  ;;  %12594 = vmatprep.subr.bf16.mxu0 %v14222_v7 }
0x13f0   :  { %4592 = vrot.lane.b32.xlu0 %v14108_v11, %s13372_s19 }
0x13f2   :  { %12596 = vmatpush3.bf16.msra.mxu0 %v14222_v7 }
0x1462   :  { %v4593_v12 = vpop.permute.xlu0 %4592 }
0x1463   :  { %v4594_v16 = vsel %vm854_vm6, %v4593_v12, 0  ;;  %v5959_v12 = vld [vmem:[%s14974_s7 + $0x8] sm:$0xff] }
0x1464   :  { %v4665_v18 = vand.u32 4294901760, %v4594_v16 }
0x1466   :  { %v4666_v19 = vsub.f32 %v4594_v16, %v4665_v18 }
0x1468   :  { %v4667_v25 = vand.u32 4294901760, %v4666_v19 }
0x146a   :  { %v4668_v10 = vsub.f32 %v4666_v19, %v4667_v25 }
0x146c   :  { %v4669_v39 = vand.u32 4294901760, %v4668_v10 }
0x146e   :  { %11596 = vmatmul.mubr.f32.vlgmr.msra.gmra.mrb[8].mxu1 %v4669_v39 }
0x146f   :  { %12561 = vmatpush3.bf16.msra.mxu1 %v13566_v60  ;;  %11606 = vmatprep.mubr.msk.f32.mxu1 %vm13368_vm2, %v13369_v15 }
0x1470   :  { %12562 = vmatprep.subr.bf16.mxu1 %v13367_v3 }
0x1473   :  { %12564 = vmatpush3.bf16.msra.mxu1 %v13581_v6 }
0x1474   :  { %12565 = vmatprep.subr.bf16.mxu1 %v13367_v3 }
0x1476   :  { %11607 = vmatmul.mubr.f32.vlgmr.msra.gmra.mrb[8].mxu1 %v4665_v18 }
0x1477   :  { %12567 = vmatpush3.bf16.msra.mxu1 %v13612_v28  ;;  %11617 = vmatprep.mubr.msk.f32.mxu1 %vm13368_vm2, %v13369_v15 }
0x1478   :  { %12568 = vmatprep.subr.bf16.mxu1 %v13367_v3 }
0x147b   :  { %12570 = vmatpush3.bf16.msra.mxu1 %v13634_v54  ;;  %v2449_v54 = vsel %vm2448_vm10, %v13883_v50, -1.0 }
0x147c   :  { %12571 = vmatprep.subr.bf16.mxu1 %v13367_v3 }
0x147e   :  { %11618 = vmatmul.mubr.f32.vlgmr.msra.gmra.mrb[8].mxu1 %v4666_v19  ;;  %v5971_v19 = vand.u32 4294901760, %v5960_v5 }
0x147f   :  { %12573 = vmatpush3.bf16.msra.mxu1 %v13469_v13  ;;  %11628 = vmatprep.mubr.msk.f32.mxu1 %vm13368_vm2, %v13369_v15 }
0x1480   :  { %12574 = vmatprep.subr.bf16.mxu1 %v13367_v3 }
0x1483   :  { %12576 = vmatpush3.bf16.msra.mxu1 %v13484_v20 }
0x1484   :  { %12577 = vmatprep.subr.bf16.mxu1 %v13367_v3 }
0x1486   :  { %11629 = vmatmul.mubr.f32.vlgmr.msra.gmra.mrb[8].mxu1 %v4667_v25  ;;  %v5974_v25 = vand.u32 4294901760, %v5961_v47 }
0x1487   :  { %12579 = vmatpush3.bf16.msra.mxu1 %v13654_v57  ;;  %11639 = vmatprep.mubr.msk.f32.mxu1 %vm13368_vm2, %v13369_v15  ;;  %v3515_v57 = vsel %vm3514_vm14, %v13997_v33, -1.0 }
0x1488   :  { %12580 = vmatprep.subr.bf16.mxu1 %v13367_v3 }
0x148b   :  { %12582 = vmatpush3.bf16.msra.mxu1 %v13666_v23  ;;  %v4581_v23 = vsel %vm4580_vm4, %v4574_v9, -1.0  ;;  %v5958_v9 = vld [vmem:[%s14974_s7] sm:$0xff] }
0x148c   :  { %12583 = vmatprep.subr.bf16.mxu1 %v13367_v3  ;;  %v5965_v16 = vand.u32 4294901760, %v5958_v9 }
0x148e   :  { %11640 = vmatmul.mubr.f32.vlgmr.msra.gmra.mrb[8].mxu1 %v4665_v18  ;;  %v6045_v39 = vsub.f32 %v5958_v9, %v5965_v16 }
0x148f   :  { %12585 = vmatpush3.bf16.msra.mxu1 %v13469_v13  ;;  %11650 = vmatprep.mubr.msk.f32.mxu1 %vm13368_vm2, %v13369_v15  ;;  %v5109_v13 = vsel %vm5108_vm7, 1, %v13371_v1 }
0x1490   :  { %12586 = vmatprep.subr.bf16.mxu1 %v13367_v3 }
0x1493   :  { %12588 = vmatpush3.bf16.msra.mxu1 %v13484_v20  ;;  %v1384_v20 = vsel %vm1383_vm5, %v13771_v26, -1.0 }
0x1494   :  { %12637 = vmatprep.subr.bf16.mxu1 %v13367_v3 }
0x1496   :  { %11651 = vmatmul.mubr.f32.vlgmr.msra.gmra.mrb[8].mxu1 %v4665_v18  ;;  %v5968_v18 = vand.u32 4294901760, %v5959_v12 }
0x1497   :  { %11781 = vmatprep.mubr.msk.f32.mxu1 %vm13368_vm2, %v13369_v15 }
0x1498   :  { %v14249_v10 = vpack.c.bf16 %v5968_v18, %v5965_v16 }
0x149a   :  { %12639 = vmatpush3.bf16.msra.mxu1 %v14249_v10 }
0x149b   :  { %12640 = vmatprep.subr.bf16.mxu1 %v13367_v3 }
0x1569   :  { %v5077_v60 = vpop.f32.mrb[8].mxu1 }
0x156a   :  { %v5088_v6 = vadd.f32 %v5077_v60, %v13742_v14  ;;  %v11652_v28 = vpop.f32.mrb[9].mxu1  ;;  %v4590_v14 = vld [vmem:[#allocation2 + $0x38] sm:$0xff] }
0x156b   :  { %v5081_v1 = vadd.f32 %v5077_v60, %v4590_v14  ;;  %v6052_v60 = vsub.f32 %v5959_v12, %v5968_v18  ;;  %v6066_v28 = vsub.f32 %v5961_v47, %v5974_v25 }
0x156c   :  { %5090 = vrot.lane.b32.xlu1 %v5088_v6, %s13370_s5  ;;  %v6059_v6 = vsub.f32 %v5960_v5, %v5971_v19 }
0x156d   :  { %v10415_v2 = vmul.f32 -1.442695, %v5081_v1 }
0x156f   :  { %13233 = vpow2.f32 %v10415_v2 }
0x1570   :  { %5111 = vperm.xlu1 %13189, %v5109_v13   ;;  %v14252_v13 = vpack.c.bf16 %v5974_v25, %v5971_v19 }
0x1572   :  { %12642 = vmatpush3.bf16.msra.mxu1 %v14252_v13 }
0x1573   :  { %12643 = vmatprep.subr.bf16.mxu1 %v13367_v3 }
0x1574   :  { %1386 = vrot.lane.b32.xlu1 %v1384_v20, %s13372_s19  ;;  %v6046_v20 = vand.u32 4294901760, %v6045_v39 }
0x1575   :  { %11782 = vmatmul.mubr.f32.vlgmr.msra.gmra.mrb[10].mxu1 %v13369_v15 }
0x1576   :  { %11792 = vmatprep.mubr.msk.f32.mxu1 %vm13368_vm2, %v13369_v15 }
0x1578   :  { %2451 = vrot.lane.b32.xlu1 %v2449_v54, %s13372_s19  ;;  %v6053_v54 = vand.u32 4294901760, %v6052_v60 }
0x1579   :  { %v13234_v26 = vpop.eup %13233 }
0x157a   :  { %v5085_v43 = vadd.f32 1.0, %v13234_v26  ;;  %v6054_v1 = vsub.f32 %v6052_v60, %v6053_v54 }
0x157c   :  { %3517 = vrot.lane.b32.xlu1 %v3515_v57, %s13372_s19  ;;  %13235 = vrcp.f32 %v5085_v43  ;;  %v6060_v57 = vand.u32 4294901760, %v6059_v6 }
0x157e   :  { %v6061_v2 = vsub.f32 %v6059_v6, %v6060_v57 }
0x1580   :  { %4583 = vrot.lane.b32.xlu1 %v4581_v23, %s13372_s19  ;;  %v6067_v23 = vand.u32 4294901760, %v6066_v28 }
0x1582   :  { %v6068_v26 = vsub.f32 %v6066_v28, %v6067_v23 }
0x1586   :  { %v14164_v50 = vpop.eup %13235 }
0x15de   :  { %v5091_v45 = vpop.permute.xlu1 %5090 }
0x15df   :  { %v5093_v48 = vmul.f32 %v14164_v50, %v5091_v45  ;;  %v6055_v45 = vand.u32 4294901760, %v6054_v1 }
0x15e1   :  { %5095 = vrot.lane.b32.xlu0 %v5093_v48, %s13370_s5  ;;  %v6062_v48 = vand.u32 4294901760, %v6061_v2 }
0x15ef   :  { %v14168_v33 = vpop.permute.xlu1 %5111 }
0x15f0   :  { %vm5113_vm9 = vcmp.eq.s32.totalorder %v14168_v33, 1 }
0x15f3   :  { %v1387_v52 = vpop.permute.xlu1 %1386 }
0x15f4   :  { %1389 = vst.msk [vmem:[#allocation3] sm:$0xff] %vm854_vm6, %v1387_v52  ;;  %v6069_v52 = vand.u32 4294901760, %v6068_v26 }
0x15f7   :  { %v2452_v53 = vpop.permute.xlu1 %2451 }
0x15f8   :  { %2455 = vst.msk [vmem:[#allocation3 + $0x10] sm:$0xff] %vm854_vm6, %v2452_v53 }
0x15fb   :  { %v3518_v55 = vpop.permute.xlu1 %3517  ;;  %v5121_v56 = vld [vmem:[#allocation3] sm:$0xff] }
0x15fc   :  { %3521 = vst.msk [vmem:[#allocation3 + $0x20] sm:$0xff] %vm854_vm6, %v3518_v55  ;;  %v5141_v21 = vsel %vm854_vm6, %v5121_v56, 0  ;;  %v14261_v55 = vpack.c.bf16 %v6069_v52, %v6062_v48  ;;  %v14267_v56 = vpack.c.bf16 %v6052_v60, %v6045_v39 }
0x15fd   :  { %v14174_v22 = vand.u32 4294901760, %v5141_v21 }
0x15ff   :  { %v4584_v24 = vpop.permute.xlu1 %4583  ;;  %v14177_v27 = vsub.f32 %v5141_v21, %v14174_v22  ;;  %v14272_v21 = vpack.c.bf16 %v6066_v28, %v6059_v6  ;;  %v5123_v12 = vld [vmem:[#allocation3 + $0x10] sm:$0xff] }
0x1600   :  { %4587 = vst.msk [vmem:[#allocation3 + $0x30] sm:$0xff] %vm854_vm6, %v4584_v24  ;;  %v14285_v24 = vpack.c.bf16 %v6053_v54, %v6046_v20  ;;  %v5147_v47 = vsel %vm854_vm6, %v5123_v12, 0 }
0x1601   :  { %v5235_v29 = vand.u32 4294901760, %v14177_v27 }
0x1603   :  { %v5236_v31 = vsub.f32 %v14177_v27, %v5235_v29  ;;  %v5125_v25 = vld [vmem:[#allocation3 + $0x20] sm:$0xff] }
0x1604   :  { %v5153_v6 = vsel %vm854_vm6, %v5125_v25, 0 }
0x1605   :  { %v5237_v32 = vand.u32 4294901760, %v5236_v31  ;;  %v14290_v31 = vpack.c.bf16 %v6067_v23, %v6060_v57 }
0x1607   :  { %11661 = vmatprep.mubr.f32.mxu0 %v5237_v32  ;;  %v14314_v32 = vsub.f32 %v14187_v38, %v5165_v49  ;;  %v5100_v38 = vsub.f32 1.0, %v14164_v50  ;;  %v5127_v28 = vld [vmem:[#allocation3 + $0x30] sm:$0xff] }
0x1653   :  { %v5096_v34 = vpop.permute.xlu0 %5095 }
0x1654   :  { %v5098_v35 = vadd.f32 %v5096_v34, %v4590_v14  ;;  %v6047_v14 = vsub.f32 %v6045_v39, %v6046_v20  ;;  %v14319_v34 = vsub.f32 %v14192_v40, %v5168_v51  ;;  %v5106_v40 = vmul.f32 %v14164_v50, %v14108_v11 }
0x1655   :  { %v14341_v11 = vsub.f32 %v14197_v44, %v5171_v59  ;;  %v14346_v50 = vsub.f32 %v14205_v58, %v5174_v61  ;;  %v14348_v39 = vand.u32 4294901760, %v5147_v47  ;;  %v14357_v59 = vand.u32 4294901760, %v5153_v6 }
0x1656   :  { %13237 = vtanh.f32 %v5098_v35  ;;  %v6048_v43 = vand.u32 4294901760, %v6047_v14  ;;  %v5316_v35 = vand.u32 4294901760, %v14314_v32  ;;  %v5159_v61 = vsel %vm854_vm6, %v5127_v28, 0 }
0x1657   :  { %v5330_v20 = vand.u32 4294901760, %v14341_v11  ;;  %v5337_v54 = vand.u32 4294901760, %v14346_v50  ;;  %v14355_v44 = vsub.f32 %v5147_v47, %v14348_v39 }
0x1658   :  { %v14257_v53 = vpack.c.bf16 %v6055_v45, %v6048_v43  ;;  %v14368_v43 = vsub.f32 %v5153_v6, %v14357_v59  ;;  %v14370_v45 = vand.u32 4294901760, %v5159_v61 }
0x1659   :  { %v5331_v1 = vsub.f32 %v14341_v11, %v5330_v20  ;;  %v5338_v2 = vsub.f32 %v14346_v50, %v5337_v54  ;;  %v5255_v26 = vand.u32 4294901760, %v14355_v44 }
0x165a   :  { %12645 = vmatpush3.bf16.msra.mxu1 %v14257_v53 }
0x165b   :  { %12646 = vmatprep.subr.bf16.mxu1 %v13367_v3 }
0x165e   :  { %12648 = vmatpush3.bf16.msra.mxu1 %v14261_v55 }
0x165f   :  { %12649 = vmatprep.subr.bf16.mxu1 %v13367_v3 }
0x1660   :  { %v13238_v37 = vpop.eup %13237 }
0x1661   :  { %5102 = vrot.lane.b32.xlu0 %v13238_v37, %s13372_s19  ;;  %11793 = vmatmul.mubr.f32.vlgmr.msra.gmra.mrb[10].mxu1 %v13369_v15  ;;  %v5323_v37 = vand.u32 4294901760, %v14319_v34 }
0x1662   :  { %12651 = vmatpush3.bf16.msra.mxu1 %v14267_v56  ;;  %11803 = vmatprep.mubr.msk.f32.mxu1 %vm13368_vm2, %v13369_v15 }
0x1663   :  { %12652 = vmatprep.subr.bf16.mxu1 %v13367_v3 }
0x1665   :  { %1918 = vrot.lane.b32.xlu0 %v1916_v0, %s13372_s19  ;;  %v5317_v0 = vsub.f32 %v14314_v32, %v5316_v35 }
0x1666   :  { %12654 = vmatpush3.bf16.msra.mxu1 %v14272_v21 }
0x1667   :  { %12655 = vmatprep.subr.bf16.mxu1 %v13367_v3  ;;  %v5318_v49 = vand.u32 4294901760, %v5317_v0 }
0x1669   :  { %2984 = vrot.lane.b32.xlu0 %v2982_v8, %s13372_s19  ;;  %11804 = vmatmul.mubr.f32.vlgmr.msra.gmra.mrb[10].mxu1 %v13369_v15  ;;  %v5324_v8 = vsub.f32 %v14319_v34, %v5323_v37 }
0x166a   :  { %12657 = vmatpush3.bf16.msra.mxu1 %v14249_v10  ;;  %11814 = vmatprep.mubr.msk.f32.mxu1 %vm13368_vm2, %v13369_v15 }
0x166b   :  { %12658 = vmatprep.subr.bf16.mxu1 %v13367_v3 }
0x166d   :  { %4050 = vrot.lane.b32.xlu0 %v4048_v42, %s13372_s19  ;;  %v5325_v42 = vand.u32 4294901760, %v5324_v8 }
0x166e   :  { %12660 = vmatpush3.bf16.msra.mxu1 %v14252_v13 }
0x166f   :  { %12661 = vmatprep.subr.bf16.mxu1 %v13367_v3  ;;  %v12597_v5 = vpack.c.bf16 %v5325_v42, %v5318_v49  ;;  %v5332_v49 = vand.u32 4294901760, %v5331_v1  ;;  %v5339_v42 = vand.u32 4294901760, %v5338_v2  ;;  %v12609_v1 = vpack.c.bf16 %v14346_v50, %v14341_v11 }
0x1670   :  { %v12621_v50 = vpack.c.bf16 %v5323_v37, %v5316_v35 }
0x1671   :  { %11815 = vmatmul.mubr.f32.vlgmr.msra.gmra.mrb[10].mxu1 %v13369_v15  ;;  %12598 = vmatprep.subr.bf16.mxu0 %v12597_v5  ;;  %v12601_v6 = vpack.c.bf16 %v5339_v42, %v5332_v49 }
0x1672   :  { %12663 = vmatpush3.bf16.msra.mxu1 %v14285_v24  ;;  %11825 = vmatprep.mubr.msk.f32.mxu1 %vm13368_vm2, %v13369_v15 }
0x1673   :  { %12664 = vmatprep.subr.bf16.mxu1 %v13367_v3 }
0x1676   :  { %12666 = vmatpush3.bf16.msra.mxu1 %v14290_v31 }
0x1677   :  { %12667 = vmatprep.subr.bf16.mxu1 %v13367_v3 }
0x1679   :  { %11826 = vmatmul.mubr.f32.vlgmr.msra.gmra.mrb[10].mxu1 %v13369_v15 }
0x167a   :  { %12669 = vmatpush3.bf16.msra.mxu1 %v14249_v10  ;;  %11836 = vmatprep.mubr.msk.f32.mxu1 %vm13368_vm2, %v13369_v15 }
0x167b   :  { %12670 = vmatprep.subr.bf16.mxu1 %v13367_v3 }
0x167e   :  { %12672 = vmatpush3.bf16.msra.mxu1 %v14252_v13 }
0x167f   :  { %12673 = vmatprep.subr.bf16.mxu1 %v13367_v3 }
0x1681   :  { %11837 = vmatmul.mubr.f32.vlgmr.msra.gmra.mrb[10].mxu1 %v13369_v15 }
0x1682   :  { %12675 = vmatpush3.bf16.msra.mxu1 %v14249_v10  ;;  %11847 = vmatprep.mubr.msk.f32.mxu1 %vm13368_vm2, %v13369_v15 }
0x1683   :  { %12676 = vmatprep.subr.bf16.mxu1 %v13367_v3 }
0x1686   :  { %12678 = vmatpush3.bf16.msra.mxu1 %v14252_v13 }
0x1687   :  { %12679 = vmatprep.subr.bf16.mxu1 %v13367_v3 }
0x16d3   :  { %v5103_v9 = vpop.permute.xlu0 %5102 }
0x16d4   :  { %v5105_v51 = vmul.f32 %v5103_v9, %v5100_v38  ;;  %v5256_v9 = vsub.f32 %v14355_v44, %v5255_v26 }
0x16d6   :  { %v5107_v16 = vadd.f32 %v5106_v40, %v5105_v51  ;;  %v5275_v40 = vand.u32 4294901760, %v14368_v43  ;;  %v14384_v51 = vsub.f32 %v5159_v61, %v14370_v45  ;;  %v5257_v28 = vand.u32 4294901760, %v5256_v9 }
0x16d7   :  { %v1919_v18 = vpop.permute.xlu0 %1918 }
0x16d8   :  { %1922 = vst.msk [vmem:[#allocation3 + $0x8] sm:$0xff] %vm854_vm6, %v1919_v18  ;;  %v5114_v19 = vsel %vm5113_vm9, %v5107_v16, -1.0 }
0x16d9   :  { %5116 = vrot.lane.b32.xlu0 %v5114_v19, %s13372_s19 }
0x16db   :  { %v2985_v60 = vpop.permute.xlu0 %2984 }
0x16dc   :  { %2988 = vst.msk [vmem:[#allocation3 + $0x18] sm:$0xff] %vm854_vm6, %v2985_v60 }
0x16df   :  { %v4051_v57 = vpop.permute.xlu0 %4050  ;;  %v5122_v58 = vld [vmem:[#allocation3 + $0x8] sm:$0xff] }
0x16e0   :  { %4054 = vst.msk [vmem:[#allocation3 + $0x28] sm:$0xff] %vm854_vm6, %v4051_v57  ;;  %v5144_v23 = vsel %vm854_vm6, %v5122_v58, 0  ;;  %v5276_v57 = vsub.f32 %v14368_v43, %v5275_v40  ;;  %v5295_v58 = vand.u32 4294901760, %v14384_v51 }
0x16e1   :  { %v14362_v14 = vand.u32 4294901760, %v5144_v23 }
0x16e2   :  { %v5277_v49 = vand.u32 4294901760, %v5276_v57  ;;  %v5296_v42 = vsub.f32 %v14384_v51, %v5295_v58 }
0x16e3   :  { %v14373_v48 = vsub.f32 %v5144_v23, %v14362_v14  ;;  %v5124_v52 = vld [vmem:[#allocation3 + $0x18] sm:$0xff] }
0x16e4   :  { %v5150_v0 = vsel %vm854_vm6, %v5124_v52, 0  ;;  %v5297_v11 = vand.u32 4294901760, %v5296_v42 }
0x16e5   :  { %v5245_v8 = vand.u32 4294901760, %v14373_v48  ;;  %v14377_v38 = vand.u32 4294901760, %v5150_v0 }
0x16e7   :  { %v5246_v12 = vsub.f32 %v14373_v48, %v5245_v8  ;;  %v14390_v16 = vsub.f32 %v5150_v0, %v14377_v38  ;;  %v5126_v18 = vld [vmem:[#allocation3 + $0x28] sm:$0xff]  ;;  %v12605_v0 = vpack.c.bf16 %v14319_v34, %v14314_v32 }
0x16e8   :  { %v5156_v47 = vsel %vm854_vm6, %v5126_v18, 0  ;;  %v10418_v18 = vld [vmem:[%s14976_s9] ss:$0 sm:$0xff] }
0x16e9   :  { %v5247_v19 = vand.u32 4294901760, %v5246_v12  ;;  %v5265_v25 = vand.u32 4294901760, %v14390_v16  ;;  %v14394_v60 = vand.u32 4294901760, %v5156_v47  ;;  %v12625_v12 = vpack.c.bf16 %v5337_v54, %v5330_v20  ;;  %6461 = vrot.lane.b32.xlu1 %v10418_v18, %s13370_s5 }
0x16eb   :  { %11662 = vmatmul.mubr.f32.vlgmr.msra.gmra.mrb[14].mxu0 %v5247_v19  ;;  %v5266_v61 = vsub.f32 %v14390_v16, %v5265_v25  ;;  %v14404_v23 = vsub.f32 %v5156_v47, %v14394_v60 }
0x16ec   :  { %11664 = vmatprep.mubr.f32.mxu0 %v5257_v28  ;;  %12600 = vmatpush3.bf16.msra.mxu0 %v12597_v5 }
0x16ed   :  { %v5267_v2 = vand.u32 4294901760, %v5266_v61  ;;  %v5285_v52 = vand.u32 4294901760, %v14404_v23  ;;  %12602 = vmatprep.subr.bf16.mxu0 %v12601_v6 }
0x16ef   :  { %11665 = vmatmul.mubr.f32.gmra.mrb[16].mxu0 %v5267_v2  ;;  %v5286_v9 = vsub.f32 %v14404_v23, %v5285_v52 }
0x16f0   :  { %11667 = vmatprep.mubr.f32.mxu0 %v5277_v49  ;;  %12604 = vmatpush3.bf16.msra.mxu0 %v12601_v6 }
0x16f1   :  { %v5287_v5 = vand.u32 4294901760, %v5286_v9  ;;  %12606 = vmatprep.subr.bf16.mxu0 %v12605_v0 }
0x16f3   :  { %11668 = vmatmul.mubr.f32.gmra.mrb[18].mxu0 %v5287_v5 }
0x16f4   :  { %11670 = vmatprep.mubr.f32.mxu0 %v5297_v11 }
0x174b   :  { %v5117_v47 = vpop.permute.xlu0 %5116 }
0x174c   :  { %5120 = vst.msk [vmem:[#allocation3 + $0x38] sm:$0xff] %vm854_vm6, %v5117_v47 }
0x1753   :  { %v5128_v19 = vld [vmem:[#allocation3 + $0x38] sm:$0xff] }
0x1754   :  { %v5162_v6 = vsel %vm854_vm6, %v5128_v19, 0  ;;  %v14448_v37 = vpop.f32.mrb[10].mxu1 }
0x1755   :  { %v14427_v28 = vand.u32 4294901760, %v5162_v6  ;;  %v11838_v20 = vpop.f32.mrb[11].mxu1 }
0x1757   :  { %v5304_v32 = vsub.f32 %v5162_v6, %v14427_v28 }
0x1759   :  { %v5305_v57 = vand.u32 4294901760, %v5304_v32 }
0x175b   :  { %v5306_v34 = vsub.f32 %v5304_v32, %v5305_v57  ;;  %v14451_v54 = vpop.permute.xlu1 %6461 }
0x175c   :  { %v6464_v61 = vadd.f32 %v14451_v54, %v14448_v37 }
0x175d   :  { %v5307_v35 = vand.u32 4294901760, %v5306_v34 }
0x175e   :  { %6466 = vrot.lane.b32.xlu0 %v6464_v61, %s13370_s5 }
0x175f   :  { %11671 = vmatmul.mubr.f32.gmra.mrb[20].mxu0 %v5307_v35 }
0x1760   :  { %11681 = vmatprep.mubr.f32.mxu0 %v14174_v22 }
0x1763   :  { %11682 = vmatmul.mubr.f32.vlgmr.msra.gmra.mrb[14].mxu0 %v14362_v14 }
0x1764   :  { %11684 = vmatprep.mubr.f32.mxu0 %v14348_v39  ;;  %12608 = vmatpush3.bf16.msra.mxu0 %v12605_v0 }
0x1765   :  { %12610 = vmatprep.subr.bf16.mxu0 %v12609_v1 }
0x1767   :  { %11685 = vmatmul.mubr.f32.gmra.mrb[16].mxu0 %v14377_v38 }
0x1768   :  { %11687 = vmatprep.mubr.f32.mxu0 %v14357_v59  ;;  %12612 = vmatpush3.bf16.msra.mxu0 %v12609_v1 }
0x1769   :  { %12614 = vmatprep.subr.bf16.mxu0 %v14213_v62 }
0x176b   :  { %11688 = vmatmul.mubr.f32.gmra.mrb[18].mxu0 %v14394_v60 }
0x176c   :  { %11690 = vmatprep.mubr.f32.mxu0 %v14370_v45 }
0x176f   :  { %11691 = vmatmul.mubr.f32.gmra.mrb[20].mxu0 %v14427_v28 }
0x1770   :  { %11701 = vmatprep.mubr.f32.mxu0 %v14177_v27 }
0x1773   :  { %11702 = vmatmul.mubr.f32.vlgmr.msra.gmra.mrb[14].mxu0 %v14373_v48 }
0x1774   :  { %11704 = vmatprep.mubr.f32.mxu0 %v14355_v44  ;;  %12616 = vmatpush3.bf16.msra.mxu0 %v14213_v62 }
0x1775   :  { %12618 = vmatprep.subr.bf16.mxu0 %v14222_v7 }
0x1777   :  { %11705 = vmatmul.mubr.f32.gmra.mrb[16].mxu0 %v14390_v16 }
0x1778   :  { %11707 = vmatprep.mubr.f32.mxu0 %v14368_v43  ;;  %12620 = vmatpush3.bf16.msra.mxu0 %v14222_v7 }
0x1779   :  { %12622 = vmatprep.subr.bf16.mxu0 %v12621_v50 }
0x177b   :  { %11708 = vmatmul.mubr.f32.gmra.mrb[18].mxu0 %v14404_v23 }
0x177c   :  { %11710 = vmatprep.mubr.f32.mxu0 %v14384_v51 }
0x177f   :  { %11711 = vmatmul.mubr.f32.gmra.mrb[20].mxu0 %v5304_v32 }
0x1780   :  { %11721 = vmatprep.mubr.f32.mxu0 %v5235_v29 }
0x1783   :  { %11722 = vmatmul.mubr.f32.vlgmr.msra.gmra.mrb[14].mxu0 %v5245_v8 }
0x1784   :  { %11724 = vmatprep.mubr.f32.mxu0 %v5255_v26  ;;  %12624 = vmatpush3.bf16.msra.mxu0 %v12621_v50 }
0x1785   :  { %12626 = vmatprep.subr.bf16.mxu0 %v12625_v12 }
0x1787   :  { %11725 = vmatmul.mubr.f32.gmra.mrb[16].mxu0 %v5265_v25 }
0x1788   :  { %11727 = vmatprep.mubr.f32.mxu0 %v5275_v40  ;;  %12628 = vmatpush3.bf16.msra.mxu0 %v12625_v12 }
0x1789   :  { %12630 = vmatprep.subr.bf16.mxu0 %v14213_v62 }
0x178b   :  { %11728 = vmatmul.mubr.f32.gmra.mrb[18].mxu0 %v5285_v52 }
0x178c   :  { %11730 = vmatprep.mubr.f32.mxu0 %v5295_v58 }
0x178f   :  { %11731 = vmatmul.mubr.f32.gmra.mrb[20].mxu0 %v5305_v57 }
0x1790   :  { %11741 = vmatprep.mubr.f32.mxu0 %v14174_v22 }
0x1793   :  { %11742 = vmatmul.mubr.f32.vlgmr.msra.gmra.mrb[14].mxu0 %v14362_v14 }
0x1794   :  { %11744 = vmatprep.mubr.f32.mxu0 %v14348_v39  ;;  %12632 = vmatpush3.bf16.msra.mxu0 %v14213_v62 }
0x1795   :  { %12634 = vmatprep.subr.bf16.mxu0 %v14222_v7 }
0x1797   :  { %11745 = vmatmul.mubr.f32.gmra.mrb[16].mxu0 %v14377_v38 }
0x1798   :  { %11747 = vmatprep.mubr.f32.mxu0 %v14357_v59  ;;  %12636 = vmatpush3.bf16.msra.mxu0 %v14222_v7 }
0x1799   :  { %12709 = vmatprep.subr.bf16.mxu0 %v13367_v3 }
0x179b   :  { %11748 = vmatmul.mubr.f32.gmra.mrb[18].mxu0 %v14394_v60 }
0x179c   :  { %11750 = vmatprep.mubr.f32.mxu0 %v14370_v45 }
0x179f   :  { %11751 = vmatmul.mubr.f32.gmra.mrb[20].mxu0 %v14427_v28 }
0x17a0   :  { %11761 = vmatprep.mubr.f32.mxu0 %v14174_v22  ;;  %v10416_v22 = vld [vmem:[%s14975_s8] ss:$0 sm:$0xff] }
0x17a3   :  { %11762 = vmatmul.mubr.f32.vlgmr.msra.gmra.mrb[14].mxu0 %v14362_v14 }
0x17a4   :  { %11764 = vmatprep.mubr.f32.mxu0 %v14348_v39  ;;  %12711 = vmatpush3.bf16.msra.mxu0 %v14249_v10 }
0x17a5   :  { %12712 = vmatprep.subr.bf16.mxu0 %v13367_v3 }
0x17a7   :  { %11765 = vmatmul.mubr.f32.gmra.mrb[16].mxu0 %v14377_v38 }
0x17a8   :  { %11767 = vmatprep.mubr.f32.mxu0 %v14357_v59  ;;  %12714 = vmatpush3.bf16.msra.mxu0 %v14252_v13 }
0x17a9   :  { %12715 = vmatprep.subr.bf16.mxu0 %v13367_v3 }
0x17ab   :  { %11768 = vmatmul.mubr.f32.gmra.mrb[18].mxu0 %v14394_v60 }
0x17ac   :  { %11770 = vmatprep.mubr.f32.mxu0 %v14370_v45 }
0x17af   :  { %11771 = vmatmul.mubr.f32.gmra.mrb[20].mxu0 %v14427_v28 }
0x17b0   :  { %11913 = vmatprep.mubr.msk.f32.mxu0 %vm13368_vm2, %v13369_v15 }
0x17d0   :  { %v6467_v2 = vpop.permute.xlu0 %6466 }
0x1876   :  { %v11763_v27 = vpop.f32.mrb[14].mxu0 }
0x1877   :  { %v12933_v29 = vadd.f32 %v11763_v27, %v10416_v22  ;;  %v5904_v62 = vpop.f32.mrb[15].mxu0 }
0x1878   :  { %v12934_v7 = vadd.f32 %v10416_v22, %v5904_v62 }
0x1879   :  { %5951 = vst.msk [vmem:[#allocation2 + $0x8] sm:$0xff] %vm839_vm3, %v12933_v29 }
0x187a   :  { %5950 = vst.msk [vmem:[#allocation2] sm:$0xff] %vm839_vm3, %v12934_v7  ;;  %v11766_v39 = vpop.f32.mrb[16].mxu0 }
0x187b   :  { %v12935_v44 = vadd.f32 %v11766_v39, %v10416_v22  ;;  %v5916_v59 = vpop.f32.mrb[17].mxu0 }
0x187c   :  { %v12936_v14 = vadd.f32 %v10416_v22, %v5916_v59 }
0x187d   :  { %5953 = vst.msk [vmem:[#allocation2 + $0x18] sm:$0xff] %vm839_vm3, %v12935_v44 }
0x187e   :  { %5952 = vst.msk [vmem:[#allocation2 + $0x10] sm:$0xff] %vm839_vm3, %v12936_v14  ;;  %v11769_v26 = vpop.f32.mrb[18].mxu0 }
0x187f   :  { %v12937_v43 = vadd.f32 %v11769_v26, %v10416_v22  ;;  %v5928_v45 = vpop.f32.mrb[19].mxu0 }
0x1880   :  { %v12938_v48 = vadd.f32 %v10416_v22, %v5928_v45  ;;  %v6491_v61 = vld [vmem:[#allocation2 + $0x8] sm:$0xff] }
0x1881   :  { %5955 = vst.msk [vmem:[#allocation2 + $0x28] sm:$0xff] %vm839_vm3, %v12937_v43  ;;  %v5963_v8 = vld [vmem:[#allocation2] sm:$0xff] }
0x1882   :  { %5954 = vst.msk [vmem:[#allocation2 + $0x20] sm:$0xff] %vm839_vm3, %v12938_v48  ;;  %v11772_v38 = vpop.f32.mrb[20].mxu0  ;;  %v6449_v40 = vadd.f32 %v14448_v37, %v5963_v8 }
0x1883   :  { %v12939_v51 = vadd.f32 %v11772_v38, %v10416_v22  ;;  %v5940_v16 = vpop.f32.mrb[21].mxu0 }
0x1884   :  { %v12940_v25 = vadd.f32 %v10416_v22, %v5940_v16  ;;  %v10417_v60 = vmul.f32 -1.442695, %v6449_v40 }
0x1885   :  { %5957 = vst.msk [vmem:[#allocation2 + $0x38] sm:$0xff] %vm839_vm3, %v12939_v51 }
0x1886   :  { %5956 = vst.msk [vmem:[#allocation2 + $0x30] sm:$0xff] %vm839_vm3, %v12940_v25  ;;  %13239 = vpow2.f32 %v10417_v60  ;;  %vm10266_vm3 = vcmask 1042434  }
0x1890   :  { %v13240_v58 = vpop.eup %13239 }
0x1891   :  { %v6453_v23 = vadd.f32 1.0, %v13240_v58 }
0x1893   :  { %13241 = vrcp.f32 %v6453_v23 }
0x189d   :  { %v13242_v1 = vpop.eup %13241 }
0x189e   :  { %v6469_v52 = vmul.f32 %v13242_v1, %v6467_v2  ;;  %v6476_v9 = vsub.f32 1.0, %v13242_v1  ;;  %v6482_v11 = vmul.f32 0.0, %v13242_v1 }
0x18a0   :  { %6471 = vrot.lane.b32.xlu1 %v6469_v52, %s13370_s5 }
0x1912   :  { %v6472_v0 = vpop.permute.xlu1 %6471 }
0x1913   :  { %v6474_v49 = vadd.f32 %v6472_v0, %v5963_v8 }
0x1915   :  { %13243 = vtanh.f32 %v6474_v49  ;;  %v7016_v49 = vld [vmem:[#allocation2 + $0x10] sm:$0xff] }
0x191f   :  { %v13244_v42 = vpop.eup %13243 }
0x1920   :  { %6478 = vrot.lane.b32.xlu0 %v13244_v42, %s13372_s19 }
0x1992   :  { %v6479_v5 = vpop.permute.xlu0 %6478 }
0x1993   :  { %v6481_v50 = vmul.f32 %v6479_v5, %v6476_v9 }
0x1995   :  { %v14511_v12 = vadd.f32 %v6482_v11, %v6481_v50 }
0x1997   :  { %v14516_v18 = vsel %vm1383_vm5, %v14511_v12, 0.0 }
0x1998   :  { %6493 = vrot.lane.b32.xlu1 %v14516_v18, %s13372_s19 }
0x1a0a   :  { %v6494_v47 = vpop.permute.xlu1 %6493 }
0x1a0b   :  { %v6495_v19 = vsel %vm854_vm6, %v6494_v47, 0 }
0x1a0c   :  { %v6566_v6 = vand.u32 4294901760, %v6495_v19 }
0x1a0e   :  { %v6567_v28 = vsub.f32 %v6495_v19, %v6566_v6 }
0x1a10   :  { %v6568_v32 = vand.u32 4294901760, %v6567_v28 }
0x1a12   :  { %v6569_v57 = vsub.f32 %v6567_v28, %v6568_v32 }
0x1a14   :  { %v6570_v34 = vand.u32 4294901760, %v6569_v57 }
0x1a16   :  { %11848 = vmatmul.mubr.f32.vlgmr.msra.gmra.mrb[12].mxu1 %v6570_v34 }
0x1a17   :  { %12681 = vmatpush3.bf16.msra.mxu1 %v14257_v53  ;;  %11858 = vmatprep.mubr.msk.f32.mxu1 %vm13368_vm2, %v13369_v15 }
0x1a18   :  { %12682 = vmatprep.subr.bf16.mxu1 %v13367_v3 }
0x1a1b   :  { %12684 = vmatpush3.bf16.msra.mxu1 %v14261_v55 }
0x1a1c   :  { %12685 = vmatprep.subr.bf16.mxu1 %v13367_v3 }
0x1a1e   :  { %11859 = vmatmul.mubr.f32.vlgmr.msra.gmra.mrb[12].mxu1 %v6566_v6 }
0x1a1f   :  { %12687 = vmatpush3.bf16.msra.mxu1 %v14267_v56  ;;  %11869 = vmatprep.mubr.msk.f32.mxu1 %vm13368_vm2, %v13369_v15 }
0x1a20   :  { %12688 = vmatprep.subr.bf16.mxu1 %v13367_v3 }
0x1a23   :  { %12690 = vmatpush3.bf16.msra.mxu1 %v14272_v21 }
0x1a24   :  { %12691 = vmatprep.subr.bf16.mxu1 %v13367_v3 }
0x1a26   :  { %11870 = vmatmul.mubr.f32.vlgmr.msra.gmra.mrb[12].mxu1 %v6567_v28 }
0x1a27   :  { %12693 = vmatpush3.bf16.msra.mxu1 %v14249_v10  ;;  %11880 = vmatprep.mubr.msk.f32.mxu1 %vm13368_vm2, %v13369_v15 }
0x1a28   :  { %12694 = vmatprep.subr.bf16.mxu1 %v13367_v3 }
0x1a2b   :  { %12696 = vmatpush3.bf16.msra.mxu1 %v14252_v13 }
0x1a2c   :  { %12697 = vmatprep.subr.bf16.mxu1 %v13367_v3 }
0x1a2e   :  { %11881 = vmatmul.mubr.f32.vlgmr.msra.gmra.mrb[12].mxu1 %v6568_v32 }
0x1a2f   :  { %12699 = vmatpush3.bf16.msra.mxu1 %v14285_v24  ;;  %11891 = vmatprep.mubr.msk.f32.mxu1 %vm13368_vm2, %v13369_v15 }
0x1a30   :  { %12700 = vmatprep.subr.bf16.mxu1 %v13367_v3 }
0x1a33   :  { %12702 = vmatpush3.bf16.msra.mxu1 %v14290_v31 }
0x1a34   :  { %12703 = vmatprep.subr.bf16.mxu1 %v13367_v3 }
0x1a36   :  { %11892 = vmatmul.mubr.f32.vlgmr.msra.gmra.mrb[12].mxu1 %v6566_v6 }
0x1a37   :  { %12705 = vmatpush3.bf16.msra.mxu1 %v14249_v10  ;;  %11902 = vmatprep.mubr.msk.f32.mxu1 %vm13368_vm2, %v13369_v15 }
0x1a38   :  { %12706 = vmatprep.subr.bf16.mxu1 %v13367_v3 }
0x1a3b   :  { %12708 = vmatpush3.bf16.msra.mxu1 %v14252_v13 }
0x1a3c   :  { %12745 = vmatprep.subr.bf16.mxu1 %v13367_v3 }
0x1a3e   :  { %11903 = vmatmul.mubr.f32.vlgmr.msra.gmra.mrb[12].mxu1 %v6566_v6 }
0x1a3f   :  { %12747 = vmatpush3.bf16.msra.mxu1 %v14249_v10  ;;  %11979 = vmatprep.mubr.msk.f32.mxu1 %vm13368_vm2, %v13369_v15 }
0x1a40   :  { %12748 = vmatprep.subr.bf16.mxu1 %v13367_v3 }
0x1a43   :  { %12750 = vmatpush3.bf16.msra.mxu1 %v14252_v13 }
0x1a44   :  { %12751 = vmatprep.subr.bf16.mxu1 %v13367_v3 }
0x1b11   :  { %v6978_v35 = vpop.f32.mrb[12].mxu1 }
0x1b12   :  { %v6989_v37 = vadd.f32 %v6978_v35, %v14451_v54  ;;  %v11904_v20 = vpop.f32.mrb[13].mxu1  ;;  %v6982_v22 = vadd.f32 %v6978_v35, %v6491_v61 }
0x1b14   :  { %6991 = vrot.lane.b32.xlu0 %v6989_v37, %s13370_s5  ;;  %v10419_v27 = vmul.f32 -1.442695, %v6982_v22 }
0x1b16   :  { %13245 = vpow2.f32 %v10419_v27 }
0x1b20   :  { %v13246_v29 = vpop.eup %13245 }
0x1b21   :  { %v6986_v62 = vadd.f32 1.0, %v13246_v29 }
0x1b23   :  { %13247 = vrcp.f32 %v6986_v62 }
0x1b2d   :  { %v13248_v7 = vpop.eup %13247 }
0x1b2e   :  { %v7001_v43 = vsub.f32 1.0, %v13248_v7  ;;  %v7007_v48 = vmul.f32 %v13248_v7, %v14516_v18 }
0x1b86   :  { %v6992_v39 = vpop.permute.xlu0 %6991 }
0x1b87   :  { %v6994_v44 = vmul.f32 %v13248_v7, %v6992_v39 }
0x1b89   :  { %6996 = vrot.lane.b32.xlu1 %v6994_v44, %s13370_s5 }
0x1bfb   :  { %v6997_v59 = vpop.permute.xlu1 %6996 }
0x1bfc   :  { %v6999_v14 = vadd.f32 %v6997_v59, %v6491_v61 }
0x1bfe   :  { %13249 = vtanh.f32 %v6999_v14 }
0x1c08   :  { %v13250_v26 = vpop.eup %13249 }
0x1c09   :  { %7003 = vrot.lane.b32.xlu0 %v13250_v26, %s13372_s19  ;;  %v7541_v26 = vld [vmem:[#allocation2 + $0x18] sm:$0xff] }
0x1c7b   :  { %v7004_v45 = vpop.permute.xlu0 %7003 }
0x1c7c   :  { %v7006_v8 = vmul.f32 %v7004_v45, %v7001_v43 }
0x1c7e   :  { %v14562_v38 = vadd.f32 %v7007_v48, %v7006_v8 }
0x1c80   :  { %v14568_v40 = vsel %vm1915_vm8, %v14562_v38, %v14516_v18 }
0x1c81   :  { %7018 = vrot.lane.b32.xlu1 %v14568_v40, %s13372_s19 }
0x1cf3   :  { %v7019_v51 = vpop.permute.xlu1 %7018 }
0x1cf4   :  { %v7020_v16 = vsel %vm854_vm6, %v7019_v51, 0 }
0x1cf5   :  { %v7091_v25 = vand.u32 4294901760, %v7020_v16 }
0x1cf7   :  { %v7092_v60 = vsub.f32 %v7020_v16, %v7091_v25 }
0x1cf9   :  { %v7093_v58 = vand.u32 4294901760, %v7092_v60 }
0x1cfb   :  { %v7094_v23 = vsub.f32 %v7092_v60, %v7093_v58 }
0x1cfd   :  { %v7095_v1 = vand.u32 4294901760, %v7094_v23 }
0x1cff   :  { %11914 = vmatmul.mubr.f32.vlgmr.msra.gmra.mrb[22].mxu0 %v7095_v1 }
0x1d00   :  { %12717 = vmatpush3.bf16.msra.mxu0 %v14257_v53  ;;  %11924 = vmatprep.mubr.msk.f32.mxu0 %vm13368_vm2, %v13369_v15 }
0x1d01   :  { %12718 = vmatprep.subr.bf16.mxu0 %v13367_v3 }
0x1d04   :  { %12720 = vmatpush3.bf16.msra.mxu0 %v14261_v55 }
0x1d05   :  { %12721 = vmatprep.subr.bf16.mxu0 %v13367_v3 }
0x1d07   :  { %11925 = vmatmul.mubr.f32.vlgmr.msra.gmra.mrb[22].mxu0 %v7091_v25 }
0x1d08   :  { %12723 = vmatpush3.bf16.msra.mxu0 %v14267_v56  ;;  %11935 = vmatprep.mubr.msk.f32.mxu0 %vm13368_vm2, %v13369_v15 }
0x1d09   :  { %12724 = vmatprep.subr.bf16.mxu0 %v13367_v3 }
0x1d0c   :  { %12726 = vmatpush3.bf16.msra.mxu0 %v14272_v21 }
0x1d0d   :  { %12727 = vmatprep.subr.bf16.mxu0 %v13367_v3 }
0x1d0f   :  { %11936 = vmatmul.mubr.f32.vlgmr.msra.gmra.mrb[22].mxu0 %v7092_v60 }
0x1d10   :  { %12729 = vmatpush3.bf16.msra.mxu0 %v14249_v10  ;;  %11946 = vmatprep.mubr.msk.f32.mxu0 %vm13368_vm2, %v13369_v15 }
0x1d11   :  { %12730 = vmatprep.subr.bf16.mxu0 %v13367_v3 }
0x1d14   :  { %12732 = vmatpush3.bf16.msra.mxu0 %v14252_v13 }
0x1d15   :  { %12733 = vmatprep.subr.bf16.mxu0 %v13367_v3 }
0x1d17   :  { %11947 = vmatmul.mubr.f32.vlgmr.msra.gmra.mrb[22].mxu0 %v7093_v58 }
0x1d18   :  { %12735 = vmatpush3.bf16.msra.mxu0 %v14285_v24  ;;  %11957 = vmatprep.mubr.msk.f32.mxu0 %vm13368_vm2, %v13369_v15 }
0x1d19   :  { %12736 = vmatprep.subr.bf16.mxu0 %v13367_v3 }
0x1d1c   :  { %12738 = vmatpush3.bf16.msra.mxu0 %v14290_v31 }
0x1d1d   :  { %12739 = vmatprep.subr.bf16.mxu0 %v13367_v3 }
0x1d1f   :  { %11958 = vmatmul.mubr.f32.vlgmr.msra.gmra.mrb[22].mxu0 %v7091_v25 }
0x1d20   :  { %12741 = vmatpush3.bf16.msra.mxu0 %v14249_v10  ;;  %11968 = vmatprep.mubr.msk.f32.mxu0 %vm13368_vm2, %v13369_v15 }
0x1d21   :  { %12742 = vmatprep.subr.bf16.mxu0 %v13367_v3 }
0x1d24   :  { %12744 = vmatpush3.bf16.msra.mxu0 %v14252_v13 }
0x1d25   :  { %12781 = vmatprep.subr.bf16.mxu0 %v13367_v3 }
0x1d27   :  { %11969 = vmatmul.mubr.f32.vlgmr.msra.gmra.mrb[22].mxu0 %v7091_v25 }
0x1d28   :  { %12783 = vmatpush3.bf16.msra.mxu0 %v14249_v10  ;;  %12045 = vmatprep.mubr.msk.f32.mxu0 %vm13368_vm2, %v13369_v15 }
0x1d29   :  { %12784 = vmatprep.subr.bf16.mxu0 %v13367_v3 }
0x1d2c   :  { %12786 = vmatpush3.bf16.msra.mxu0 %v14252_v13 }
0x1d2d   :  { %12787 = vmatprep.subr.bf16.mxu0 %v13367_v3 }
0x1dfa   :  { %v7503_v2 = vpop.f32.mrb[22].mxu0 }
0x1dfb   :  { %v7514_v52 = vadd.f32 %v7503_v2, %v14451_v54  ;;  %v11970_v0 = vpop.f32.mrb[23].mxu0  ;;  %v7507_v42 = vadd.f32 %v7503_v2, %v7016_v49 }
0x1dfd   :  { %7516 = vrot.lane.b32.xlu0 %v7514_v52, %s13370_s5  ;;  %v10420_v9 = vmul.f32 -1.442695, %v7507_v42 }
0x1dff   :  { %13251 = vpow2.f32 %v10420_v9 }
0x1e09   :  { %v13252_v5 = vpop.eup %13251 }
0x1e0a   :  { %v7511_v11 = vadd.f32 1.0, %v13252_v5 }
0x1e0c   :  { %13253 = vrcp.f32 %v7511_v11 }
0x1e16   :  { %v13254_v50 = vpop.eup %13253 }
0x1e17   :  { %v7526_v32 = vsub.f32 1.0, %v13254_v50  ;;  %v7532_v34 = vmul.f32 %v13254_v50, %v14568_v40 }
0x1e6f   :  { %v7517_v18 = vpop.permute.xlu0 %7516 }
0x1e70   :  { %v7519_v47 = vmul.f32 %v13254_v50, %v7517_v18 }
0x1e72   :  { %7521 = vrot.lane.b32.xlu1 %v7519_v47, %s13370_s5 }
0x1ee4   :  { %v7522_v19 = vpop.permute.xlu1 %7521 }
0x1ee5   :  { %v7524_v6 = vadd.f32 %v7522_v19, %v7016_v49 }
0x1ee7   :  { %13255 = vtanh.f32 %v7524_v6 }
0x1ef1   :  { %v13256_v28 = vpop.eup %13255 }
0x1ef2   :  { %7528 = vrot.lane.b32.xlu0 %v13256_v28, %s13372_s19 }
0x1f64   :  { %v7529_v57 = vpop.permute.xlu0 %7528 }
0x1f65   :  { %v7531_v35 = vmul.f32 %v7529_v57, %v7526_v32  ;;  %v8066_v32 = vld [vmem:[#allocation2 + $0x20] sm:$0xff] }
0x1f67   :  { %v14614_v37 = vadd.f32 %v7532_v34, %v7531_v35 }
0x1f69   :  { %v14620_v20 = vsel %vm2448_vm10, %v14614_v37, %v14568_v40 }
0x1f6a   :  { %7543 = vrot.lane.b32.xlu1 %v14620_v20, %s13372_s19 }
0x1fdc   :  { %v7544_v61 = vpop.permute.xlu1 %7543 }
0x1fdd   :  { %v7545_v22 = vsel %vm854_vm6, %v7544_v61, 0 }
0x1fde   :  { %v7616_v27 = vand.u32 4294901760, %v7545_v22 }
0x1fe0   :  { %v7617_v29 = vsub.f32 %v7545_v22, %v7616_v27 }
0x1fe2   :  { %v7618_v62 = vand.u32 4294901760, %v7617_v29 }
0x1fe4   :  { %v7619_v7 = vsub.f32 %v7617_v29, %v7618_v62 }
0x1fe6   :  { %v7620_v39 = vand.u32 4294901760, %v7619_v7 }
0x1fe8   :  { %11980 = vmatmul.mubr.f32.vlgmr.msra.gmra.mrb[14].mxu1 %v7620_v39 }
0x1fe9   :  { %12753 = vmatpush3.bf16.msra.mxu1 %v14257_v53  ;;  %11990 = vmatprep.mubr.msk.f32.mxu1 %vm13368_vm2, %v13369_v15 }
0x1fea   :  { %12754 = vmatprep.subr.bf16.mxu1 %v13367_v3 }
0x1fed   :  { %12756 = vmatpush3.bf16.msra.mxu1 %v14261_v55 }
0x1fee   :  { %12757 = vmatprep.subr.bf16.mxu1 %v13367_v3 }
0x1ff0   :  { %11991 = vmatmul.mubr.f32.vlgmr.msra.gmra.mrb[14].mxu1 %v7616_v27 }
0x1ff1   :  { %12759 = vmatpush3.bf16.msra.mxu1 %v14267_v56  ;;  %12001 = vmatprep.mubr.msk.f32.mxu1 %vm13368_vm2, %v13369_v15 }
0x1ff2   :  { %12760 = vmatprep.subr.bf16.mxu1 %v13367_v3 }
0x1ff5   :  { %12762 = vmatpush3.bf16.msra.mxu1 %v14272_v21 }
0x1ff6   :  { %12763 = vmatprep.subr.bf16.mxu1 %v13367_v3 }
0x1ff8   :  { %12002 = vmatmul.mubr.f32.vlgmr.msra.gmra.mrb[14].mxu1 %v7617_v29 }
0x1ff9   :  { %12765 = vmatpush3.bf16.msra.mxu1 %v14249_v10  ;;  %12012 = vmatprep.mubr.msk.f32.mxu1 %vm13368_vm2, %v13369_v15 }
0x1ffa   :  { %12766 = vmatprep.subr.bf16.mxu1 %v13367_v3 }
0x1ffd   :  { %12768 = vmatpush3.bf16.msra.mxu1 %v14252_v13 }
0x1ffe   :  { %12769 = vmatprep.subr.bf16.mxu1 %v13367_v3 }
0x2000   :  { %12013 = vmatmul.mubr.f32.vlgmr.msra.gmra.mrb[14].mxu1 %v7618_v62 }
0x2001   :  { %12771 = vmatpush3.bf16.msra.mxu1 %v14285_v24  ;;  %12023 = vmatprep.mubr.msk.f32.mxu1 %vm13368_vm2, %v13369_v15 }
0x2002   :  { %12772 = vmatprep.subr.bf16.mxu1 %v13367_v3 }
0x2005   :  { %12774 = vmatpush3.bf16.msra.mxu1 %v14290_v31 }
0x2006   :  { %12775 = vmatprep.subr.bf16.mxu1 %v13367_v3 }
0x2008   :  { %12024 = vmatmul.mubr.f32.vlgmr.msra.gmra.mrb[14].mxu1 %v7616_v27 }
0x2009   :  { %12777 = vmatpush3.bf16.msra.mxu1 %v14249_v10  ;;  %12034 = vmatprep.mubr.msk.f32.mxu1 %vm13368_vm2, %v13369_v15 }
0x200a   :  { %12778 = vmatprep.subr.bf16.mxu1 %v13367_v3 }
0x200d   :  { %12780 = vmatpush3.bf16.msra.mxu1 %v14252_v13 }
0x200e   :  { %12817 = vmatprep.subr.bf16.mxu1 %v13367_v3 }
0x2010   :  { %12035 = vmatmul.mubr.f32.vlgmr.msra.gmra.mrb[14].mxu1 %v7616_v27 }
0x2011   :  { %12819 = vmatpush3.bf16.msra.mxu1 %v14249_v10  ;;  %12111 = vmatprep.mubr.msk.f32.mxu1 %vm13368_vm2, %v13369_v15 }
0x2012   :  { %12820 = vmatprep.subr.bf16.mxu1 %v13367_v3 }
0x2015   :  { %12822 = vmatpush3.bf16.msra.mxu1 %v14252_v13 }
0x2016   :  { %12823 = vmatprep.subr.bf16.mxu1 %v13367_v3 }
0x20e3   :  { %v8028_v44 = vpop.f32.mrb[14].mxu1 }
0x20e4   :  { %v8039_v59 = vadd.f32 %v8028_v44, %v14451_v54  ;;  %v12036_v14 = vpop.f32.mrb[15].mxu1  ;;  %v8032_v43 = vadd.f32 %v8028_v44, %v7541_v26 }
0x20e6   :  { %8041 = vrot.lane.b32.xlu0 %v8039_v59, %s13370_s5  ;;  %v10421_v45 = vmul.f32 -1.442695, %v8032_v43 }
0x20e8   :  { %13257 = vpow2.f32 %v10421_v45 }
0x20f2   :  { %v13258_v48 = vpop.eup %13257 }
0x20f3   :  { %v8036_v8 = vadd.f32 1.0, %v13258_v48 }
0x20f5   :  { %13259 = vrcp.f32 %v8036_v8 }
0x20ff   :  { %v13260_v40 = vpop.eup %13259 }
0x2100   :  { %v8051_v23 = vsub.f32 1.0, %v13260_v40  ;;  %v8057_v2 = vmul.f32 %v13260_v40, %v14620_v20 }
0x2158   :  { %v8042_v51 = vpop.permute.xlu0 %8041 }
0x2159   :  { %v8044_v16 = vmul.f32 %v13260_v40, %v8042_v51 }
0x215b   :  { %8046 = vrot.lane.b32.xlu1 %v8044_v16, %s13370_s5 }
0x21cd   :  { %v8047_v25 = vpop.permute.xlu1 %8046 }
0x21ce   :  { %v8049_v60 = vadd.f32 %v8047_v25, %v7541_v26 }
0x21d0   :  { %13261 = vtanh.f32 %v8049_v60 }
0x21da   :  { %v13262_v58 = vpop.eup %13261 }
0x21db   :  { %8053 = vrot.lane.b32.xlu0 %v13262_v58, %s13372_s19 }
0x224d   :  { %v8054_v1 = vpop.permute.xlu0 %8053 }
0x224e   :  { %v8056_v52 = vmul.f32 %v8054_v1, %v8051_v23  ;;  %v8591_v1 = vld [vmem:[#allocation2 + $0x28] sm:$0xff] }
0x2250   :  { %v14666_v0 = vadd.f32 %v8057_v2, %v8056_v52 }
0x2252   :  { %v14672_v49 = vsel %vm2981_vm12, %v14666_v0, %v14620_v20 }
0x2253   :  { %8068 = vrot.lane.b32.xlu1 %v14672_v49, %s13372_s19 }
0x22c5   :  { %v8069_v42 = vpop.permute.xlu1 %8068 }
0x22c6   :  { %v8070_v9 = vsel %vm854_vm6, %v8069_v42, 0 }
0x22c7   :  { %v8141_v5 = vand.u32 4294901760, %v8070_v9 }
0x22c9   :  { %v8142_v11 = vsub.f32 %v8070_v9, %v8141_v5 }
0x22cb   :  { %v8143_v50 = vand.u32 4294901760, %v8142_v11 }
0x22cd   :  { %v8144_v18 = vsub.f32 %v8142_v11, %v8143_v50 }
0x22cf   :  { %v8145_v47 = vand.u32 4294901760, %v8144_v18 }
0x22d1   :  { %12046 = vmatmul.mubr.f32.vlgmr.msra.gmra.mrb[24].mxu0 %v8145_v47 }
0x22d2   :  { %12789 = vmatpush3.bf16.msra.mxu0 %v14257_v53  ;;  %12056 = vmatprep.mubr.msk.f32.mxu0 %vm13368_vm2, %v13369_v15 }
0x22d3   :  { %12790 = vmatprep.subr.bf16.mxu0 %v13367_v3 }
0x22d6   :  { %12792 = vmatpush3.bf16.msra.mxu0 %v14261_v55 }
0x22d7   :  { %12793 = vmatprep.subr.bf16.mxu0 %v13367_v3 }
0x22d9   :  { %12057 = vmatmul.mubr.f32.vlgmr.msra.gmra.mrb[24].mxu0 %v8141_v5 }
0x22da   :  { %12795 = vmatpush3.bf16.msra.mxu0 %v14267_v56  ;;  %12067 = vmatprep.mubr.msk.f32.mxu0 %vm13368_vm2, %v13369_v15 }
0x22db   :  { %12796 = vmatprep.subr.bf16.mxu0 %v13367_v3 }
0x22de   :  { %12798 = vmatpush3.bf16.msra.mxu0 %v14272_v21 }
0x22df   :  { %12799 = vmatprep.subr.bf16.mxu0 %v13367_v3 }
0x22e1   :  { %12068 = vmatmul.mubr.f32.vlgmr.msra.gmra.mrb[24].mxu0 %v8142_v11 }
0x22e2   :  { %12801 = vmatpush3.bf16.msra.mxu0 %v14249_v10  ;;  %12078 = vmatprep.mubr.msk.f32.mxu0 %vm13368_vm2, %v13369_v15 }
0x22e3   :  { %12802 = vmatprep.subr.bf16.mxu0 %v13367_v3 }
0x22e6   :  { %12804 = vmatpush3.bf16.msra.mxu0 %v14252_v13 }
0x22e7   :  { %12805 = vmatprep.subr.bf16.mxu0 %v13367_v3 }
0x22e9   :  { %12079 = vmatmul.mubr.f32.vlgmr.msra.gmra.mrb[24].mxu0 %v8143_v50 }
0x22ea   :  { %12807 = vmatpush3.bf16.msra.mxu0 %v14285_v24  ;;  %12089 = vmatprep.mubr.msk.f32.mxu0 %vm13368_vm2, %v13369_v15 }
0x22eb   :  { %12808 = vmatprep.subr.bf16.mxu0 %v13367_v3 }
0x22ee   :  { %12810 = vmatpush3.bf16.msra.mxu0 %v14290_v31 }
0x22ef   :  { %12811 = vmatprep.subr.bf16.mxu0 %v13367_v3 }
0x22f1   :  { %12090 = vmatmul.mubr.f32.vlgmr.msra.gmra.mrb[24].mxu0 %v8141_v5 }
0x22f2   :  { %12813 = vmatpush3.bf16.msra.mxu0 %v14249_v10  ;;  %12100 = vmatprep.mubr.msk.f32.mxu0 %vm13368_vm2, %v13369_v15 }
0x22f3   :  { %12814 = vmatprep.subr.bf16.mxu0 %v13367_v3 }
0x22f6   :  { %12816 = vmatpush3.bf16.msra.mxu0 %v14252_v13 }
0x22f7   :  { %12853 = vmatprep.subr.bf16.mxu0 %v13367_v3 }
0x22f9   :  { %12101 = vmatmul.mubr.f32.vlgmr.msra.gmra.mrb[24].mxu0 %v8141_v5 }
0x22fa   :  { %12855 = vmatpush3.bf16.msra.mxu0 %v14249_v10  ;;  %12177 = vmatprep.mubr.msk.f32.mxu0 %vm13368_vm2, %v13369_v15 }
0x22fb   :  { %12856 = vmatprep.subr.bf16.mxu0 %v13367_v3 }
0x22fe   :  { %12858 = vmatpush3.bf16.msra.mxu0 %v14252_v13 }
0x22ff   :  { %12859 = vmatprep.subr.bf16.mxu0 %v13367_v3 }
0x23cc   :  { %v8553_v19 = vpop.f32.mrb[24].mxu0 }
0x23cd   :  { %v8564_v6 = vadd.f32 %v8553_v19, %v14451_v54  ;;  %v12102_v28 = vpop.f32.mrb[25].mxu0  ;;  %v8557_v57 = vadd.f32 %v8553_v19, %v8066_v32 }
0x23cf   :  { %8566 = vrot.lane.b32.xlu0 %v8564_v6, %s13370_s5  ;;  %v10422_v34 = vmul.f32 -1.442695, %v8557_v57 }
0x23d1   :  { %13263 = vpow2.f32 %v10422_v34 }
0x23db   :  { %v13264_v35 = vpop.eup %13263 }
0x23dc   :  { %v8561_v20 = vadd.f32 1.0, %v13264_v35 }
0x23de   :  { %13265 = vrcp.f32 %v8561_v20 }
0x23e8   :  { %v13266_v61 = vpop.eup %13265 }
0x23e9   :  { %v8576_v39 = vsub.f32 1.0, %v13266_v61  ;;  %v8582_v59 = vmul.f32 %v13266_v61, %v14672_v49 }
0x2441   :  { %v8567_v22 = vpop.permute.xlu0 %8566 }
0x2442   :  { %v8569_v27 = vmul.f32 %v13266_v61, %v8567_v22 }
0x2444   :  { %8571 = vrot.lane.b32.xlu1 %v8569_v27, %s13370_s5 }
0x24b6   :  { %v8572_v29 = vpop.permute.xlu1 %8571 }
0x24b7   :  { %v8574_v62 = vadd.f32 %v8572_v29, %v8066_v32 }
0x24b9   :  { %13267 = vtanh.f32 %v8574_v62 }
0x24c3   :  { %v13268_v7 = vpop.eup %13267 }
0x24c4   :  { %8578 = vrot.lane.b32.xlu0 %v13268_v7, %s13372_s19 }
0x2536   :  { %v8579_v44 = vpop.permute.xlu0 %8578 }
0x2537   :  { %v8581_v14 = vmul.f32 %v8579_v44, %v8576_v39 }
0x2539   :  { %v14718_v26 = vadd.f32 %v8582_v59, %v8581_v14  ;;  %v9116_v59 = vld [vmem:[#allocation2 + $0x30] sm:$0xff] }
0x253b   :  { %v14724_v43 = vsel %vm3514_vm14, %v14718_v26, %v14672_v49 }
0x253c   :  { %8593 = vrot.lane.b32.xlu1 %v14724_v43, %s13372_s19 }
0x25ae   :  { %v8594_v45 = vpop.permute.xlu1 %8593 }
0x25af   :  { %v8595_v48 = vsel %vm854_vm6, %v8594_v45, 0 }
0x25b0   :  { %v8666_v8 = vand.u32 4294901760, %v8595_v48 }
0x25b2   :  { %v8667_v40 = vsub.f32 %v8595_v48, %v8666_v8 }
0x25b4   :  { %v8668_v51 = vand.u32 4294901760, %v8667_v40 }
0x25b6   :  { %v8669_v16 = vsub.f32 %v8667_v40, %v8668_v51 }
0x25b8   :  { %v8670_v25 = vand.u32 4294901760, %v8669_v16 }
0x25ba   :  { %12112 = vmatmul.mubr.f32.vlgmr.msra.gmra.mrb[16].mxu1 %v8670_v25 }
0x25bb   :  { %12825 = vmatpush3.bf16.msra.mxu1 %v14257_v53  ;;  %12122 = vmatprep.mubr.msk.f32.mxu1 %vm13368_vm2, %v13369_v15 }
0x25bc   :  { %12826 = vmatprep.subr.bf16.mxu1 %v13367_v3 }
0x25bf   :  { %12828 = vmatpush3.bf16.msra.mxu1 %v14261_v55 }
0x25c0   :  { %12829 = vmatprep.subr.bf16.mxu1 %v13367_v3 }
0x25c2   :  { %12123 = vmatmul.mubr.f32.vlgmr.msra.gmra.mrb[16].mxu1 %v8666_v8 }
0x25c3   :  { %12831 = vmatpush3.bf16.msra.mxu1 %v14267_v56  ;;  %12133 = vmatprep.mubr.msk.f32.mxu1 %vm13368_vm2, %v13369_v15 }
0x25c4   :  { %12832 = vmatprep.subr.bf16.mxu1 %v13367_v3 }
0x25c7   :  { %12834 = vmatpush3.bf16.msra.mxu1 %v14272_v21 }
0x25c8   :  { %12835 = vmatprep.subr.bf16.mxu1 %v13367_v3 }
0x25ca   :  { %12134 = vmatmul.mubr.f32.vlgmr.msra.gmra.mrb[16].mxu1 %v8667_v40 }
0x25cb   :  { %12837 = vmatpush3.bf16.msra.mxu1 %v14249_v10  ;;  %12144 = vmatprep.mubr.msk.f32.mxu1 %vm13368_vm2, %v13369_v15 }
0x25cc   :  { %12838 = vmatprep.subr.bf16.mxu1 %v13367_v3 }
0x25cf   :  { %12840 = vmatpush3.bf16.msra.mxu1 %v14252_v13 }
0x25d0   :  { %12841 = vmatprep.subr.bf16.mxu1 %v13367_v3 }
0x25d2   :  { %12145 = vmatmul.mubr.f32.vlgmr.msra.gmra.mrb[16].mxu1 %v8668_v51 }
0x25d3   :  { %12843 = vmatpush3.bf16.msra.mxu1 %v14285_v24  ;;  %12155 = vmatprep.mubr.msk.f32.mxu1 %vm13368_vm2, %v13369_v15 }
0x25d4   :  { %12844 = vmatprep.subr.bf16.mxu1 %v13367_v3 }
0x25d7   :  { %12846 = vmatpush3.bf16.msra.mxu1 %v14290_v31 }
0x25d8   :  { %12847 = vmatprep.subr.bf16.mxu1 %v13367_v3 }
0x25da   :  { %12156 = vmatmul.mubr.f32.vlgmr.msra.gmra.mrb[16].mxu1 %v8666_v8 }
0x25db   :  { %12849 = vmatpush3.bf16.msra.mxu1 %v14249_v10  ;;  %12166 = vmatprep.mubr.msk.f32.mxu1 %vm13368_vm2, %v13369_v15 }
0x25dc   :  { %12850 = vmatprep.subr.bf16.mxu1 %v13367_v3 }
0x25df   :  { %12852 = vmatpush3.bf16.msra.mxu1 %v14252_v13 }
0x25e0   :  { %12889 = vmatprep.subr.bf16.mxu1 %v13367_v3 }
0x25e2   :  { %12167 = vmatmul.mubr.f32.vlgmr.msra.gmra.mrb[16].mxu1 %v8666_v8 }
0x25e3   :  { %12891 = vmatpush3.bf16.msra.mxu1 %v14249_v10  ;;  %12243 = vmatprep.mubr.msk.f32.mxu1 %vm13368_vm2, %v13369_v15 }
0x25e4   :  { %12892 = vmatprep.subr.bf16.mxu1 %v13367_v3 }
0x25e7   :  { %12894 = vmatpush3.bf16.msra.mxu1 %v14252_v13 }
0x25e8   :  { %12895 = vmatprep.subr.bf16.mxu1 %v13367_v3 }
0x26b5   :  { %v9078_v60 = vpop.f32.mrb[16].mxu1 }
0x26b6   :  { %v9089_v58 = vadd.f32 %v9078_v60, %v14451_v54  ;;  %v12168_v23 = vpop.f32.mrb[17].mxu1  ;;  %v9082_v2 = vadd.f32 %v9078_v60, %v8591_v1 }
0x26b8   :  { %9091 = vrot.lane.b32.xlu0 %v9089_v58, %s13370_s5  ;;  %v10423_v52 = vmul.f32 -1.442695, %v9082_v2 }
0x26ba   :  { %13269 = vpow2.f32 %v10423_v52 }
0x26c4   :  { %v13270_v49 = vpop.eup %13269 }
0x26c5   :  { %v9086_v42 = vadd.f32 1.0, %v13270_v49 }
0x26c7   :  { %13271 = vrcp.f32 %v9086_v42 }
0x26d1   :  { %v13272_v9 = vpop.eup %13271 }
0x26d2   :  { %v9101_v19 = vsub.f32 1.0, %v13272_v9  ;;  %v9107_v28 = vmul.f32 %v13272_v9, %v14724_v43 }
0x272a   :  { %v9092_v5 = vpop.permute.xlu0 %9091 }
0x272b   :  { %v9094_v11 = vmul.f32 %v13272_v9, %v9092_v5 }
0x272d   :  { %9096 = vrot.lane.b32.xlu1 %v9094_v11, %s13370_s5 }
0x279f   :  { %v9097_v50 = vpop.permute.xlu1 %9096 }
0x27a0   :  { %v9099_v18 = vadd.f32 %v9097_v50, %v8591_v1 }
0x27a2   :  { %13273 = vtanh.f32 %v9099_v18 }
0x27ac   :  { %v13274_v47 = vpop.eup %13273 }
0x27ad   :  { %9103 = vrot.lane.b32.xlu0 %v13274_v47, %s13372_s19 }
0x281f   :  { %v9104_v6 = vpop.permute.xlu0 %9103 }
0x2820   :  { %v9106_v32 = vmul.f32 %v9104_v6, %v9101_v19 }
0x2822   :  { %v14770_v57 = vadd.f32 %v9107_v28, %v9106_v32 }
0x2824   :  { %v14776_v34 = vsel %vm4047_vm0, %v14770_v57, %v14724_v43 }
0x2825   :  { %9118 = vrot.lane.b32.xlu1 %v14776_v34, %s13372_s19 }
0x2897   :  { %v9119_v35 = vpop.permute.xlu1 %9118 }
0x2898   :  { %v9120_v20 = vsel %vm854_vm6, %v9119_v35, 0 }
0x2899   :  { %v9191_v61 = vand.u32 4294901760, %v9120_v20 }
0x289b   :  { %v9192_v22 = vsub.f32 %v9120_v20, %v9191_v61 }
0x289d   :  { %v9193_v27 = vand.u32 4294901760, %v9192_v22 }
0x289f   :  { %v9194_v29 = vsub.f32 %v9192_v22, %v9193_v27 }
0x28a1   :  { %v9195_v62 = vand.u32 4294901760, %v9194_v29  ;;  %v9109_v29 = vsel %vm4047_vm0, %v14770_v57, -1.0 }
0x28a3   :  { %12178 = vmatmul.mubr.f32.vlgmr.msra.gmra.mrb[26].mxu0 %v9195_v62 }
0x28a4   :  { %12861 = vmatpush3.bf16.msra.mxu0 %v14257_v53  ;;  %12188 = vmatprep.mubr.msk.f32.mxu0 %vm13368_vm2, %v13369_v15 }
0x28a5   :  { %12862 = vmatprep.subr.bf16.mxu0 %v13367_v3 }
0x28a8   :  { %12864 = vmatpush3.bf16.msra.mxu0 %v14261_v55 }
0x28a9   :  { %12865 = vmatprep.subr.bf16.mxu0 %v13367_v3 }
0x28ab   :  { %12189 = vmatmul.mubr.f32.vlgmr.msra.gmra.mrb[26].mxu0 %v9191_v61 }
0x28ac   :  { %12867 = vmatpush3.bf16.msra.mxu0 %v14267_v56  ;;  %12199 = vmatprep.mubr.msk.f32.mxu0 %vm13368_vm2, %v13369_v15 }
0x28ad   :  { %12868 = vmatprep.subr.bf16.mxu0 %v13367_v3 }
0x28b0   :  { %12870 = vmatpush3.bf16.msra.mxu0 %v14272_v21 }
0x28b1   :  { %12871 = vmatprep.subr.bf16.mxu0 %v13367_v3 }
0x28b3   :  { %12200 = vmatmul.mubr.f32.vlgmr.msra.gmra.mrb[26].mxu0 %v9192_v22  ;;  %v7009_v22 = vsel %vm1915_vm8, %v14562_v38, -1.0  ;;  %vm10272_vm8 = vcmask 1045509  }
0x28b4   :  { %12873 = vmatpush3.bf16.msra.mxu0 %v14249_v10  ;;  %12210 = vmatprep.mubr.msk.f32.mxu0 %vm13368_vm2, %v13369_v15 }
0x28b5   :  { %12874 = vmatprep.subr.bf16.mxu0 %v13367_v3 }
0x28b8   :  { %12876 = vmatpush3.bf16.msra.mxu0 %v14252_v13 }
0x28b9   :  { %12877 = vmatprep.subr.bf16.mxu0 %v13367_v3 }
0x28bb   :  { %12211 = vmatmul.mubr.f32.vlgmr.msra.gmra.mrb[26].mxu0 %v9193_v27  ;;  %v8059_v27 = vsel %vm2981_vm12, %v14666_v0, -1.0  ;;  %vm10279_vm12 = vcmask 64512  }
0x28bc   :  { %12879 = vmatpush3.bf16.msra.mxu0 %v14285_v24  ;;  %12221 = vmatprep.mubr.msk.f32.mxu0 %vm13368_vm2, %v13369_v15 }
0x28bd   :  { %12880 = vmatprep.subr.bf16.mxu0 %v13367_v3 }
0x28c0   :  { %12882 = vmatpush3.bf16.msra.mxu0 %v14290_v31 }
0x28c1   :  { %12883 = vmatprep.subr.bf16.mxu0 %v13367_v3 }
0x28c3   :  { %12222 = vmatmul.mubr.f32.vlgmr.msra.gmra.mrb[26].mxu0 %v9191_v61 }
0x28c4   :  { %12885 = vmatpush3.bf16.msra.mxu0 %v14249_v10  ;;  %12232 = vmatprep.mubr.msk.f32.mxu0 %vm13368_vm2, %v13369_v15 }
0x28c5   :  { %12886 = vmatprep.subr.bf16.mxu0 %v13367_v3 }
0x28c8   :  { %12888 = vmatpush3.bf16.msra.mxu0 %v14252_v13 }
0x28cb   :  { %12233 = vmatmul.mubr.f32.vlgmr.msra.gmra.mrb[26].mxu0 %v9191_v61 }
0x299e   :  { %v9603_v7 = vpop.f32.mrb[26].mxu0 }
0x299f   :  { %v9614_v39 = vadd.f32 %v9603_v7, %v14451_v54  ;;  %v12234_v44 = vpop.f32.mrb[27].mxu0  ;;  %v9607_v14 = vadd.f32 %v9603_v7, %v9116_v59 }
0x29a1   :  { %9616 = vrot.lane.b32.xlu0 %v9614_v39, %s13370_s5  ;;  %v10424_v43 = vmul.f32 -1.442695, %v9607_v14 }
0x29a3   :  { %13275 = vpow2.f32 %v10424_v43 }
0x29ad   :  { %v13276_v45 = vpop.eup %13275 }
0x29ae   :  { %v9611_v48 = vadd.f32 1.0, %v13276_v45 }
0x29b0   :  { %13277 = vrcp.f32 %v9611_v48 }
0x29ba   :  { %v13278_v8 = vpop.eup %13277 }
0x29bb   :  { %v9626_v58 = vsub.f32 1.0, %v13278_v8  ;;  %v9632_v1 = vmul.f32 %v13278_v8, %v14776_v34 }
0x2a13   :  { %v9617_v40 = vpop.permute.xlu0 %9616 }
0x2a14   :  { %v9619_v51 = vmul.f32 %v13278_v8, %v9617_v40 }
0x2a16   :  { %9621 = vrot.lane.b32.xlu1 %v9619_v51, %s13370_s5 }
0x2a88   :  { %v9622_v16 = vpop.permute.xlu1 %9621 }
0x2a89   :  { %v9624_v25 = vadd.f32 %v9622_v16, %v9116_v59 }
0x2a8b   :  { %13279 = vtanh.f32 %v9624_v25 }
0x2a95   :  { %v13280_v60 = vpop.eup %13279 }
0x2a96   :  { %9628 = vrot.lane.b32.xlu0 %v13280_v60, %s13372_s19 }
0x2b08   :  { %v9629_v23 = vpop.permute.xlu0 %9628 }
0x2b09   :  { %v9631_v2 = vmul.f32 %v9629_v23, %v9626_v58 }
0x2b0b   :  { %v9633_v52 = vadd.f32 %v9632_v1, %v9631_v2 }
0x2b0d   :  { %v14818_v49 = vsel %vm4580_vm4, %v9633_v52, %v14776_v34  ;;  %v9634_v32 = vsel %vm4580_vm4, %v9633_v52, -1.0 }
0x2b0e   :  { %9643 = vrot.lane.b32.xlu1 %v14818_v49, %s13372_s19 }
0x2b80   :  { %v9644_v42 = vpop.permute.xlu1 %9643 }
0x2b81   :  { %v9645_v9 = vsel %vm854_vm6, %v9644_v42, 0 }
0x2b82   :  { %v9716_v5 = vand.u32 4294901760, %v9645_v9 }
0x2b84   :  { %v9717_v11 = vsub.f32 %v9645_v9, %v9716_v5 }
0x2b86   :  { %v9718_v50 = vand.u32 4294901760, %v9717_v11 }
0x2b88   :  { %v9719_v18 = vsub.f32 %v9717_v11, %v9718_v50 }
0x2b8a   :  { %v9720_v47 = vand.u32 4294901760, %v9719_v18 }
0x2b8c   :  { %12244 = vmatmul.mubr.f32.vlgmr.msra.gmra.mrb[18].mxu1 %v9720_v47  ;;  %v10213_v47 = vstv %s14978_s11  ;;  %s13373_s11 = smov [#allocation5]  }
0x2b8d   :  { %12897 = vmatpush3.bf16.msra.mxu1 %v14257_v53  ;;  %12254 = vmatprep.mubr.msk.f32.mxu1 %vm13368_vm2, %v13369_v15  ;;  %s10384_s17 = sshll.u32 %s13373_s11, 4  ;;  %s10385_s17 = int_to_ptr.vmem [resolvable:$true] %s10384_s17 }
0x2b8e   :  { %12898 = vmatprep.subr.bf16.mxu1 %v13367_v3  ;;  %s13319_s4 = scalar_lea.vmem %s10385_s17, 128  ;;  %p13324_p1 = scmp.lt.s32.totalorder %s10385_s17, %s10385_s17 }
0x2b8f   :  { %p13320_p0 = scmp.ne.s32.totalorder %s10385_s17, %s13319_s4  ;;  %p13325_p2 = scmp.lt.s32.totalorder %s13319_s4, %s13319_s4 }
0x2b91   :  { %12900 = vmatpush3.bf16.msra.mxu1 %v14261_v55  ;;  %p13326_p3 = por %p13325_p2, %p13324_p1 }
0x2b92   :  { %12901 = vmatprep.subr.bf16.mxu1 %v13367_v3 }
0x2b93   :  { %p13327_p4 = pnand %p13326_p3, %p13320_p0 }
0x2b94   :  { %12255 = vmatmul.mubr.f32.vlgmr.msra.gmra.mrb[18].mxu1 %v9716_v5 }
0x2b95   :  { %12903 = vmatpush3.bf16.msra.mxu1 %v14267_v56  ;;  %12265 = vmatprep.mubr.msk.f32.mxu1 %vm13368_vm2, %v13369_v15 }
0x2b96   :  { %12904 = vmatprep.subr.bf16.mxu1 %v13367_v3 }
0x2b99   :  { %12906 = vmatpush3.bf16.msra.mxu1 %v14272_v21  ;;  %v9641_v21 = vld [vmem:[#allocation2 + $0x38] sm:$0xff] }
0x2b9a   :  { %12907 = vmatprep.subr.bf16.mxu1 %v13367_v3 }
0x2b9c   :  { %12266 = vmatmul.mubr.f32.vlgmr.msra.gmra.mrb[18].mxu1 %v9717_v11 }
0x2b9d   :  { %12909 = vmatpush3.bf16.msra.mxu1 %v14249_v10  ;;  %12276 = vmatprep.mubr.msk.f32.mxu1 %vm13368_vm2, %v13369_v15 }
0x2b9e   :  { %12910 = vmatprep.subr.bf16.mxu1 %v13367_v3 }
0x2ba1   :  { %12912 = vmatpush3.bf16.msra.mxu1 %v14252_v13 }
0x2ba2   :  { %12913 = vmatprep.subr.bf16.mxu1 %v13367_v3 }
0x2ba4   :  { %12277 = vmatmul.mubr.f32.vlgmr.msra.gmra.mrb[18].mxu1 %v9718_v50 }
0x2ba5   :  { %12915 = vmatpush3.bf16.msra.mxu1 %v14285_v24  ;;  %12287 = vmatprep.mubr.msk.f32.mxu1 %vm13368_vm2, %v13369_v15 }
0x2ba6   :  { %12916 = vmatprep.subr.bf16.mxu1 %v13367_v3 }
0x2ba9   :  { %12918 = vmatpush3.bf16.msra.mxu1 %v14290_v31 }
0x2baa   :  { %12919 = vmatprep.subr.bf16.mxu1 %v13367_v3 }
0x2bac   :  { %12288 = vmatmul.mubr.f32.vlgmr.msra.gmra.mrb[18].mxu1 %v9716_v5 }
0x2bad   :  { %12921 = vmatpush3.bf16.msra.mxu1 %v14249_v10  ;;  %12298 = vmatprep.mubr.msk.f32.mxu1 %vm13368_vm2, %v13369_v15  ;;  %vm10264_vm2 = vcmask 1041409  }
0x2bae   :  { %12922 = vmatprep.subr.bf16.mxu1 %v13367_v3  ;;  %v6484_v3 = vsel %vm1383_vm5, %v14511_v12, -1.0  ;;  %vm10268_vm5 = vcmask 1043459  }
0x2bb1   :  { %12924 = vmatpush3.bf16.msra.mxu1 %v14252_v13  ;;  %v7534_v13 = vsel %vm2448_vm10, %v14614_v37, -1.0  ;;  %vm10274_vm10 = vcmask 1046534  }
0x2bb4   :  { %12299 = vmatmul.mubr.f32.vlgmr.msra.gmra.mrb[18].mxu1 %v9716_v5 }
0x2c87   :  { %v10128_v53 = vpop.f32.mrb[18].mxu1 }
0x2c88   :  { %v10139_v55 = vadd.f32 %v10128_v53, %v14451_v54  ;;  %v12300_v56 = vpop.f32.mrb[19].mxu1  ;;  %v10132_v24 = vadd.f32 %v10128_v53, %v9641_v21  ;;  %v8584_v54 = vsel %vm3514_vm14, %v14718_v26, -1.0 }
0x2c8a   :  { %10141 = vrot.lane.b32.xlu0 %v10139_v55, %s13370_s5  ;;  %v10425_v31 = vmul.f32 -1.442695, %v10132_v24  ;;  %v10230_v24 = vlaneseq }
0x2c8c   :  { %13281 = vpow2.f32 %v10425_v31 }
0x2c96   :  { %v13282_v19 = vpop.eup %13281 }
0x2c97   :  { %v10136_v10 = vadd.f32 1.0, %v13282_v19 }
0x2c99   :  { %13283 = vrcp.f32 %v10136_v10 }
0x2ca3   :  { %v13284_v6 = vpop.eup %13283 }
0x2ca4   :  { %v10151_v62 = vsub.f32 1.0, %v13284_v6  ;;  %v10157_v39 = vmul.f32 %v13284_v6, %v14818_v49 }
0x2cfc   :  { %v10142_v15 = vpop.permute.xlu0 %10141 }
0x2cfd   :  { %v10144_v28 = vmul.f32 %v13284_v6, %v10142_v15  ;;  %v10231_v15 = vand.u32 127, %v10230_v24 }
0x2cff   :  { %10146 = vrot.lane.b32.xlu1 %v10144_v28, %s13370_s5  ;;  %v10233_v28 = vshrl.u32 %v10230_v24, 7 }
0x2d03   :  { %6486 = vrot.lane.b32.xlu1 %v6484_v3, %s13372_s19 }
0x2d07   :  { %7536 = vrot.lane.b32.xlu1 %v7534_v13, %s13372_s19 }
0x2d0b   :  { %8586 = vrot.lane.b32.xlu1 %v8584_v54, %s13372_s19 }
0x2d0f   :  { %9636 = vrot.lane.b32.xlu1 %v9634_v32, %s13372_s19 }
0x2d71   :  { %v10147_v17 = vpop.permute.xlu1 %10146 }
0x2d72   :  { %v10149_v12 = vadd.f32 %v10147_v17, %v9641_v21 }
0x2d74   :  { %13285 = vtanh.f32 %v10149_v12 }
0x2d75   :  { %v6487_v34 = vpop.permute.xlu1 %6486 }
0x2d76   :  { %6489 = vst.msk [vmem:[#allocation3] sm:$0xff] %vm854_vm6, %v6487_v34  ;;  %v14909_v34 = vsub.s32 %v10231_v15, %v10233_v28 }
0x2d79   :  { %v7537_v46 = vpop.permute.xlu1 %7536 }
0x2d7a   :  { %7539 = vst.msk [vmem:[#allocation3 + $0x10] sm:$0xff] %vm854_vm6, %v7537_v46 }
0x2d7d   :  { %v8587_v37 = vpop.permute.xlu1 %8586  ;;  %v10165_v26 = vld [vmem:[#allocation3] sm:$0xff] }
0x2d7e   :  { %v13286_v35 = vpop.eup %13285  ;;  %8589 = vst.msk [vmem:[#allocation3 + $0x20] sm:$0xff] %vm854_vm6, %v8587_v37  ;;  %v10180_v4 = vmul.f32 %v10426_v30, %v10165_v26 }
0x2d7f   :  { %10153 = vrot.lane.b32.xlu0 %v13286_v35, %s13372_s19 }
0x2d80   :  { %v10188_v20 = vsel %vm854_vm6, %v10180_v4, 0.0 }
0x2d81   :  { %10189 = vadd.xlane.f32.xlu1 %v10188_v20  ;;  %v9637_v61 = vpop.permute.xlu1 %9636  ;;  %v10167_v40 = vld [vmem:[#allocation3 + $0x10] sm:$0xff] }
0x2d82   :  { %9639 = vst.msk [vmem:[#allocation3 + $0x30] sm:$0xff] %vm854_vm6, %v9637_v61  ;;  %v10182_v16 = vmul.f32 %v10426_v30, %v10167_v40 }
0x2d83   :  { %7011 = vrot.lane.b32.xlu0 %v7009_v22, %s13372_s19 }
0x2d84   :  { %v10194_v60 = vsel %vm854_vm6, %v10182_v16, 0.0 }
0x2d85   :  { %v10169_v25 = vld [vmem:[#allocation3 + $0x20] sm:$0xff] }
0x2d86   :  { %v10184_v58 = vmul.f32 %v10426_v30, %v10169_v25 }
0x2d87   :  { %8061 = vrot.lane.b32.xlu0 %v8059_v27, %s13372_s19 }
0x2d88   :  { %v10200_v1 = vsel %vm854_vm6, %v10184_v58, 0.0 }
0x2d89   :  { %v10171_v23 = vld [vmem:[#allocation3 + $0x30] sm:$0xff] }
0x2d8a   :  { %v10186_v2 = vmul.f32 %v10426_v30, %v10171_v23 }
0x2d8b   :  { %9111 = vrot.lane.b32.xlu0 %v9109_v29, %s13372_s19 }
0x2d8c   :  { %v10206_v52 = vsel %vm854_vm6, %v10186_v2, 0.0 }
0x2df1   :  { %v10154_v7 = vpop.permute.xlu0 %10153 }
0x2df2   :  { %v10156_v36 = vmul.f32 %v10154_v7, %v10151_v62 }
0x2df4   :  { %v10158_v38 = vadd.f32 %v10157_v39, %v10156_v36 }
0x2df5   :  { %v7012_v44 = vpop.permute.xlu0 %7011 }
0x2df6   :  { %7014 = vst.msk [vmem:[#allocation3 + $0x8] sm:$0xff] %vm854_vm6, %v7012_v44  ;;  %v10159_v63 = vsel %vm5113_vm9, %v10158_v38, -1.0 }
0x2df7   :  { %10161 = vrot.lane.b32.xlu0 %v10159_v63, %s13372_s19 }
0x2df9   :  { %v8062_v0 = vpop.permute.xlu0 %8061 }
0x2dfa   :  { %8064 = vst.msk [vmem:[#allocation3 + $0x18] sm:$0xff] %vm854_vm6, %v8062_v0 }
0x2dfd   :  { %v9112_v41 = vpop.permute.xlu0 %9111  ;;  %v10166_v33 = vld [vmem:[#allocation3 + $0x8] sm:$0xff] }
0x2dfe   :  { %9114 = vst.msk [vmem:[#allocation3 + $0x28] sm:$0xff] %vm854_vm6, %v9112_v41  ;;  %v10181_v8 = vmul.f32 %v10426_v30, %v10166_v33 }
0x2e00   :  { %v10191_v51 = vsel %vm854_vm6, %v10181_v8, 0.0 }
0x2e01   :  { %v10168_v57 = vld [vmem:[#allocation3 + $0x18] sm:$0xff] }
0x2e02   :  { %v10183_v59 = vmul.f32 %v10426_v30, %v10168_v57 }
0x2e04   :  { %v10197_v14 = vsel %vm854_vm6, %v10183_v59, 0.0 }
0x2e05   :  { %10198 = vadd.xlane.f32.xlu1 %v10197_v14  ;;  %v10170_v43 = vld [vmem:[#allocation3 + $0x28] sm:$0xff] }
0x2e06   :  { %v10185_v45 = vmul.f32 %v10426_v30, %v10170_v43 }
0x2e08   :  { %v10203_v48 = vsel %vm854_vm6, %v10185_v45, 0.0 }
0x2e09   :  { %10204 = vadd.xlane.f32.xlu1 %v10203_v48 }
0x2e0e   :  { %v10190_v18 = vpop.xlane.xlu1 %10189 }
0x2e0f   :  { %v10214_v31 = vadd.f32 %v10213_v47, %v10190_v18 }
0x2e11   :  { %v10427_v3 = vmul.f32 -1.442695, %v10214_v31  ;;  %v10235_v4 = vrot.slane %v10214_v31, %v14909_v34 }
0x2e16   :  { %10192 = vadd.xlane.f32.xlu0 %v10191_v51 }
0x2e1a   :  { %10195 = vadd.xlane.f32.xlu0 %v10194_v60 }
0x2e1e   :  { %10201 = vadd.xlane.f32.xlu0 %v10200_v1 }
0x2e22   :  { %10207 = vadd.xlane.f32.xlu0 %v10206_v52 }
0x2e69   :  { %v10162_v49 = vpop.permute.xlu0 %10161 }
0x2e6a   :  { %10164 = vst.msk [vmem:[#allocation3 + $0x38] sm:$0xff] %vm854_vm6, %v10162_v49 }
0x2e71   :  { %v10172_v42 = vld [vmem:[#allocation3 + $0x38] sm:$0xff] }
0x2e72   :  { %v10187_v9 = vmul.f32 %v10426_v30, %v10172_v42 }
0x2e74   :  { %v10209_v5 = vsel %vm854_vm6, %v10187_v9, 0.0  ;;  %vm10270_vm6 = vcmask 1044484  }
0x2e75   :  { %10210 = vadd.xlane.f32.xlu1 %v10209_v5 }
0x2e92   :  { %v10199_v21 = vpop.xlane.xlu1 %10198 }
0x2e93   :  { %v10217_v13 = vadd.f32 %v10213_v47, %v10199_v21 }
0x2e95   :  { %v10430_v46 = vmul.f32 -1.442695, %v10217_v13  ;;  %v10247_v7 = vrot.slane %v10217_v13, %v14909_v34 }
0x2e96   :  { %v10205_v32 = vpop.xlane.xlu1 %10204 }
0x2e97   :  { %v10219_v30 = vadd.f32 %v10213_v47, %v10205_v32 }
0x2e99   :  { %v10432_v20 = vmul.f32 -1.442695, %v10219_v30  ;;  %v10255_v57 = vrot.slane %v10219_v30, %v14909_v34 }
0x2ea3   :  { %v10193_v11 = vpop.xlane.xlu0 %10192 }
0x2ea4   :  { %v10215_v53 = vadd.f32 %v10213_v47, %v10193_v11 }
0x2ea6   :  { %v10428_v19 = vmul.f32 -1.442695, %v10215_v53  ;;  %v10239_v37 = vrot.slane %v10215_v53, %v14909_v34 }
0x2ea7   :  { %v10196_v50 = vpop.xlane.xlu0 %10195 }
0x2ea8   :  { %v10216_v55 = vadd.f32 %v10213_v47, %v10196_v50  ;;  %13287 = vpow2.f32 %v10428_v19  ;;  %v10265_v61 = vsel %vm10264_vm2, %v10239_v37, %v10235_v4 }
0x2eaa   :  { %v10429_v10 = vmul.f32 -1.442695, %v10216_v55  ;;  %v10243_v26 = vrot.slane %v10216_v55, %v14909_v34 }
0x2eab   :  { %v10202_v56 = vpop.xlane.xlu0 %10201 }
0x2eac   :  { %v10218_v6 = vadd.f32 %v10213_v47, %v10202_v56  ;;  %13289 = vpow2.f32 %v10429_v10  ;;  %v10267_v27 = vsel %vm10266_vm3, %v10243_v26, %v10265_v61 }
0x2ead   :  { %13291 = vpow2.f32 %v10427_v3  ;;  %v10269_v38 = vsel %vm10268_vm5, %v10247_v7, %v10267_v27 }
0x2eae   :  { %v10431_v17 = vmul.f32 -1.442695, %v10218_v6  ;;  %v10251_v29 = vrot.slane %v10218_v6, %v14909_v34 }
0x2eaf   :  { %v10208_v54 = vpop.xlane.xlu0 %10207 }
0x2eb0   :  { %v10220_v12 = vadd.f32 %v10213_v47, %v10208_v54  ;;  %13293 = vpow2.f32 %v10431_v17  ;;  %v10271_v63 = vsel %vm10270_vm6, %v10251_v29, %v10269_v38 }
0x2eb1   :  { %13295 = vpow2.f32 %v10430_v46  ;;  %v10273_v8 = vsel %vm10272_vm8, %v10255_v57, %v10271_v63 }
0x2eb2   :  { %v10433_v35 = vmul.f32 -1.442695, %v10220_v12  ;;  %v13288_v22 = vpop.eup %13287  ;;  %v10259_v0 = vrot.slane %v10220_v12, %v14909_v34 }
0x2eb3   :  { %v10306_v36 = vadd.f32 1.0, %v13288_v22 }
0x2eb4   :  { %13297 = vpow2.f32 %v10433_v35  ;;  %v10275_v40 = vsel %vm10274_vm10, %v10259_v0, %v10273_v8 }
0x2eb5   :  { %13299 = vpow2.f32 %v10432_v20 }
0x2eb6   :  { %v13290_v62 = vpop.eup %13289  ;;  %13301 = vrcp.f32 %v10306_v36 }
0x2eb7   :  { %v13292_v39 = vpop.eup %13291  ;;  %v10307_v44 = vadd.f32 1.0, %v13290_v62 }
0x2eb8   :  { %v10305_v43 = vadd.f32 1.0, %v13292_v39 }
0x2eb9   :  { %13303 = vrcp.f32 %v10307_v44 }
0x2eba   :  { %v13294_v14 = vpop.eup %13293 }
0x2ebb   :  { %v13296_v45 = vpop.eup %13295  ;;  %v10309_v51 = vadd.f32 1.0, %v13294_v14 }
0x2ebc   :  { %v10308_v60 = vadd.f32 1.0, %v13296_v45 }
0x2ebe   :  { %v13298_v25 = vpop.eup %13297 }
0x2ebf   :  { %v13300_v58 = vpop.eup %13299 }
0x2f02   :  { %v10211_v41 = vpop.xlane.xlu1 %10210 }
0x2f03   :  { %v10221_v59 = vadd.f32 %v10213_v47, %v10211_v41 }
0x2f05   :  { %v10263_v48 = vrot.slane %v10221_v59, %v14909_v34  ;;  %v10434_v33 = vmul.f32 -1.442695, %v10221_v59 }
0x2f07   :  { %13305 = vpow2.f32 %v10434_v33  ;;  %v10277_v16 = vsel %vm10276_vm11, %v10263_v48, %v10275_v40 }
0x2f08   :  { %13307 = vrcp.f32 %v10305_v43  ;;  %10280 = vst.msk [vmem:[#allocation5] sm:$0xff] %vm10279_vm12, %v10277_v16 }
0x2f09   :  { %13330 = shalt.err (!%p13327_p4)
}
0x2f0a   :  { %s13331_s1 = scalar_lea.hbm %s14979_s12, 128 }
0x2f0b   :  { %p13332_p5 = scmp.ne.s32.totalorder %s14979_s12, %s13331_s1  ;;  %p13335_p6 = scmp.lt.u32.totalorder %s13331_s1, %s14979_s12 }
0x2f0d   :  { %p13337_p7 = pnand %p13335_p6, %p13332_p5 }
0x2f0f   :  { %13340 = shalt.err (!%p13337_p7)
}
0x2f10   :  { %10387 = dma.vmem_to_hbm [thread:$0]  %s10385_s17, 128, %s14979_s12, [#allocation6]   ;;  %13309 = vrcp.f32 %v10309_v51  ;;  %v10311_v23 = vadd.f32 1.0, %v13298_v25  ;;  %v10310_v1 = vadd.f32 1.0, %v13300_v58  ;;  %v13302_v2 = vpop.eup %13301 }
0x2f11   :  { %13311 = vrcp.f32 %v10308_v60  ;;  %v13304_v52 = vpop.eup %13303  ;;  %v10344_v5 = vrot.slane %v13302_v2, %v14909_v34  ;;  %s13374_s12 = smov [#allocation7]  }
0x2f12   :  { %13313 = vrcp.f32 %v10311_v23  ;;  %v13306_v49 = vpop.eup %13305  ;;  %v10348_v11 = vrot.slane %v13304_v52, %v14909_v34  ;;  %s10394_s24 = sshll.u32 %s13374_s12, 4  ;;  %s10395_s24 = int_to_ptr.vmem [resolvable:$true] %s10394_s24 }
0x2f13   :  { %13315 = vrcp.f32 %v10310_v1  ;;  %v13308_v42 = vpop.eup %13307  ;;  %v10312_v9 = vadd.f32 1.0, %v13306_v49  ;;  %s13341_s6 = scalar_lea.vmem %s10395_s24, 128  ;;  %p13346_p9 = scmp.lt.s32.totalorder %s10395_s24, %s10395_s24 }
0x2f14   :  { %v10340_v18 = vrot.slane %v13308_v42, %v14909_v34  ;;  %p13342_p8 = scmp.ne.s32.totalorder %s10395_s24, %s13341_s6  ;;  %p13347_p10 = scmp.lt.s32.totalorder %s13341_s6, %s13341_s6 }
0x2f15   :  { %13317 = vrcp.f32 %v10312_v9 }
0x2f16   :  { %v10369_v53 = vsel %vm10264_vm2, %v10344_v5, %v10340_v18  ;;  %p13348_p11 = por %p13347_p10, %p13346_p9 }
0x2f17   :  { %v10370_v55 = vsel %vm10266_vm3, %v10348_v11, %v10369_v53 }
0x2f18   :  { %p13349_p12 = pnand %p13348_p11, %p13342_p8 }
0x2f1a   :  { %v13310_v50 = vpop.eup %13309 }
0x2f1b   :  { %v13312_v47 = vpop.eup %13311  ;;  %v10356_v56 = vrot.slane %v13310_v50, %v14909_v34 }
0x2f1c   :  { %v13314_v21 = vpop.eup %13313  ;;  %v10352_v24 = vrot.slane %v13312_v47, %v14909_v34 }
0x2f1d   :  { %v13316_v31 = vpop.eup %13315  ;;  %v10364_v10 = vrot.slane %v13314_v21, %v14909_v34 }
0x2f1e   :  { %v10371_v19 = vsel %vm10268_vm5, %v10352_v24, %v10370_v55  ;;  %v10360_v15 = vrot.slane %v13316_v31, %v14909_v34 }
0x2f1f   :  { %v10372_v6 = vsel %vm10270_vm6, %v10356_v56, %v10371_v19  ;;  %v13318_v28 = vpop.eup %13317 }
0x2f20   :  { %v10368_v3 = vrot.slane %v13318_v28, %v14909_v34  ;;  %v10373_v13 = vsel %vm10272_vm8, %v10360_v15, %v10372_v6 }
0x2f21   :  { %v10374_v54 = vsel %vm10274_vm10, %v10364_v10, %v10373_v13 }
0x2f22   :  { %v10375_v32 = vsel %vm10276_vm11, %v10368_v3, %v10374_v54 }
0x2f23   :  { %10377 = vst.msk [vmem:[#allocation7] sm:$0xff] %vm10279_vm12, %v10375_v32 }
0x2f24   :  { %13352 = shalt.err (!%p13349_p12)
}
0x2f25   :  { %s13353_s27 = scalar_lea.hbm %s14980_s13, 128 }
0x2f26   :  { %p13354_p13 = scmp.ne.s32.totalorder %s14980_s13, %s13353_s27  ;;  %p13357_p0 = scmp.lt.u32.totalorder %s13353_s27, %s14980_s13 }
0x2f28   :  { %p13359_p1 = pnand %p13357_p0, %p13354_p13 }
0x2f2a   :  { %13362 = shalt.err (!%p13359_p1)
}
0x2f2b   :  { %10397 = dma.vmem_to_hbm [thread:$0]  %s10395_s24, 128, %s14980_s13, [#allocation8]  }
0x2f2c   :  { %13363 = dma.done.wait [#allocation6], 128  }
0x2f2d   :  { %13364 = vsyncadd [#allocation6], 4294967168 }
0x2f2e   :  { %13365 = dma.done.wait [#allocation8], 128  }
0x2f2f   :  { %13366 = vsyncadd [#allocation8], 4294967168 }
0x2f30   :  { %10404 = vsyncpa [#allocation6], 1 }
0x2f31   :  { %10405 = vsyncpa [#allocation8], 1 }

</bundles_post_ra>
